<compile_context>
chip_gen: v7x
topology: tpu7x:2x2x1
jax: 0.10.0
libtpu: 0.0.40
codegen_flags: <defaults>
</compile_context>

<pallas_src>
import jax
import jax.numpy as jnp
from jax.experimental import pallas as pl
from jax.experimental.pallas import tpu as pltpu


# -----------------------------------------------------------------------------
# Pallas kernels
# -----------------------------------------------------------------------------
def _conv1_kernel(p_ref, w_ref, b_ref, o_ref):
    """Per-batch conv1 as a matmul, channel-major (lane-dense) output.

    p_ref: (1, 400, Kc) bf16  im2col patches of one image (row = h*20 + w)
    w_ref: (16, Kc)     bf16  conv1 weight, columns in patch-feature order
    b_ref: (16, 1)      f32
    o_ref: (1, 16, 400) bf16  == NCHW conv1 output for this batch element
    """
    acc = jax.lax.dot_general(
        w_ref[...], p_ref[0],
        dimension_numbers=(((1,), (1,)), ((), ())),       # A @ B^T
        preferred_element_type=jnp.float32)                # (16, 400) f32
    o_ref[0] = jnp.maximum(acc + b_ref[...], 0.0).astype(o_ref.dtype)


def _tail_kernel(p_ref, w2_ref, b2_ref, w3_ref, b3_ref, w4_ref, b4_ref, o_ref):
    """Fused conv2 + fc1(+ReLU) + fc2 for one batch element.

    p_ref:  (1, 81, 256)  bf16  im2col patches of conv1 output (row = h*9 + w)
    w2_ref: (32, 256)     bf16  conv2 weight, columns in patch-feature order
    b2_ref: (32, 1)       f32
    w3_ref: (32, 81, 256) bf16  fc1 weight: w3[c, p, n] == fc1_w[n, c*81 + p]
    b3_ref: (1, 256)      f32
    w4_ref: (256, A)      bf16
    b4_ref: (1, A)        f32
    o_ref:  (1, 1, A)     f32
    """
    # conv2: channel-major (32, 81) activation == torch's NCHW layout.
    h2 = jax.lax.dot_general(
        w2_ref[...], p_ref[0],
        dimension_numbers=(((1,), (1,)), ((), ())),        # A @ B^T
        preferred_element_type=jnp.float32)                # (32, 81)
    h2 = jnp.maximum(h2 + b2_ref[...], 0.0).astype(jnp.bfloat16)

    # fc1: out[n] = sum_{c,p} h2[c, p] * w3[c, p, n].  Instead of an in-kernel
    # (81,32)->(1,2592) flatten relayout, split the contraction into 32 static
    # (1,81)@(81,256) dots; every fc1 weight element still streams through
    # VMEM/MXU exactly once.
    fc1 = b3_ref[...]                                      # (1, 256) f32
    for c in range(h2.shape[0]):                           # static unroll (32)
        fc1 = fc1 + jnp.dot(h2[c:c + 1, :], w3_ref[c],
                            preferred_element_type=jnp.float32)
    h3 = jnp.maximum(fc1, 0.0).astype(jnp.bfloat16)        # (1, 256)

    # fc2
    out = jnp.dot(h3, w4_ref[...], preferred_element_type=jnp.float32)
    o_ref[0] = (out + b4_ref[...]).astype(o_ref.dtype)     # (1, A)


# -----------------------------------------------------------------------------
# pallas_call wrappers (full-array blocks, per-batch "parallel" grid)
# -----------------------------------------------------------------------------
def conv1_matmul(p1, w1t, b1):
    """relu(conv1): p1 (B, 400, Kc) bf16 -> (B, 16, 400) bf16 (NCHW-flat)."""
    B, M, Kc = p1.shape
    Co = w1t.shape[0]
    return pl.pallas_call(
        _conv1_kernel,
        out_shape=jax.ShapeDtypeStruct((B, Co, M), jnp.bfloat16),
        grid=(B,),
        in_specs=[
            pl.BlockSpec((1, M, Kc), lambda b: (b, 0, 0)),   # per-batch patches
            pl.BlockSpec((Co, Kc), lambda b: (0, 0)),        # weight (resident)
            pl.BlockSpec((Co, 1), lambda b: (0, 0)),         # bias
        ],
        out_specs=pl.BlockSpec((1, Co, M), lambda b: (b, 0, 0)),
        compiler_params=pltpu.CompilerParams(
            dimension_semantics=("parallel",)),
    )(p1, w1t, b1)


def tail_fused(p2, w2t, b2, w3r, b3, w4, b4):
    """Fused conv2+fc1+fc2: p2 (B, 81, 256) bf16 -> (B, A) f32."""
    B, P, Kc = p2.shape
    C2 = w2t.shape[0]
    H = b3.shape[1]
    A = w4.shape[1]
    out = pl.pallas_call(
        _tail_kernel,
        out_shape=jax.ShapeDtypeStruct((B, 1, A), jnp.float32),
        grid=(B,),
        in_specs=[
            pl.BlockSpec((1, P, Kc), lambda b: (b, 0, 0)),   # per-batch patches
            pl.BlockSpec((C2, Kc), lambda b: (0, 0)),        # conv2 weight
            pl.BlockSpec((C2, 1), lambda b: (0, 0)),         # conv2 bias
            pl.BlockSpec((C2, P, H), lambda b: (0, 0, 0)),   # fc1 weight (1.3 MB)
            pl.BlockSpec((1, H), lambda b: (0, 0)),          # fc1 bias
            pl.BlockSpec((H, A), lambda b: (0, 0)),          # fc2 weight
            pl.BlockSpec((1, A), lambda b: (0, 0)),          # fc2 bias
        ],
        out_specs=pl.BlockSpec((1, 1, A), lambda b: (b, 0, 0)),
        compiler_params=pltpu.CompilerParams(
            dimension_semantics=("parallel",)),
    )(p2, w2t, b2, w3r, b3, w4, b4)
    return out.reshape(B, A)


# -----------------------------------------------------------------------------
# im2col glue (strided-slice lowering, no gather) + layout-proof weight prep
# -----------------------------------------------------------------------------
def _patches_nchw(x, k, stride, pad):
    """im2col of an NCHW array -> (B, Ho*Wo, C*k*k) plus (Ho, Wo)."""
    p = jax.lax.conv_general_dilated_patches(
        x, filter_shape=(k, k), window_strides=(stride, stride),
        padding=((pad, pad), (pad, pad)),
        dimension_numbers=("NCHW", "OIHW", "NHWC"))
    B, Ho, Wo, F = p.shape
    return p.reshape(B, Ho * Wo, F), Ho, Wo


def _patch_feature_order(channels, k):
    """Index probe: feature f of conv_general_dilated_patches corresponds to
    the input element whose canonical flat index (ci*k*k + kh*k + kw) is
    order[f].  Makes the weight permutation independent of the op's internal
    feature ordering (flagged as a correctness risk in review)."""
    probe = jnp.arange(channels * k * k, dtype=jnp.float32).reshape(
        1, channels, k, k)
    feat = jax.lax.conv_general_dilated_patches(
        probe, filter_shape=(k, k), window_strides=(1, 1),
        padding=((0, 0), (0, 0)),
        dimension_numbers=("NCHW", "OIHW", "NHWC"))
    return jnp.round(feat.reshape(-1)).astype(jnp.int32)


def _conv_weight_as_matmul_lhs(w_oihw):
    """(O, I, kh, kw) torch conv weight -> (O, I*kh*kw) bf16 matrix whose
    columns follow the patch-feature ordering of conv_general_dilated_patches."""
    O, I, kh, kw = w_oihw.shape
    canon = w_oihw.reshape(O, I * kh * kw)      # cols in (ci, kh, kw) order
    order = _patch_feature_order(I, kh)
    return canon[:, order].astype(jnp.bfloat16)


# -----------------------------------------------------------------------------
# Parameters: PyTorch layout -> one-time kernel-friendly bf16 matrices
# -----------------------------------------------------------------------------
def init_dqn_params(key, num_frame, num_action):
    ks = jax.random.split(key, 8)

    def uinit(k, shape, fan_in):
        bound = 1.0 / jnp.sqrt(fan_in)
        return jax.random.uniform(k, shape, jnp.float32, -bound, bound)

    return {
        "conv1_w": uinit(ks[0], (16, num_frame, 8, 8), num_frame * 64),
        "conv1_b": uinit(ks[1], (16,), num_frame * 64),
        "conv2_w": uinit(ks[2], (32, 16, 4, 4), 16 * 16),
        "conv2_b": uinit(ks[3], (32,), 16 * 16),
        "fc1_w":   uinit(ks[4], (256, 32 * 81), 32 * 81),
        "fc1_b":   uinit(ks[5], (256,), 32 * 81),
        "fc2_w":   uinit(ks[6], (num_action, 256), 256),
        "fc2_b":   uinit(ks[7], (256,), 256)[:num_action] * 0.0 +
                   uinit(ks[7], (num_action,), 256),
    }


def prepare_params(params):
    """One-time conversion to the kernels' bf16 matmul layouts."""
    hidden = params["fc1_w"].shape[0]                       # 256
    w1t = _conv_weight_as_matmul_lhs(params["conv1_w"])     # (16, F*64)
    w2t = _conv_weight_as_matmul_lhs(params["conv2_w"])     # (32, 256)
    # torch's x.view(-1, 32*81) flattens the (32, 9, 9) conv2 output channel-
    # major: column j = c*81 + p (p = h*9 + w).  Rearrange fc1_w once so the
    # kernel's per-channel (1,81)@(81,256) dots reproduce it exactly.
    w3r = (params["fc1_w"].reshape(hidden, 32, 81)          # [n, c, p]
           .transpose(1, 2, 0)                              # [c, p, n]
           .astype(jnp.bfloat16))                           # (32, 81, 256)
    w4 = params["fc2_w"].T.astype(jnp.bfloat16)             # (256, A)
    return {
        "w1t": w1t,
        "b1": params["conv1_b"].reshape(-1, 1).astype(jnp.float32),
        "w2t": w2t,
        "b2": params["conv2_b"].reshape(-1, 1).astype(jnp.float32),
        "w3r": w3r,
        "b3": params["fc1_b"].reshape(1, -1).astype(jnp.float32),
        "w4": w4,
        "b4": params["fc2_b"].reshape(1, -1).astype(jnp.float32),
    }


# -----------------------------------------------------------------------------
# DQN forward
# -----------------------------------------------------------------------------
@jax.jit
def dqn_forward(prep, image):
    B = image.shape[0]
    x = image.astype(jnp.bfloat16)

    # conv1: k=8, s=4, p=2 (80x80 -> 20x20), ReLU.
    p1, Ho1, Wo1 = _patches_nchw(x, 8, 4, 2)             # (B, 400, F*64)
    y1 = conv1_matmul(p1, prep["w1t"], prep["b1"])        # (B, 16, 400)
    y1 = y1.reshape(B, 16, Ho1, Wo1)                      # NCHW, free reshape

    # conv2 patch extraction: k=4, s=2, p=0 (20x20 -> 9x9).
    p2, _, _ = _patches_nchw(y1, 4, 2, 0)                 # (B, 81, 256)

    # Fused conv2 + fc1 + fc2 (single pallas_call, per-batch parallel grid).
    return tail_fused(p2, prep["w2t"], prep["b2"], prep["w3r"], prep["b3"],
                      prep["w4"], prep["b4"])


def reference_forward(params, image):
    """Pure-JAX f32 replica of the PyTorch module (numerical parity check)."""
    x = jax.lax.conv_general_dilated(
        image, params["conv1_w"], (4, 4), ((2, 2), (2, 2)),
        dimension_numbers=("NCHW", "OIHW", "NCHW"))
    x = jnp.maximum(x + params["conv1_b"].reshape(1, -1, 1, 1), 0.0)
    x = jax.lax.conv_general_dilated(
        x, params["conv2_w"], (2, 2), ((0, 0), (0, 0)),
        dimension_numbers=("NCHW", "OIHW", "NCHW"))
    x = jnp.maximum(x + params["conv2_b"].reshape(1, -1, 1, 1), 0.0)
    x = x.reshape(x.shape[0], -1)
    x = jnp.maximum(x @ params["fc1_w"].T + params["fc1_b"], 0.0)
    return x @ params["fc2_w"].T + params["fc2_b"]


if __name__ == "__main__":
    num_frame, num_action, batch = 4, 6, 2
    # 80x80 input is forced by fc1 expecting 32 * 81 = 32 * 9 * 9 features.
    key = jax.random.PRNGKey(0)
    k_params, k_img = jax.random.split(key)
    params = init_dqn_params(k_params, num_frame, num_action)
    prep = prepare_params(params)
    image = jax.random.normal(k_img, (batch, num_frame, 80, 80), jnp.float32)

    out = dqn_forward(prep, image)
    jax.block_until_ready(out)
    assert out.shape == (batch, num_action), out.shape
    assert bool(jnp.all(jnp.isfinite(out)))

    ref = reference_forward(params, image)
    err = float(jnp.max(jnp.abs(out - ref)))
    assert err < 5e-2, f"numerical parity vs f32 reference failed: {err}"
    print("KERNEL_OK")
</pallas_src>

<mosaic_0001>
module attributes {stable_mosaic.version = 11 : i64} {
  func.func @_conv1_kernel(%arg0: i32, %arg1: memref<1x400x256xbf16, #tpu.memory_space<vmem>>, %arg2: memref<16x256xbf16, #tpu.memory_space<vmem>>, %arg3: memref<16x1xf32, #tpu.memory_space<vmem>>, %arg4: memref<1x16x400xbf16, #tpu.memory_space<vmem>>) attributes {dimension_semantics = [#tpu.dimension_semantics<parallel>], iteration_bounds = array<i64: 2>, scalar_prefetch = 0 : i64, scratch_operands = 0 : i64, tpu.core_type = #tpu.core_type<tc>, window_params = [{transform_indices = @transform_0, window_bounds = array<i64: 1, 400, 256>}, {pipeline_mode = #tpu.pipeline_mode<synchronous>, transform_indices = @transform_1, window_bounds = array<i64: 16, 256>}, {pipeline_mode = #tpu.pipeline_mode<synchronous>, transform_indices = @transform_2, window_bounds = array<i64: 16, 1>}, {transform_indices = @transform_3, window_bounds = array<i64: 1, 16, 400>}]} {
    %c0 = arith.constant 0 : index
    %c0_0 = arith.constant 0 : index
    %0 = vector.load %arg2[%c0, %c0_0] : memref<16x256xbf16, #tpu.memory_space<vmem>>, vector<16x256xbf16>
    %c0_1 = arith.constant 0 : index
    %c0_2 = arith.constant 0 : index
    %c0_3 = arith.constant 0 : index
    %1 = vector.load %arg1[%c0_1, %c0_2, %c0_3] : memref<1x400x256xbf16, #tpu.memory_space<vmem>>, vector<1x400x256xbf16>
    %2 = vector.shape_cast %1 : vector<1x400x256xbf16> to vector<400x256xbf16>
    %cst = arith.constant dense<0.000000e+00> : vector<16x400xf32>
    %3 = tpu.matmul %0, %2, %cst {dimension_numbers = #tpu.dot_dimension_numbers<[1], [1], [0], [0], [0, 0, 1, 0], [], []>} : vector<16x256xbf16>, vector<400x256xbf16>, vector<16x400xf32> -> vector<16x400xf32>
    %c0_4 = arith.constant 0 : index
    %c0_5 = arith.constant 0 : index
    %4 = vector.load %arg3[%c0_4, %c0_5] : memref<16x1xf32, #tpu.memory_space<vmem>>, vector<16x1xf32>
    %5 = vector.broadcast %4 : vector<16x1xf32> to vector<16x400xf32>
    %6 = arith.addf %3, %5 : vector<16x400xf32>
    %cst_6 = arith.constant 0.000000e+00 : f32
    %7 = vector.broadcast %cst_6 : f32 to vector<16x400xf32>
    %8 = arith.maximumf %6, %7 : vector<16x400xf32>
    %9 = arith.truncf %8 : vector<16x400xf32> to vector<16x400xbf16>
    %c0_7 = arith.constant 0 : index
    %c0_8 = arith.constant 0 : index
    %c0_9 = arith.constant 0 : index
    %10 = vector.load %arg4[%c0_7, %c0_8, %c0_9] : memref<1x16x400xbf16, #tpu.memory_space<vmem>>, vector<1x16x400xbf16>
    %11 = vector.shape_cast %10 : vector<1x16x400xbf16> to vector<16x400xbf16>
    %12 = vector.shape_cast %9 : vector<16x400xbf16> to vector<1x16x400xbf16>
    tpu.vector_store %arg4[%c0_7, %c0_8, %c0_9], %12 {strides = array<i32>} : memref<1x16x400xbf16, #tpu.memory_space<vmem>>, vector<1x16x400xbf16>,
    return
  }
  func.func @transform_0(%arg0: i32) -> (i32, i32, i32) {
    %c0_i32 = arith.constant 0 : i32
    %c0_i32_0 = arith.constant 0 : i32
    %c0_i32_1 = arith.constant 0 : i32
    return %arg0, %c0_i32, %c0_i32_0 : i32, i32, i32
  }
  func.func @transform_1(%arg0: i32) -> (i32, i32) {
    %c0_i32 = arith.constant 0 : i32
    %c0_i32_0 = arith.constant 0 : i32
    %c0_i32_1 = arith.constant 0 : i32
    return %c0_i32, %c0_i32_0 : i32, i32
  }
  func.func @transform_2(%arg0: i32) -> (i32, i32) {
    %c0_i32 = arith.constant 0 : i32
    %c0_i32_0 = arith.constant 0 : i32
    %c0_i32_1 = arith.constant 0 : i32
    return %c0_i32, %c0_i32_0 : i32, i32
  }
  func.func @transform_3(%arg0: i32) -> (i32, i32, i32) {
    %c0_i32 = arith.constant 0 : i32
    %c0_i32_0 = arith.constant 0 : i32
    %c0_i32_1 = arith.constant 0 : i32
    return %arg0, %c0_i32, %c0_i32_0 : i32, i32, i32
  }
}

module attributes {stable_mosaic.version = 11 : i64} {
  func.func @_tail_kernel(%arg0: i32, %arg1: memref<1x81x256xbf16, #tpu.memory_space<vmem>>, %arg2: memref<32x256xbf16, #tpu.memory_space<vmem>>, %arg3: memref<32x1xf32, #tpu.memory_space<vmem>>, %arg4: memref<32x81x256xbf16, #tpu.memory_space<vmem>>, %arg5: memref<1x256xf32, #tpu.memory_space<vmem>>, %arg6: memref<256x6xbf16, #tpu.memory_space<vmem>>, %arg7: memref<1x6xf32, #tpu.memory_space<vmem>>, %arg8: memref<1x1x6xf32, #tpu.memory_space<vmem>>) attributes {dimension_semantics = [#tpu.dimension_semantics<parallel>], iteration_bounds = array<i64: 2>, scalar_prefetch = 0 : i64, scratch_operands = 0 : i64, tpu.core_type = #tpu.core_type<tc>, window_params = [{transform_indices = @transform_0, window_bounds = array<i64: 1, 81, 256>}, {pipeline_mode = #tpu.pipeline_mode<synchronous>, transform_indices = @transform_1, window_bounds = array<i64: 32, 256>}, {pipeline_mode = #tpu.pipeline_mode<synchronous>, transform_indices = @transform_2, window_bounds = array<i64: 32, 1>}, {pipeline_mode = #tpu.pipeline_mode<synchronous>, transform_indices = @transform_3, window_bounds = array<i64: 32, 81, 256>}, {pipeline_mode = #tpu.pipeline_mode<synchronous>, transform_indices = @transform_4, window_bounds = array<i64: 1, 256>}, {pipeline_mode = #tpu.pipeline_mode<synchronous>, transform_indices = @transform_5, window_bounds = array<i64: 256, 6>}, {pipeline_mode = #tpu.pipeline_mode<synchronous>, transform_indices = @transform_6, window_bounds = array<i64: 1, 6>}, {transform_indices = @transform_7, window_bounds = array<i64: 1, 1, 6>}]} {
    %c0 = arith.constant 0 : index
    %c0_0 = arith.constant 0 : index
    %0 = vector.load %arg2[%c0, %c0_0] : memref<32x256xbf16, #tpu.memory_space<vmem>>, vector<32x256xbf16>
    %c0_1 = arith.constant 0 : index
    %c0_2 = arith.constant 0 : index
    %c0_3 = arith.constant 0 : index
    %1 = vector.load %arg1[%c0_1, %c0_2, %c0_3] : memref<1x81x256xbf16, #tpu.memory_space<vmem>>, vector<1x81x256xbf16>
    %2 = vector.shape_cast %1 : vector<1x81x256xbf16> to vector<81x256xbf16>
    %cst = arith.constant dense<0.000000e+00> : vector<32x81xf32>
    %3 = tpu.matmul %0, %2, %cst {dimension_numbers = #tpu.dot_dimension_numbers<[1], [1], [0], [0], [0, 0, 1, 0], [], []>} : vector<32x256xbf16>, vector<81x256xbf16>, vector<32x81xf32> -> vector<32x81xf32>
    %c0_4 = arith.constant 0 : index
    %c0_5 = arith.constant 0 : index
    %4 = vector.load %arg3[%c0_4, %c0_5] : memref<32x1xf32, #tpu.memory_space<vmem>>, vector<32x1xf32>
    %5 = vector.broadcast %4 : vector<32x1xf32> to vector<32x81xf32>
    %6 = arith.addf %3, %5 : vector<32x81xf32>
    %cst_6 = arith.constant 0.000000e+00 : f32
    %7 = vector.broadcast %cst_6 : f32 to vector<32x81xf32>
    %8 = arith.maximumf %6, %7 : vector<32x81xf32>
    %9 = arith.truncf %8 : vector<32x81xf32> to vector<32x81xbf16>
    %c0_7 = arith.constant 0 : index
    %c0_8 = arith.constant 0 : index
    %10 = vector.load %arg5[%c0_7, %c0_8] : memref<1x256xf32, #tpu.memory_space<vmem>>, vector<1x256xf32>
    %11 = vector.extract_strided_slice %9 {offsets = [0, 0], sizes = [1, 81], strides = [1, 1]} : vector<32x81xbf16> to vector<1x81xbf16>
    %c0_9 = arith.constant 0 : index
    %c0_10 = arith.constant 0 : index
    %c0_11 = arith.constant 0 : index
    %12 = vector.load %arg4[%c0_9, %c0_10, %c0_11] : memref<32x81x256xbf16, #tpu.memory_space<vmem>>, vector<1x81x256xbf16>
    %13 = vector.shape_cast %12 : vector<1x81x256xbf16> to vector<81x256xbf16>
    %cst_12 = arith.constant dense<0.000000e+00> : vector<1x256xf32>
    %14 = tpu.matmul %11, %13, %cst_12 {dimension_numbers = #tpu.dot_dimension_numbers<[1], [0], [0], [1], [0, 0, 1, 1], [], []>} : vector<1x81xbf16>, vector<81x256xbf16>, vector<1x256xf32> -> vector<1x256xf32>
    %15 = arith.addf %10, %14 : vector<1x256xf32>
    %16 = vector.extract_strided_slice %9 {offsets = [1, 0], sizes = [1, 81], strides = [1, 1]} : vector<32x81xbf16> to vector<1x81xbf16>
    %c1 = arith.constant 1 : index
    %c0_13 = arith.constant 0 : index
    %c0_14 = arith.constant 0 : index
    %17 = vector.load %arg4[%c1, %c0_13, %c0_14] : memref<32x81x256xbf16, #tpu.memory_space<vmem>>, vector<1x81x256xbf16>
    %18 = vector.shape_cast %17 : vector<1x81x256xbf16> to vector<81x256xbf16>
    %cst_15 = arith.constant dense<0.000000e+00> : vector<1x256xf32>
    %19 = tpu.matmul %16, %18, %cst_15 {dimension_numbers = #tpu.dot_dimension_numbers<[1], [0], [0], [1], [0, 0, 1, 1], [], []>} : vector<1x81xbf16>, vector<81x256xbf16>, vector<1x256xf32> -> vector<1x256xf32>
    %20 = arith.addf %15, %19 : vector<1x256xf32>
    %21 = vector.extract_strided_slice %9 {offsets = [2, 0], sizes = [1, 81], strides = [1, 1]} : vector<32x81xbf16> to vector<1x81xbf16>
    %c2 = arith.constant 2 : index
    %c0_16 = arith.constant 0 : index
    %c0_17 = arith.constant 0 : index
    %22 = vector.load %arg4[%c2, %c0_16, %c0_17] : memref<32x81x256xbf16, #tpu.memory_space<vmem>>, vector<1x81x256xbf16>
    %23 = vector.shape_cast %22 : vector<1x81x256xbf16> to vector<81x256xbf16>
    %cst_18 = arith.constant dense<0.000000e+00> : vector<1x256xf32>
    %24 = tpu.matmul %21, %23, %cst_18 {dimension_numbers = #tpu.dot_dimension_numbers<[1], [0], [0], [1], [0, 0, 1, 1], [], []>} : vector<1x81xbf16>, vector<81x256xbf16>, vector<1x256xf32> -> vector<1x256xf32>
    %25 = arith.addf %20, %24 : vector<1x256xf32>
    %26 = vector.extract_strided_slice %9 {offsets = [3, 0], sizes = [1, 81], strides = [1, 1]} : vector<32x81xbf16> to vector<1x81xbf16>
    %c3 = arith.constant 3 : index
    %c0_19 = arith.constant 0 : index
    %c0_20 = arith.constant 0 : index
    %27 = vector.load %arg4[%c3, %c0_19, %c0_20] : memref<32x81x256xbf16, #tpu.memory_space<vmem>>, vector<1x81x256xbf16>
    %28 = vector.shape_cast %27 : vector<1x81x256xbf16> to vector<81x256xbf16>
    %cst_21 = arith.constant dense<0.000000e+00> : vector<1x256xf32>
    %29 = tpu.matmul %26, %28, %cst_21 {dimension_numbers = #tpu.dot_dimension_numbers<[1], [0], [0], [1], [0, 0, 1, 1], [], []>} : vector<1x81xbf16>, vector<81x256xbf16>, vector<1x256xf32> -> vector<1x256xf32>
    %30 = arith.addf %25, %29 : vector<1x256xf32>
    %31 = vector.extract_strided_slice %9 {offsets = [4, 0], sizes = [1, 81], strides = [1, 1]} : vector<32x81xbf16> to vector<1x81xbf16>
    %c4 = arith.constant 4 : index
    %c0_22 = arith.constant 0 : index
    %c0_23 = arith.constant 0 : index
    %32 = vector.load %arg4[%c4, %c0_22, %c0_23] : memref<32x81x256xbf16, #tpu.memory_space<vmem>>, vector<1x81x256xbf16>
    %33 = vector.shape_cast %32 : vector<1x81x256xbf16> to vector<81x256xbf16>
    %cst_24 = arith.constant dense<0.000000e+00> : vector<1x256xf32>
    %34 = tpu.matmul %31, %33, %cst_24 {dimension_numbers = #tpu.dot_dimension_numbers<[1], [0], [0], [1], [0, 0, 1, 1], [], []>} : vector<1x81xbf16>, vector<81x256xbf16>, vector<1x256xf32> -> vector<1x256xf32>
    %35 = arith.addf %30, %34 : vector<1x256xf32>
    %36 = vector.extract_strided_slice %9 {offsets = [5, 0], sizes = [1, 81], strides = [1, 1]} : vector<32x81xbf16> to vector<1x81xbf16>
    %c5 = arith.constant 5 : index
    %c0_25 = arith.constant 0 : index
    %c0_26 = arith.constant 0 : index
    %37 = vector.load %arg4[%c5, %c0_25, %c0_26] : memref<32x81x256xbf16, #tpu.memory_space<vmem>>, vector<1x81x256xbf16>
    %38 = vector.shape_cast %37 : vector<1x81x256xbf16> to vector<81x256xbf16>
    %cst_27 = arith.constant dense<0.000000e+00> : vector<1x256xf32>
    %39 = tpu.matmul %36, %38, %cst_27 {dimension_numbers = #tpu.dot_dimension_numbers<[1], [0], [0], [1], [0, 0, 1, 1], [], []>} : vector<1x81xbf16>, vector<81x256xbf16>, vector<1x256xf32> -> vector<1x256xf32>
    %40 = arith.addf %35, %39 : vector<1x256xf32>
    %41 = vector.extract_strided_slice %9 {offsets = [6, 0], sizes = [1, 81], strides = [1, 1]} : vector<32x81xbf16> to vector<1x81xbf16>
    %c6 = arith.constant 6 : index
    %c0_28 = arith.constant 0 : index
    %c0_29 = arith.constant 0 : index
    %42 = vector.load %arg4[%c6, %c0_28, %c0_29] : memref<32x81x256xbf16, #tpu.memory_space<vmem>>, vector<1x81x256xbf16>
    %43 = vector.shape_cast %42 : vector<1x81x256xbf16> to vector<81x256xbf16>
    %cst_30 = arith.constant dense<0.000000e+00> : vector<1x256xf32>
    %44 = tpu.matmul %41, %43, %cst_30 {dimension_numbers = #tpu.dot_dimension_numbers<[1], [0], [0], [1], [0, 0, 1, 1], [], []>} : vector<1x81xbf16>, vector<81x256xbf16>, vector<1x256xf32> -> vector<1x256xf32>
    %45 = arith.addf %40, %44 : vector<1x256xf32>
    %46 = vector.extract_strided_slice %9 {offsets = [7, 0], sizes = [1, 81], strides = [1, 1]} : vector<32x81xbf16> to vector<1x81xbf16>
    %c7 = arith.constant 7 : index
    %c0_31 = arith.constant 0 : index
    %c0_32 = arith.constant 0 : index
    %47 = vector.load %arg4[%c7, %c0_31, %c0_32] : memref<32x81x256xbf16, #tpu.memory_space<vmem>>, vector<1x81x256xbf16>
    %48 = vector.shape_cast %47 : vector<1x81x256xbf16> to vector<81x256xbf16>
    %cst_33 = arith.constant dense<0.000000e+00> : vector<1x256xf32>
    %49 = tpu.matmul %46, %48, %cst_33 {dimension_numbers = #tpu.dot_dimension_numbers<[1], [0], [0], [1], [0, 0, 1, 1], [], []>} : vector<1x81xbf16>, vector<81x256xbf16>, vector<1x256xf32> -> vector<1x256xf32>
    %50 = arith.addf %45, %49 : vector<1x256xf32>
    %51 = vector.extract_strided_slice %9 {offsets = [8, 0], sizes = [1, 81], strides = [1, 1]} : vector<32x81xbf16> to vector<1x81xbf16>
    %c8 = arith.constant 8 : index
    %c0_34 = arith.constant 0 : index
    %c0_35 = arith.constant 0 : index
    %52 = vector.load %arg4[%c8, %c0_34, %c0_35] : memref<32x81x256xbf16, #tpu.memory_space<vmem>>, vector<1x81x256xbf16>
    %53 = vector.shape_cast %52 : vector<1x81x256xbf16> to vector<81x256xbf16>
    %cst_36 = arith.constant dense<0.000000e+00> : vector<1x256xf32>
    %54 = tpu.matmul %51, %53, %cst_36 {dimension_numbers = #tpu.dot_dimension_numbers<[1], [0], [0], [1], [0, 0, 1, 1], [], []>} : vector<1x81xbf16>, vector<81x256xbf16>, vector<1x256xf32> -> vector<1x256xf32>
    %55 = arith.addf %50, %54 : vector<1x256xf32>
    %56 = vector.extract_strided_slice %9 {offsets = [9, 0], sizes = [1, 81], strides = [1, 1]} : vector<32x81xbf16> to vector<1x81xbf16>
    %c9 = arith.constant 9 : index
    %c0_37 = arith.constant 0 : index
    %c0_38 = arith.constant 0 : index
    %57 = vector.load %arg4[%c9, %c0_37, %c0_38] : memref<32x81x256xbf16, #tpu.memory_space<vmem>>, vector<1x81x256xbf16>
    %58 = vector.shape_cast %57 : vector<1x81x256xbf16> to vector<81x256xbf16>
    %cst_39 = arith.constant dense<0.000000e+00> : vector<1x256xf32>
    %59 = tpu.matmul %56, %58, %cst_39 {dimension_numbers = #tpu.dot_dimension_numbers<[1], [0], [0], [1], [0, 0, 1, 1], [], []>} : vector<1x81xbf16>, vector<81x256xbf16>, vector<1x256xf32> -> vector<1x256xf32>
    %60 = arith.addf %55, %59 : vector<1x256xf32>
    %61 = vector.extract_strided_slice %9 {offsets = [10, 0], sizes = [1, 81], strides = [1, 1]} : vector<32x81xbf16> to vector<1x81xbf16>
    %c10 = arith.constant 10 : index
    %c0_40 = arith.constant 0 : index
    %c0_41 = arith.constant 0 : index
    %62 = vector.load %arg4[%c10, %c0_40, %c0_41] : memref<32x81x256xbf16, #tpu.memory_space<vmem>>, vector<1x81x256xbf16>
    %63 = vector.shape_cast %62 : vector<1x81x256xbf16> to vector<81x256xbf16>
    %cst_42 = arith.constant dense<0.000000e+00> : vector<1x256xf32>
    %64 = tpu.matmul %61, %63, %cst_42 {dimension_numbers = #tpu.dot_dimension_numbers<[1], [0], [0], [1], [0, 0, 1, 1], [], []>} : vector<1x81xbf16>, vector<81x256xbf16>, vector<1x256xf32> -> vector<1x256xf32>
    %65 = arith.addf %60, %64 : vector<1x256xf32>
    %66 = vector.extract_strided_slice %9 {offsets = [11, 0], sizes = [1, 81], strides = [1, 1]} : vector<32x81xbf16> to vector<1x81xbf16>
    %c11 = arith.constant 11 : index
    %c0_43 = arith.constant 0 : index
    %c0_44 = arith.constant 0 : index
    %67 = vector.load %arg4[%c11, %c0_43, %c0_44] : memref<32x81x256xbf16, #tpu.memory_space<vmem>>, vector<1x81x256xbf16>
    %68 = vector.shape_cast %67 : vector<1x81x256xbf16> to vector<81x256xbf16>
    %cst_45 = arith.constant dense<0.000000e+00> : vector<1x256xf32>
    %69 = tpu.matmul %66, %68, %cst_45 {dimension_numbers = #tpu.dot_dimension_numbers<[1], [0], [0], [1], [0, 0, 1, 1], [], []>} : vector<1x81xbf16>, vector<81x256xbf16>, vector<1x256xf32> -> vector<1x256xf32>
    %70 = arith.addf %65, %69 : vector<1x256xf32>
    %71 = vector.extract_strided_slice %9 {offsets = [12, 0], sizes = [1, 81], strides = [1, 1]} : vector<32x81xbf16> to vector<1x81xbf16>
    %c12 = arith.constant 12 : index
    %c0_46 = arith.constant 0 : index
    %c0_47 = arith.constant 0 : index
    %72 = vector.load %arg4[%c12, %c0_46, %c0_47] : memref<32x81x256xbf16, #tpu.memory_space<vmem>>, vector<1x81x256xbf16>
    %73 = vector.shape_cast %72 : vector<1x81x256xbf16> to vector<81x256xbf16>
    %cst_48 = arith.constant dense<0.000000e+00> : vector<1x256xf32>
    %74 = tpu.matmul %71, %73, %cst_48 {dimension_numbers = #tpu.dot_dimension_numbers<[1], [0], [0], [1], [0, 0, 1, 1], [], []>} : vector<1x81xbf16>, vector<81x256xbf16>, vector<1x256xf32> -> vector<1x256xf32>
    %75 = arith.addf %70, %74 : vector<1x256xf32>
    %76 = vector.extract_strided_slice %9 {offsets = [13, 0], sizes = [1, 81], strides = [1, 1]} : vector<32x81xbf16> to vector<1x81xbf16>
    %c13 = arith.constant 13 : index
    %c0_49 = arith.constant 0 : index
    %c0_50 = arith.constant 0 : index
    %77 = vector.load %arg4[%c13, %c0_49, %c0_50] : memref<32x81x256xbf16, #tpu.memory_space<vmem>>, vector<1x81x256xbf16>
    %78 = vector.shape_cast %77 : vector<1x81x256xbf16> to vector<81x256xbf16>
    %cst_51 = arith.constant dense<0.000000e+00> : vector<1x256xf32>
    %79 = tpu.matmul %76, %78, %cst_51 {dimension_numbers = #tpu.dot_dimension_numbers<[1], [0], [0], [1], [0, 0, 1, 1], [], []>} : vector<1x81xbf16>, vector<81x256xbf16>, vector<1x256xf32> -> vector<1x256xf32>
    %80 = arith.addf %75, %79 : vector<1x256xf32>
    %81 = vector.extract_strided_slice %9 {offsets = [14, 0], sizes = [1, 81], strides = [1, 1]} : vector<32x81xbf16> to vector<1x81xbf16>
    %c14 = arith.constant 14 : index
    %c0_52 = arith.constant 0 : index
    %c0_53 = arith.constant 0 : index
    %82 = vector.load %arg4[%c14, %c0_52, %c0_53] : memref<32x81x256xbf16, #tpu.memory_space<vmem>>, vector<1x81x256xbf16>
    %83 = vector.shape_cast %82 : vector<1x81x256xbf16> to vector<81x256xbf16>
    %cst_54 = arith.constant dense<0.000000e+00> : vector<1x256xf32>
    %84 = tpu.matmul %81, %83, %cst_54 {dimension_numbers = #tpu.dot_dimension_numbers<[1], [0], [0], [1], [0, 0, 1, 1], [], []>} : vector<1x81xbf16>, vector<81x256xbf16>, vector<1x256xf32> -> vector<1x256xf32>
    %85 = arith.addf %80, %84 : vector<1x256xf32>
    %86 = vector.extract_strided_slice %9 {offsets = [15, 0], sizes = [1, 81], strides = [1, 1]} : vector<32x81xbf16> to vector<1x81xbf16>
    %c15 = arith.constant 15 : index
    %c0_55 = arith.constant 0 : index
    %c0_56 = arith.constant 0 : index
    %87 = vector.load %arg4[%c15, %c0_55, %c0_56] : memref<32x81x256xbf16, #tpu.memory_space<vmem>>, vector<1x81x256xbf16>
    %88 = vector.shape_cast %87 : vector<1x81x256xbf16> to vector<81x256xbf16>
    %cst_57 = arith.constant dense<0.000000e+00> : vector<1x256xf32>
    %89 = tpu.matmul %86, %88, %cst_57 {dimension_numbers = #tpu.dot_dimension_numbers<[1], [0], [0], [1], [0, 0, 1, 1], [], []>} : vector<1x81xbf16>, vector<81x256xbf16>, vector<1x256xf32> -> vector<1x256xf32>
    %90 = arith.addf %85, %89 : vector<1x256xf32>
    %91 = vector.extract_strided_slice %9 {offsets = [16, 0], sizes = [1, 81], strides = [1, 1]} : vector<32x81xbf16> to vector<1x81xbf16>
    %c16 = arith.constant 16 : index
    %c0_58 = arith.constant 0 : index
    %c0_59 = arith.constant 0 : index
    %92 = vector.load %arg4[%c16, %c0_58, %c0_59] : memref<32x81x256xbf16, #tpu.memory_space<vmem>>, vector<1x81x256xbf16>
    %93 = vector.shape_cast %92 : vector<1x81x256xbf16> to vector<81x256xbf16>
    %cst_60 = arith.constant dense<0.000000e+00> : vector<1x256xf32>
    %94 = tpu.matmul %91, %93, %cst_60 {dimension_numbers = #tpu.dot_dimension_numbers<[1], [0], [0], [1], [0, 0, 1, 1], [], []>} : vector<1x81xbf16>, vector<81x256xbf16>, vector<1x256xf32> -> vector<1x256xf32>
    %95 = arith.addf %90, %94 : vector<1x256xf32>
    %96 = vector.extract_strided_slice %9 {offsets = [17, 0], sizes = [1, 81], strides = [1, 1]} : vector<32x81xbf16> to vector<1x81xbf16>
    %c17 = arith.constant 17 : index
    %c0_61 = arith.constant 0 : index
    %c0_62 = arith.constant 0 : index
    %97 = vector.load %arg4[%c17, %c0_61, %c0_62] : memref<32x81x256xbf16, #tpu.memory_space<vmem>>, vector<1x81x256xbf16>
    %98 = vector.shape_cast %97 : vector<1x81x256xbf16> to vector<81x256xbf16>
    %cst_63 = arith.constant dense<0.000000e+00> : vector<1x256xf32>
    %99 = tpu.matmul %96, %98, %cst_63 {dimension_numbers = #tpu.dot_dimension_numbers<[1], [0], [0], [1], [0, 0, 1, 1], [], []>} : vector<1x81xbf16>, vector<81x256xbf16>, vector<1x256xf32> -> vector<1x256xf32>
    %100 = arith.addf %95, %99 : vector<1x256xf32>
    %101 = vector.extract_strided_slice %9 {offsets = [18, 0], sizes = [1, 81], strides = [1, 1]} : vector<32x81xbf16> to vector<1x81xbf16>
    %c18 = arith.constant 18 : index
    %c0_64 = arith.constant 0 : index
    %c0_65 = arith.constant 0 : index
    %102 = vector.load %arg4[%c18, %c0_64, %c0_65] : memref<32x81x256xbf16, #tpu.memory_space<vmem>>, vector<1x81x256xbf16>
    %103 = vector.shape_cast %102 : vector<1x81x256xbf16> to vector<81x256xbf16>
    %cst_66 = arith.constant dense<0.000000e+00> : vector<1x256xf32>
    %104 = tpu.matmul %101, %103, %cst_66 {dimension_numbers = #tpu.dot_dimension_numbers<[1], [0], [0], [1], [0, 0, 1, 1], [], []>} : vector<1x81xbf16>, vector<81x256xbf16>, vector<1x256xf32> -> vector<1x256xf32>
    %105 = arith.addf %100, %104 : vector<1x256xf32>
    %106 = vector.extract_strided_slice %9 {offsets = [19, 0], sizes = [1, 81], strides = [1, 1]} : vector<32x81xbf16> to vector<1x81xbf16>
    %c19 = arith.constant 19 : index
    %c0_67 = arith.constant 0 : index
    %c0_68 = arith.constant 0 : index
    %107 = vector.load %arg4[%c19, %c0_67, %c0_68] : memref<32x81x256xbf16, #tpu.memory_space<vmem>>, vector<1x81x256xbf16>
    %108 = vector.shape_cast %107 : vector<1x81x256xbf16> to vector<81x256xbf16>
    %cst_69 = arith.constant dense<0.000000e+00> : vector<1x256xf32>
    %109 = tpu.matmul %106, %108, %cst_69 {dimension_numbers = #tpu.dot_dimension_numbers<[1], [0], [0], [1], [0, 0, 1, 1], [], []>} : vector<1x81xbf16>, vector<81x256xbf16>, vector<1x256xf32> -> vector<1x256xf32>
    %110 = arith.addf %105, %109 : vector<1x256xf32>
    %111 = vector.extract_strided_slice %9 {offsets = [20, 0], sizes = [1, 81], strides = [1, 1]} : vector<32x81xbf16> to vector<1x81xbf16>
    %c20 = arith.constant 20 : index
    %c0_70 = arith.constant 0 : index
    %c0_71 = arith.constant 0 : index
    %112 = vector.load %arg4[%c20, %c0_70, %c0_71] : memref<32x81x256xbf16, #tpu.memory_space<vmem>>, vector<1x81x256xbf16>
    %113 = vector.shape_cast %112 : vector<1x81x256xbf16> to vector<81x256xbf16>
    %cst_72 = arith.constant dense<0.000000e+00> : vector<1x256xf32>
    %114 = tpu.matmul %111, %113, %cst_72 {dimension_numbers = #tpu.dot_dimension_numbers<[1], [0], [0], [1], [0, 0, 1, 1], [], []>} : vector<1x81xbf16>, vector<81x256xbf16>, vector<1x256xf32> -> vector<1x256xf32>
    %115 = arith.addf %110, %114 : vector<1x256xf32>
    %116 = vector.extract_strided_slice %9 {offsets = [21, 0], sizes = [1, 81], strides = [1, 1]} : vector<32x81xbf16> to vector<1x81xbf16>
    %c21 = arith.constant 21 : index
    %c0_73 = arith.constant 0 : index
    %c0_74 = arith.constant 0 : index
    %117 = vector.load %arg4[%c21, %c0_73, %c0_74] : memref<32x81x256xbf16, #tpu.memory_space<vmem>>, vector<1x81x256xbf16>
    %118 = vector.shape_cast %117 : vector<1x81x256xbf16> to vector<81x256xbf16>
    %cst_75 = arith.constant dense<0.000000e+00> : vector<1x256xf32>
    %119 = tpu.matmul %116, %118, %cst_75 {dimension_numbers = #tpu.dot_dimension_numbers<[1], [0], [0], [1], [0, 0, 1, 1], [], []>} : vector<1x81xbf16>, vector<81x256xbf16>, vector<1x256xf32> -> vector<1x256xf32>
    %120 = arith.addf %115, %119 : vector<1x256xf32>
    %121 = vector.extract_strided_slice %9 {offsets = [22, 0], sizes = [1, 81], strides = [1, 1]} : vector<32x81xbf16> to vector<1x81xbf16>
    %c22 = arith.constant 22 : index
    %c0_76 = arith.constant 0 : index
    %c0_77 = arith.constant 0 : index
    %122 = vector.load %arg4[%c22, %c0_76, %c0_77] : memref<32x81x256xbf16, #tpu.memory_space<vmem>>, vector<1x81x256xbf16>
    %123 = vector.shape_cast %122 : vector<1x81x256xbf16> to vector<81x256xbf16>
    %cst_78 = arith.constant dense<0.000000e+00> : vector<1x256xf32>
    %124 = tpu.matmul %121, %123, %cst_78 {dimension_numbers = #tpu.dot_dimension_numbers<[1], [0], [0], [1], [0, 0, 1, 1], [], []>} : vector<1x81xbf16>, vector<81x256xbf16>, vector<1x256xf32> -> vector<1x256xf32>
    %125 = arith.addf %120, %124 : vector<1x256xf32>
    %126 = vector.extract_strided_slice %9 {offsets = [23, 0], sizes = [1, 81], strides = [1, 1]} : vector<32x81xbf16> to vector<1x81xbf16>
    %c23 = arith.constant 23 : index
    %c0_79 = arith.constant 0 : index
    %c0_80 = arith.constant 0 : index
    %127 = vector.load %arg4[%c23, %c0_79, %c0_80] : memref<32x81x256xbf16, #tpu.memory_space<vmem>>, vector<1x81x256xbf16>
    %128 = vector.shape_cast %127 : vector<1x81x256xbf16> to vector<81x256xbf16>
    %cst_81 = arith.constant dense<0.000000e+00> : vector<1x256xf32>
    %129 = tpu.matmul %126, %128, %cst_81 {dimension_numbers = #tpu.dot_dimension_numbers<[1], [0], [0], [1], [0, 0, 1, 1], [], []>} : vector<1x81xbf16>, vector<81x256xbf16>, vector<1x256xf32> -> vector<1x256xf32>
    %130 = arith.addf %125, %129 : vector<1x256xf32>
    %131 = vector.extract_strided_slice %9 {offsets = [24, 0], sizes = [1, 81], strides = [1, 1]} : vector<32x81xbf16> to vector<1x81xbf16>
    %c24 = arith.constant 24 : index
    %c0_82 = arith.constant 0 : index
    %c0_83 = arith.constant 0 : index
    %132 = vector.load %arg4[%c24, %c0_82, %c0_83] : memref<32x81x256xbf16, #tpu.memory_space<vmem>>, vector<1x81x256xbf16>
    %133 = vector.shape_cast %132 : vector<1x81x256xbf16> to vector<81x256xbf16>
    %cst_84 = arith.constant dense<0.000000e+00> : vector<1x256xf32>
    %134 = tpu.matmul %131, %133, %cst_84 {dimension_numbers = #tpu.dot_dimension_numbers<[1], [0], [0], [1], [0, 0, 1, 1], [], []>} : vector<1x81xbf16>, vector<81x256xbf16>, vector<1x256xf32> -> vector<1x256xf32>
    %135 = arith.addf %130, %134 : vector<1x256xf32>
    %136 = vector.extract_strided_slice %9 {offsets = [25, 0], sizes = [1, 81], strides = [1, 1]} : vector<32x81xbf16> to vector<1x81xbf16>
    %c25 = arith.constant 25 : index
    %c0_85 = arith.constant 0 : index
    %c0_86 = arith.constant 0 : index
    %137 = vector.load %arg4[%c25, %c0_85, %c0_86] : memref<32x81x256xbf16, #tpu.memory_space<vmem>>, vector<1x81x256xbf16>
    %138 = vector.shape_cast %137 : vector<1x81x256xbf16> to vector<81x256xbf16>
    %cst_87 = arith.constant dense<0.000000e+00> : vector<1x256xf32>
    %139 = tpu.matmul %136, %138, %cst_87 {dimension_numbers = #tpu.dot_dimension_numbers<[1], [0], [0], [1], [0, 0, 1, 1], [], []>} : vector<1x81xbf16>, vector<81x256xbf16>, vector<1x256xf32> -> vector<1x256xf32>
    %140 = arith.addf %135, %139 : vector<1x256xf32>
    %141 = vector.extract_strided_slice %9 {offsets = [26, 0], sizes = [1, 81], strides = [1, 1]} : vector<32x81xbf16> to vector<1x81xbf16>
    %c26 = arith.constant 26 : index
    %c0_88 = arith.constant 0 : index
    %c0_89 = arith.constant 0 : index
    %142 = vector.load %arg4[%c26, %c0_88, %c0_89] : memref<32x81x256xbf16, #tpu.memory_space<vmem>>, vector<1x81x256xbf16>
    %143 = vector.shape_cast %142 : vector<1x81x256xbf16> to vector<81x256xbf16>
    %cst_90 = arith.constant dense<0.000000e+00> : vector<1x256xf32>
    %144 = tpu.matmul %141, %143, %cst_90 {dimension_numbers = #tpu.dot_dimension_numbers<[1], [0], [0], [1], [0, 0, 1, 1], [], []>} : vector<1x81xbf16>, vector<81x256xbf16>, vector<1x256xf32> -> vector<1x256xf32>
    %145 = arith.addf %140, %144 : vector<1x256xf32>
    %146 = vector.extract_strided_slice %9 {offsets = [27, 0], sizes = [1, 81], strides = [1, 1]} : vector<32x81xbf16> to vector<1x81xbf16>
    %c27 = arith.constant 27 : index
    %c0_91 = arith.constant 0 : index
    %c0_92 = arith.constant 0 : index
    %147 = vector.load %arg4[%c27, %c0_91, %c0_92] : memref<32x81x256xbf16, #tpu.memory_space<vmem>>, vector<1x81x256xbf16>
    %148 = vector.shape_cast %147 : vector<1x81x256xbf16> to vector<81x256xbf16>
    %cst_93 = arith.constant dense<0.000000e+00> : vector<1x256xf32>
    %149 = tpu.matmul %146, %148, %cst_93 {dimension_numbers = #tpu.dot_dimension_numbers<[1], [0], [0], [1], [0, 0, 1, 1], [], []>} : vector<1x81xbf16>, vector<81x256xbf16>, vector<1x256xf32> -> vector<1x256xf32>
    %150 = arith.addf %145, %149 : vector<1x256xf32>
    %151 = vector.extract_strided_slice %9 {offsets = [28, 0], sizes = [1, 81], strides = [1, 1]} : vector<32x81xbf16> to vector<1x81xbf16>
    %c28 = arith.constant 28 : index
    %c0_94 = arith.constant 0 : index
    %c0_95 = arith.constant 0 : index
    %152 = vector.load %arg4[%c28, %c0_94, %c0_95] : memref<32x81x256xbf16, #tpu.memory_space<vmem>>, vector<1x81x256xbf16>
    %153 = vector.shape_cast %152 : vector<1x81x256xbf16> to vector<81x256xbf16>
    %cst_96 = arith.constant dense<0.000000e+00> : vector<1x256xf32>
    %154 = tpu.matmul %151, %153, %cst_96 {dimension_numbers = #tpu.dot_dimension_numbers<[1], [0], [0], [1], [0, 0, 1, 1], [], []>} : vector<1x81xbf16>, vector<81x256xbf16>, vector<1x256xf32> -> vector<1x256xf32>
    %155 = arith.addf %150, %154 : vector<1x256xf32>
    %156 = vector.extract_strided_slice %9 {offsets = [29, 0], sizes = [1, 81], strides = [1, 1]} : vector<32x81xbf16> to vector<1x81xbf16>
    %c29 = arith.constant 29 : index
    %c0_97 = arith.constant 0 : index
    %c0_98 = arith.constant 0 : index
    %157 = vector.load %arg4[%c29, %c0_97, %c0_98] : memref<32x81x256xbf16, #tpu.memory_space<vmem>>, vector<1x81x256xbf16>
    %158 = vector.shape_cast %157 : vector<1x81x256xbf16> to vector<81x256xbf16>
    %cst_99 = arith.constant dense<0.000000e+00> : vector<1x256xf32>
    %159 = tpu.matmul %156, %158, %cst_99 {dimension_numbers = #tpu.dot_dimension_numbers<[1], [0], [0], [1], [0, 0, 1, 1], [], []>} : vector<1x81xbf16>, vector<81x256xbf16>, vector<1x256xf32> -> vector<1x256xf32>
    %160 = arith.addf %155, %159 : vector<1x256xf32>
    %161 = vector.extract_strided_slice %9 {offsets = [30, 0], sizes = [1, 81], strides = [1, 1]} : vector<32x81xbf16> to vector<1x81xbf16>
    %c30 = arith.constant 30 : index
    %c0_100 = arith.constant 0 : index
    %c0_101 = arith.constant 0 : index
    %162 = vector.load %arg4[%c30, %c0_100, %c0_101] : memref<32x81x256xbf16, #tpu.memory_space<vmem>>, vector<1x81x256xbf16>
    %163 = vector.shape_cast %162 : vector<1x81x256xbf16> to vector<81x256xbf16>
    %cst_102 = arith.constant dense<0.000000e+00> : vector<1x256xf32>
    %164 = tpu.matmul %161, %163, %cst_102 {dimension_numbers = #tpu.dot_dimension_numbers<[1], [0], [0], [1], [0, 0, 1, 1], [], []>} : vector<1x81xbf16>, vector<81x256xbf16>, vector<1x256xf32> -> vector<1x256xf32>
    %165 = arith.addf %160, %164 : vector<1x256xf32>
    %166 = vector.extract_strided_slice %9 {offsets = [31, 0], sizes = [1, 81], strides = [1, 1]} : vector<32x81xbf16> to vector<1x81xbf16>
    %c31 = arith.constant 31 : index
    %c0_103 = arith.constant 0 : index
    %c0_104 = arith.constant 0 : index
    %167 = vector.load %arg4[%c31, %c0_103, %c0_104] : memref<32x81x256xbf16, #tpu.memory_space<vmem>>, vector<1x81x256xbf16>
    %168 = vector.shape_cast %167 : vector<1x81x256xbf16> to vector<81x256xbf16>
    %cst_105 = arith.constant dense<0.000000e+00> : vector<1x256xf32>
    %169 = tpu.matmul %166, %168, %cst_105 {dimension_numbers = #tpu.dot_dimension_numbers<[1], [0], [0], [1], [0, 0, 1, 1], [], []>} : vector<1x81xbf16>, vector<81x256xbf16>, vector<1x256xf32> -> vector<1x256xf32>
    %170 = arith.addf %165, %169 : vector<1x256xf32>
    %cst_106 = arith.constant 0.000000e+00 : f32
    %171 = vector.broadcast %cst_106 : f32 to vector<1x256xf32>
    %172 = arith.maximumf %170, %171 : vector<1x256xf32>
    %173 = arith.truncf %172 : vector<1x256xf32> to vector<1x256xbf16>
    %c0_107 = arith.constant 0 : index
    %c0_108 = arith.constant 0 : index
    %174 = vector.load %arg6[%c0_107, %c0_108] : memref<256x6xbf16, #tpu.memory_space<vmem>>, vector<256x6xbf16>
    %cst_109 = arith.constant dense<0.000000e+00> : vector<1x6xf32>
    %175 = tpu.matmul %173, %174, %cst_109 {dimension_numbers = #tpu.dot_dimension_numbers<[1], [0], [0], [1], [0, 0, 1, 1], [], []>} : vector<1x256xbf16>, vector<256x6xbf16>, vector<1x6xf32> -> vector<1x6xf32>
    %c0_110 = arith.constant 0 : index
    %c0_111 = arith.constant 0 : index
    %176 = vector.load %arg7[%c0_110, %c0_111] : memref<1x6xf32, #tpu.memory_space<vmem>>, vector<1x6xf32>
    %177 = arith.addf %175, %176 : vector<1x6xf32>
    %c0_112 = arith.constant 0 : index
    %c0_113 = arith.constant 0 : index
    %c0_114 = arith.constant 0 : index
    %178 = vector.load %arg8[%c0_112, %c0_113, %c0_114] : memref<1x1x6xf32, #tpu.memory_space<vmem>>, vector<1x1x6xf32>
    %179 = vector.shape_cast %178 : vector<1x1x6xf32> to vector<1x6xf32>
    %180 = vector.shape_cast %177 : vector<1x6xf32> to vector<1x1x6xf32>
    tpu.vector_store %arg8[%c0_112, %c0_113, %c0_114], %180 {strides = array<i32>} : memref<1x1x6xf32, #tpu.memory_space<vmem>>, vector<1x1x6xf32>,
    return
  }
  func.func @transform_0(%arg0: i32) -> (i32, i32, i32) {
    %c0_i32 = arith.constant 0 : i32
    %c0_i32_0 = arith.constant 0 : i32
    %c0_i32_1 = arith.constant 0 : i32
    return %arg0, %c0_i32, %c0_i32_0 : i32, i32, i32
  }
  func.func @transform_1(%arg0: i32) -> (i32, i32) {
    %c0_i32 = arith.constant 0 : i32
    %c0_i32_0 = arith.constant 0 : i32
    %c0_i32_1 = arith.constant 0 : i32
    return %c0_i32, %c0_i32_0 : i32, i32
  }
  func.func @transform_2(%arg0: i32) -> (i32, i32) {
    %c0_i32 = arith.constant 0 : i32
    %c0_i32_0 = arith.constant 0 : i32
    %c0_i32_1 = arith.constant 0 : i32
    return %c0_i32, %c0_i32_0 : i32, i32
  }
  func.func @transform_3(%arg0: i32) -> (i32, i32, i32) {
    %c0_i32 = arith.constant 0 : i32
    %c0_i32_0 = arith.constant 0 : i32
    %c0_i32_1 = arith.constant 0 : i32
    %c0_i32_2 = arith.constant 0 : i32
    return %c0_i32, %c0_i32_0, %c0_i32_1 : i32, i32, i32
  }
  func.func @transform_4(%arg0: i32) -> (i32, i32) {
    %c0_i32 = arith.constant 0 : i32
    %c0_i32_0 = arith.constant 0 : i32
    %c0_i32_1 = arith.constant 0 : i32
    return %c0_i32, %c0_i32_0 : i32, i32
  }
  func.func @transform_5(%arg0: i32) -> (i32, i32) {
    %c0_i32 = arith.constant 0 : i32
    %c0_i32_0 = arith.constant 0 : i32
    %c0_i32_1 = arith.constant 0 : i32
    return %c0_i32, %c0_i32_0 : i32, i32
  }
  func.func @transform_6(%arg0: i32) -> (i32, i32) {
    %c0_i32 = arith.constant 0 : i32
    %c0_i32_0 = arith.constant 0 : i32
    %c0_i32_1 = arith.constant 0 : i32
    return %c0_i32, %c0_i32_0 : i32, i32
  }
  func.func @transform_7(%arg0: i32) -> (i32, i32, i32) {
    %c0_i32 = arith.constant 0 : i32
    %c0_i32_0 = arith.constant 0 : i32
    %c0_i32_1 = arith.constant 0 : i32
    return %arg0, %c0_i32, %c0_i32_0 : i32, i32, i32
  }
}

</mosaic_0001>

<bundles_post_ra>
// kernel: dqn_forward.2
= control target key start
LH: loop header
LB: loop body
LE: loop exit
PB: predicated region body
PF: predicated region fallthrough
CT: control target
= control target key end

     0   :  { %s865_s12 = smov 0   ;;  %s950_s0 = inlined_call_operand.vmem [shape: bf16[2,400,256], index: 0, kind: input, shape index: {}]   ;;  %s951_s1 = inlined_call_operand.vmem [shape: bf16[16,256], index: 1, kind: input, shape index: {}]   ;;  %s952_s2 = inlined_call_operand.vmem [shape: f32[16,1], index: 2, kind: input, shape index: {}]   ;;  %s953_s3 = inlined_call_operand.vmem [shape: bf16[2,16,400], index: 3, kind: output, shape index: {}]  }
   0x1 LB: > { %s676_s13 = sadd.s32 4294967295, %s842_s12   ;;  %p680_p0 = scmp.ge.s32.totalorder %s842_s12, 1  ;;  %s842_s12 = sphi %s865_s12, %s13_s12  }
   0x2   : > { %p137_p1 = scmp.lt.s32.totalorder %s842_s12, 3 }
   0x4   : > { %p138_p2 = pnand %p680_p0, %p137_p1 }
   0x5   : > { %p161_p3 = scmp.lt.s32.totalorder (!%p138_p2), %s676_s13, 1  ;;  %v835_v0 = vld [vmem:[%s951_s1 + $0x4] ss:$8 sps:$4 sm:$0xff] (!%p138_p2)   ;;  %v844_v4 = vmov (!%p138_p2), 0   ;;  %v833_v45 = vld [vmem:[%s951_s1] ss:$8 sps:$4 sm:$0xff] (!%p138_p2)  }
   0x6   : > { %141 = sbr.rel (%p138_p2) target bundleno = 368 (0x170), region = 32  ;;  %571 = vmatprep.mubr.bf16.mxu1 (!%p138_p2), %v835_v0  ;;  %528 = vmatprep.mubr.bf16.mxu0 (!%p138_p2), %v835_v0  ;;  %v224_v21 = vld [vmem:[%s952_s2] sm:$0xff] (!%p138_p2)  ;;  %v225_v23 = vld [vmem:[%s952_s2 + $0x8] sm:$0xff] (!%p138_p2)  ;;  %vm615_vm0 = vcmask (!%p138_p2), 1043456   ;;  %vm616_vm1 = vcmask (!%p138_p2), 130052  }
   0x7   : > { %757 = vset.pattern.permute.xlu0 (!%p138_p2), %v844_v4  ;;  %vm617_vm2 = vmor (!%p138_p2), %vm616_vm1, %vm615_vm0 }
   0x8   : > { %228 = vperm.xlu0 (!%p138_p2), %757, %v224_v21  }
   0xc   : > { %233 = vperm.xlu0 (!%p138_p2), %757, %v225_v23  }
   0xd   : > { %s955_s13 = smov (!%p161_p3, %s676_s13), 1 }
   0xe   : > { %s747_s16 = smul.u32 400, %s955_s13  ;;  %s742_s26 = sshll.u32 %s955_s13, 5 }
   0xf   : > { %s170_s29 = scalar_lea.vmem %s953_s3, %s742_s26 }
  0x10   : > { %s882_s19 = scalar_lea.vmem %s950_s0, %s747_s16 }
  0x11   : > { %v758_v1 = vld [vmem:[%s882_s19 + $0x4] ss:$8 sps:$4 sm:$0xff]   ;;  %v760_v2 = vld [vmem:[%s882_s19] ss:$8 sps:$4 sm:$0xff]   ;;  %v761_v3 = vld [vmem:[%s882_s19 + $0x14] ss:$8 sps:$4 sm:$0xff]  }
  0x12   : > { %496 = vmatprep.subr.bf16.mxu0 %v758_v1  ;;  %v763_v5 = vld [vmem:[%s882_s19 + $0x10] ss:$8 sps:$4 sm:$0xff]   ;;  %v764_v6 = vld [vmem:[%s882_s19 + $0x24] ss:$8 sps:$4 sm:$0xff]   ;;  %v781_v8 = vld [vmem:[%s882_s19 + $0x100] ss:$8 sps:$4 sm:$0xff]  }
  0x13   : > { %497 = vmatpush1.bf16.xpose.msra.mxu0 %v760_v2  ;;  %v779_v7 = vld [vmem:[%s882_s19 + $0x104] ss:$8 sps:$4 sm:$0xff]   ;;  %v785_v9 = vld [vmem:[%s882_s19 + $0x114] ss:$8 sps:$4 sm:$0xff]   ;;  %v766_v10 = vld [vmem:[%s882_s19 + $0x20] ss:$8 sps:$4 sm:$0xff]  }
  0x14   : > { %498 = vmatprep.subr.bf16.mxu0 %v761_v3  ;;  %539 = vmatprep.subr.bf16.mxu1 %v779_v7  ;;  %v767_v11 = vld [vmem:[%s882_s19 + $0x34] ss:$8 sps:$4 sm:$0xff]   ;;  %v787_v12 = vld [vmem:[%s882_s19 + $0x110] ss:$8 sps:$4 sm:$0xff]   ;;  %v791_v13 = vld [vmem:[%s882_s19 + $0x124] ss:$8 sps:$4 sm:$0xff]  }
  0x15   : > { %540 = vmatpush1.bf16.xpose.msra.mxu1 %v781_v8  ;;  %v769_v14 = vld [vmem:[%s882_s19 + $0x30] ss:$8 sps:$4 sm:$0xff]   ;;  %v770_v15 = vld [vmem:[%s882_s19 + $0x44] ss:$8 sps:$4 sm:$0xff]   ;;  %v793_v16 = vld [vmem:[%s882_s19 + $0x120] ss:$8 sps:$4 sm:$0xff]  }
  0x16   : > { %541 = vmatprep.subr.bf16.mxu1 %v785_v9  ;;  %v797_v17 = vld [vmem:[%s882_s19 + $0x134] ss:$8 sps:$4 sm:$0xff]   ;;  %v772_v18 = vld [vmem:[%s882_s19 + $0x40] ss:$8 sps:$4 sm:$0xff]   ;;  %v799_v20 = vld [vmem:[%s882_s19 + $0x130] ss:$8 sps:$4 sm:$0xff]  }
  0x17   : > { %v773_v19 = vld [vmem:[%s882_s19 + $0x54] ss:$8 sps:$4 sm:$0xff]   ;;  %v803_v22 = vld [vmem:[%s882_s19 + $0x144] ss:$8 sps:$4 sm:$0xff]   ;;  %v775_v24 = vld [vmem:[%s882_s19 + $0x50] ss:$8 sps:$4 sm:$0xff]  }
  0x18   : > { %v776_v25 = vld [vmem:[%s882_s19 + $0x64] ss:$8 sps:$4 sm:$0xff]   ;;  %v805_v26 = vld [vmem:[%s882_s19 + $0x140] ss:$8 sps:$4 sm:$0xff]   ;;  %v809_v27 = vld [vmem:[%s882_s19 + $0x154] ss:$8 sps:$4 sm:$0xff]  }
  0x19   : > { %v778_v28 = vld [vmem:[%s882_s19 + $0x60] ss:$8 sps:$4 sm:$0xff]   ;;  %v782_v29 = vld [vmem:[%s882_s19 + $0x74] ss:$8 sps:$4 sm:$0xff]   ;;  %v811_v30 = vld [vmem:[%s882_s19 + $0x150] ss:$8 sps:$4 sm:$0xff]  }
  0x1a   : > { %v815_v31 = vld [vmem:[%s882_s19 + $0x164] ss:$8 sps:$4 sm:$0xff]   ;;  %v784_v32 = vld [vmem:[%s882_s19 + $0x70] ss:$8 sps:$4 sm:$0xff]   ;;  %v817_v34 = vld [vmem:[%s882_s19 + $0x160] ss:$8 sps:$4 sm:$0xff]  }
  0x1b   : > { %499 = vmatpush1.bf16.xpose.msra.mxu0 %v763_v5  ;;  %v788_v33 = vld [vmem:[%s882_s19 + $0x84] ss:$8 sps:$4 sm:$0xff]   ;;  %v821_v35 = vld [vmem:[%s882_s19 + $0x174] ss:$8 sps:$4 sm:$0xff]   ;;  %v790_v36 = vld [vmem:[%s882_s19 + $0x80] ss:$8 sps:$4 sm:$0xff]  }
  0x1c   : > { %500 = vmatprep.subr.bf16.mxu0 %v764_v6  ;;  %v794_v37 = vld [vmem:[%s882_s19 + $0x94] ss:$8 sps:$4 sm:$0xff]   ;;  %v823_v38 = vld [vmem:[%s882_s19 + $0x170] ss:$8 sps:$4 sm:$0xff]   ;;  %v827_v39 = vld [vmem:[%s882_s19 + $0x184] ss:$8 sps:$4 sm:$0xff]  }
  0x1d   : > { %542 = vmatpush1.bf16.xpose.msra.mxu1 %v787_v12  ;;  %v796_v40 = vld [vmem:[%s882_s19 + $0x90] ss:$8 sps:$4 sm:$0xff]   ;;  %v800_v41 = vld [vmem:[%s882_s19 + $0xa4] ss:$8 sps:$4 sm:$0xff]   ;;  %v829_v42 = vld [vmem:[%s882_s19 + $0x180] ss:$8 sps:$4 sm:$0xff]  }
  0x1e   : > { %543 = vmatprep.subr.bf16.mxu1 %v791_v13  ;;  %v802_v43 = vld [vmem:[%s882_s19 + $0xa0] ss:$8 sps:$4 sm:$0xff]   ;;  %v806_v44 = vld [vmem:[%s882_s19 + $0xb4] ss:$8 sps:$4 sm:$0xff]   ;;  %v808_v46 = vld [vmem:[%s882_s19 + $0xb0] ss:$8 sps:$4 sm:$0xff]  }
  0x1f   : > { %v812_v47 = vld [vmem:[%s882_s19 + $0xc4] ss:$8 sps:$4 sm:$0xff]   ;;  %v814_v48 = vld [vmem:[%s882_s19 + $0xc0] ss:$8 sps:$4 sm:$0xff]   ;;  %v818_v49 = vld [vmem:[%s882_s19 + $0xd4] ss:$8 sps:$4 sm:$0xff]  }
  0x20   : > { %v820_v50 = vld [vmem:[%s882_s19 + $0xd0] ss:$8 sps:$4 sm:$0xff]   ;;  %v824_v51 = vld [vmem:[%s882_s19 + $0xe4] ss:$8 sps:$4 sm:$0xff]   ;;  %v826_v52 = vld [vmem:[%s882_s19 + $0xe0] ss:$8 sps:$4 sm:$0xff]  }
  0x21   : > { %v830_v53 = vld [vmem:[%s882_s19 + $0xf4] ss:$8 sps:$4 sm:$0xff]   ;;  %v832_v54 = vld [vmem:[%s882_s19 + $0xf0] ss:$8 sps:$4 sm:$0xff]  }
  0x23   : > { %501 = vmatpush1.bf16.xpose.msra.mxu0 %v766_v10 }
  0x24   : > { %502 = vmatprep.subr.bf16.mxu0 %v767_v11 }
  0x25   : > { %544 = vmatpush1.bf16.xpose.msra.mxu1 %v793_v16 }
  0x26   : > { %545 = vmatprep.subr.bf16.mxu1 %v797_v17 }
  0x2b   : > { %503 = vmatpush1.bf16.xpose.msra.mxu0 %v769_v14 }
  0x2c   : > { %504 = vmatprep.subr.bf16.mxu0 %v770_v15 }
  0x2d   : > { %546 = vmatpush1.bf16.xpose.msra.mxu1 %v799_v20 }
  0x2e   : > { %547 = vmatprep.subr.bf16.mxu1 %v803_v22 }
  0x33   : > { %505 = vmatpush1.bf16.xpose.msra.mxu0 %v772_v18 }
  0x34   : > { %506 = vmatprep.subr.bf16.mxu0 %v773_v19 }
  0x35   : > { %548 = vmatpush1.bf16.xpose.msra.mxu1 %v805_v26 }
  0x36   : > { %549 = vmatprep.subr.bf16.mxu1 %v809_v27 }
  0x3b   : > { %507 = vmatpush1.bf16.xpose.msra.mxu0 %v775_v24 }
  0x3c   : > { %508 = vmatprep.subr.bf16.mxu0 %v776_v25 }
  0x3d   : > { %550 = vmatpush1.bf16.xpose.msra.mxu1 %v811_v30 }
  0x3e   : > { %551 = vmatprep.subr.bf16.mxu1 %v815_v31 }
  0x43   : > { %509 = vmatpush1.bf16.xpose.msra.mxu0 %v778_v28 }
  0x44   : > { %510 = vmatprep.subr.bf16.mxu0 %v782_v29 }
  0x45   : > { %552 = vmatpush1.bf16.xpose.msra.mxu1 %v817_v34 }
  0x46   : > { %553 = vmatprep.subr.bf16.mxu1 %v821_v35 }
  0x4b   : > { %511 = vmatpush1.bf16.xpose.msra.mxu0 %v784_v32 }
  0x4c   : > { %512 = vmatprep.subr.bf16.mxu0 %v788_v33 }
  0x4d   : > { %554 = vmatpush1.bf16.xpose.msra.mxu1 %v823_v38 }
  0x4e   : > { %555 = vmatprep.subr.bf16.mxu1 %v827_v39 }
  0x53   : > { %513 = vmatpush1.bf16.xpose.msra.mxu0 %v790_v36 }
  0x54   : > { %514 = vmatprep.subr.bf16.mxu0 %v794_v37 }
  0x55   : > { %556 = vmatpush1.bf16.xpose.msra.mxu1 %v829_v42 }
  0x5b   : > { %515 = vmatpush1.bf16.xpose.msra.mxu0 %v796_v40 }
  0x5c   : > { %516 = vmatprep.subr.bf16.mxu0 %v800_v41  ;;  %572 = vmatmul.mubr.bf16.vlgmr.msra.gmra.mrb[0].mxu1 %v833_v45 }
  0x63   : > { %517 = vmatpush1.bf16.xpose.msra.mxu0 %v802_v43 }
  0x64   : > { %518 = vmatprep.subr.bf16.mxu0 %v806_v44 }
  0x6b   : > { %519 = vmatpush1.bf16.xpose.msra.mxu0 %v808_v46 }
  0x6c   : > { %520 = vmatprep.subr.bf16.mxu0 %v812_v47 }
  0x73   : > { %521 = vmatpush1.bf16.xpose.msra.mxu0 %v814_v48 }
  0x74   : > { %522 = vmatprep.subr.bf16.mxu0 %v818_v49 }
  0x7b   : > { %523 = vmatpush1.bf16.xpose.msra.mxu0 %v820_v50 }
  0x7c   : > { %524 = vmatprep.subr.bf16.mxu0 %v824_v51 }
  0x83   : > { %525 = vmatpush1.bf16.xpose.msra.mxu0 %v826_v52 }
  0x84   : > { %526 = vmatprep.subr.bf16.mxu0 %v830_v53 }
  0x87   : > { %v229_v55 = vpop.permute.xlu0 %228 }
  0x8b   : > { %527 = vmatpush1.bf16.xpose.msra.mxu0 %v832_v54  ;;  %v234_v57 = vpop.permute.xlu0 %233 }
  0x92   : > { %529 = vmatmul.mubr.bf16.vlgmr.msra.gmra.mrb[0].mxu0 %v833_v45 }
 0x12f   : > { %v573_v56 = vpop.f32.mrb[0].mxu1 }
 0x130   : > { %v574_v58 = vadd.f32 %v573_v56, %v229_v55  ;;  %v575_v59 = vpop.f32.mrb[1].mxu1 }
 0x131   : > { %v576_v60 = vadd.f32 %v575_v59, %v229_v55  ;;  %v577_v61 = vpop.f32.mrb[2].mxu1 }
 0x132   : > { %v584_v62 = vmax.f32 %v574_v58, 0.0  ;;  %v578_v63 = vadd.f32 %v577_v61, %v234_v57  ;;  %v579_v0 = vpop.f32.mrb[3].mxu1 }
 0x133   : > { %v585_v1 = vmax.f32 %v576_v60, 0.0  ;;  %v580_v2 = vadd.f32 %v579_v0, %v234_v57 }
 0x134   : > { %v588_v3 = vmax.f32 %v578_v63, 0.0 }
 0x135   : > { %v744_v4 = vpack.c.bf16 %v585_v1, %v584_v62  ;;  %v589_v5 = vmax.f32 %v580_v2, 0.0 }
 0x137   : > { %618 = vst.msk [vmem:[%s170_s29 + $0x8] sm:$0xff] %vm617_vm2, %v744_v4  ;;  %v746_v6 = vpack.c.bf16 %v589_v5, %v588_v3 }
 0x139   : > { %620 = vst.msk [vmem:[%s170_s29 + $0x18] sm:$0xff] %vm617_vm2, %v746_v6 }
 0x165   : > { %v530_v7 = vpop.f32.mrb[0].mxu0 }
 0x166   : > { %v531_v8 = vadd.f32 %v530_v7, %v229_v55  ;;  %v532_v9 = vpop.f32.mrb[1].mxu0 }
 0x167   : > { %v533_v10 = vadd.f32 %v532_v9, %v229_v55  ;;  %v534_v11 = vpop.f32.mrb[2].mxu0 }
 0x168   : > { %v582_v12 = vmax.f32 %v531_v8, 0.0  ;;  %v535_v13 = vadd.f32 %v534_v11, %v234_v57  ;;  %v536_v14 = vpop.f32.mrb[3].mxu0 }
 0x169   : > { %v583_v15 = vmax.f32 %v533_v10, 0.0  ;;  %v537_v16 = vadd.f32 %v536_v14, %v234_v57 }
 0x16a   : > { %v586_v17 = vmax.f32 %v535_v13, 0.0 }
 0x16b   : > { %v743_v18 = vpack.c.bf16 %v583_v15, %v582_v12  ;;  %v587_v19 = vmax.f32 %v537_v16, 0.0 }
 0x16d   : > { %614 = vst [vmem:[%s170_s29] sm:$0xff] %v743_v18  ;;  %v745_v20 = vpack.c.bf16 %v587_v19, %v586_v17 }
 0x16f   : > { %619 = vst [vmem:[%s170_s29 + $0x10] sm:$0xff] %v745_v20 }
 0x170 PF: > { %s13_s12 = sadd.s32 1, %s842_s12  }
 0x171   : > { %p10_p4 = scmp.ge.s32.totalorder %s13_s12, 4  }
 0x173   :  { %12 = sbr.rel (!%p10_p4) target bundleno = 1 (0x1), region = 62 }

// kernel: dqn_forward.3
= control target key start
LH: loop header
LB: loop body
LE: loop exit
PB: predicated region body
PF: predicated region fallthrough
CT: control target
= control target key end

     0   :  { %12 = vsyncpa [#allocation3], 0  ;;  %s8254_s0 = inlined_call_operand.vmem [shape: bf16[2,81,256], index: 0, kind: input, shape index: {}]   ;;  %s8255_s1 = inlined_call_operand.vmem [shape: bf16[32,256], index: 1, kind: input, shape index: {}]   ;;  %s8256_s2 = inlined_call_operand.vmem [shape: f32[32,1], index: 2, kind: input, shape index: {}]   ;;  %s8257_s3 = inlined_call_operand.vmem [shape: bf16[32,81,256], index: 3, kind: input, shape index: {}]   ;;  %s8258_s4 = inlined_call_operand.vmem [shape: f32[1,256], index: 4, kind: input, shape index: {}]   ;;  %s8259_s5 = inlined_call_operand.vmem [shape: bf16[256,6], index: 5, kind: input, shape index: {}]   ;;  %s8260_s6 = inlined_call_operand.vmem [shape: f32[1,6], index: 6, kind: input, shape index: {}]   ;;  %s8261_s7 = inlined_call_operand.hbm [shape: f32[2,1,6], index: 7, kind: output, shape index: {}]  }
   0x1   :  { %14 = vsyncpa [#allocation3 + $0x1], 0  ;;  %s6644_s24 = smov 0   ;;  %s6646_s25 = smov 0  }
   0x2   :  { %s6648_s26 = smov 0   ;;  %s6650_s27 = smov 0  }
   0x3 LB: > { %s6665_s28 = sadd.s32 4294967295, %s6599_s27   ;;  %s5091_s29 = sadd.s32 4294967294, %s6599_s27   ;;  %s6599_s27 = sphi %s6650_s27, %s8267_s27   ;;  %s6595_s26 = sphi %s6648_s26, %s8266_s26   ;;  %s6591_s25 = sphi %s6646_s25, %s8265_s25   ;;  %s6587_s24 = sphi %s6644_s24, %s8264_s24  }
   0x4   : > { %s6669_s30 = sadd.s32 1, %s6599_s27   ;;  %s179_s8 = sadd.s32 1, %s6595_s26 }
   0x5   : > { %s176_s9 = ssub.s32 %s6599_s27, %s6669_s30  ;;  %p189_p0 = scmp.ne.s32.totalorder %s6595_s26, %s6591_s25 }
   0x6   : > { %p177_p1 = scmp.eq.s32.totalorder %s176_s9, 0  ;;  %p190_p2 = scmp.eq.s32.totalorder %s6665_s28, 1 }
   0x7   : > { %p195_p3 = scmp.ne.s32.totalorder %s6591_s25, %s6587_s24  ;;  %p196_p4 = scmp.eq.s32.totalorder %s5091_s29, 1 }
   0x8   : > { %s6680_s10 = scalar_select %p177_p1, %s6595_s26, %s179_s8  }
   0x9   : > { %p6682_p5 = por %p190_p2, %p189_p0  ;;  %p6686_p6 = por %p196_p4, %p195_p3 }
   0xa   : > { %p5094_p7 = scmp.ge.s32.totalorder %s6599_s27, 1  ;;  %p240_p8 = scmp.lt.s32.totalorder %s6599_s27, 3 }
   0xc   : > { %p241_p9 = pnand %p5094_p7, %p240_p8 }
   0xd   : > { %p271_p10 = scmp.lt.s32.totalorder (!%p241_p9), %s6665_s28, 1  ;;  %v5973_v0 = vld [vmem:[%s8255_s1 + $0x4] ss:$8 sps:$4 sm:$0xff] (!%p241_p9)   ;;  %v6601_v1 = vmov (!%p241_p9), 0   ;;  %v5979_v5 = vld [vmem:[%s8257_s3] ss:$8 sps:$4 sm:$0xff] (!%p241_p9)  }
   0xe   : > { %244 = sbr.rel (%p241_p9) target bundleno = 1162 (0x48a), region = 48  ;;  %5952 = vset.pattern.permute.xlu0 (!%p241_p9), %v6601_v1  ;;  %v292_v2 = vld [vmem:[%s8256_s2] sm:$0xff] (!%p241_p9)  ;;  %560 = vmatprep.mubr.bf16.mxu1 (!%p241_p9), %v6601_v1  ;;  %v293_v3 = vld [vmem:[%s8256_s2 + $0x8] sm:$0xff] (!%p241_p9)  ;;  %v5983_v6 = vld [vmem:[%s8257_s3 + $0x14] ss:$8 sps:$4 sm:$0xff] (!%p241_p9)   ;;  %vm519_vm0 = vcmask (!%p241_p9), 1040384  }
   0xf   : > { %298 = vperm.xlu0 (!%p241_p9), %5952, %v292_v2   ;;  %5953 = vset.pattern.permute.xlu1 (!%p241_p9), %v6601_v1  ;;  %v5977_v4 = vld [vmem:[%s8257_s3 + $0x4] ss:$8 sps:$4 sm:$0xff] (!%p241_p9)   ;;  %v5985_v11 = vld [vmem:[%s8257_s3 + $0x10] ss:$8 sps:$4 sm:$0xff] (!%p241_p9)   ;;  %v5991_v14 = vld [vmem:[%s8257_s3 + $0x20] ss:$8 sps:$4 sm:$0xff] (!%p241_p9)  }
  0x10   : > { %425 = vmatprep.mubr.bf16.mxu0 (!%p241_p9), %v5973_v0  ;;  %528 = vmatprep.subr.bf16.mxu1 (!%p241_p9), %v5977_v4  ;;  %v5989_v13 = vld [vmem:[%s8257_s3 + $0x24] ss:$8 sps:$4 sm:$0xff] (!%p241_p9)   ;;  %v5995_v15 = vld [vmem:[%s8257_s3 + $0x34] ss:$8 sps:$4 sm:$0xff] (!%p241_p9)   ;;  %v5997_v17 = vld [vmem:[%s8257_s3 + $0x30] ss:$8 sps:$4 sm:$0xff] (!%p241_p9)  }
  0x11   : > { %529 = vmatpush1.bf16.msra.mxu1 (!%p241_p9), %v5979_v5  ;;  %v5982_v24 = vld [vmem:[%s8257_s3 + $0x164] ss:$8 sps:$4 sm:$0xff] (!%p241_p9)   ;;  %v5971_v26 = vld [vmem:[%s8255_s1] ss:$8 sps:$4 sm:$0xff] (!%p241_p9)   ;;  %v5974_v27 = vld [vmem:[%s8255_s1 + $0x14] ss:$8 sps:$4 sm:$0xff] (!%p241_p9)  }
  0x12   : > { %530 = vmatprep.subr.bf16.mxu1 (!%p241_p9), %v5983_v6  ;;  %v5980_v28 = vld [vmem:[%s8257_s3 + $0x160] ss:$8 sps:$4 sm:$0xff] (!%p241_p9)   ;;  %v5988_v29 = vld [vmem:[%s8257_s3 + $0x174] ss:$8 sps:$4 sm:$0xff] (!%p241_p9)   ;;  %v5986_v30 = vld [vmem:[%s8257_s3 + $0x170] ss:$8 sps:$4 sm:$0xff] (!%p241_p9)  }
  0x13   : > { %303 = vperm.xlu0 (!%p241_p9), %5952, %v293_v3   ;;  %v5994_v31 = vld [vmem:[%s8257_s3 + $0x184] ss:$8 sps:$4 sm:$0xff] (!%p241_p9)   ;;  %v5976_v32 = vld [vmem:[%s8255_s1 + $0x10] ss:$8 sps:$4 sm:$0xff] (!%p241_p9)   ;;  %v5992_v33 = vld [vmem:[%s8257_s3 + $0x180] ss:$8 sps:$4 sm:$0xff] (!%p241_p9)  }
  0x14   : > { %v6000_v34 = vld [vmem:[%s8257_s3 + $0x194] ss:$8 sps:$4 sm:$0xff] (!%p241_p9)   ;;  %v5998_v35 = vld [vmem:[%s8257_s3 + $0x190] ss:$8 sps:$4 sm:$0xff] (!%p241_p9)   ;;  %v6001_v36 = vld [vmem:[%s8257_s3 + $0x44] ss:$8 sps:$4 sm:$0xff] (!%p241_p9)  }
  0x15   : > { %s272_s17 = scalar_select %p271_p10, %s6665_s28, 1  ;;  %531 = vmatpush1.bf16.msra.mxu1 %v5985_v11  ;;  %v6003_v37 = vld [vmem:[%s8257_s3 + $0x40] ss:$8 sps:$4 sm:$0xff]   ;;  %v459_v38 = vld [vmem:[%s8257_s3 + $0x50] sm:$0x11]  ;;  %v6796_v42 = vsel %vm519_vm0, 65535, %v6601_v1 }
  0x16   : > { %532 = vmatprep.subr.bf16.mxu1 %v5989_v13  ;;  %v6006_v39 = vld [vmem:[%s8257_s3 + $0x1a4] ss:$8 sps:$4 sm:$0xff]   ;;  %v5123_v40 = vcombine.high %v459_v38, %v459_v38  ;;  %v6004_v41 = vld [vmem:[%s8257_s3 + $0x1a0] ss:$8 sps:$4 sm:$0xff]   ;;  %v5122_v43 = vcombine.low %v459_v38, %v459_v38  ;;  %v5207_v44 = vld [vmem:[%s8257_s3 + $0x1b0] sm:$0x11] }
  0x17   : > { %s5910_s20 = smul.u32 88, %s272_s17  ;;  %v5219_v46 = vcombine.high %v5207_v44, %v5207_v44  ;;  %v5218_v48 = vcombine.low %v5207_v44, %v5207_v44  ;;  %v6013_v51 = vld [vmem:[%s8257_s3 + $0x5c] ss:$8 sps:$4 sm:$0xff]   ;;  %v294_v53 = vld [vmem:[%s8256_s2 + $0x10] sm:$0xff]  ;;  %v6011_v2 = vld [vmem:[%s8257_s3 + $0x58] ss:$8 sps:$4 sm:$0xff]  }
  0x18   : > { %v526_v45 = vand.u32 %v5123_v40, %v6796_v42  ;;  %v523_v47 = vand.u32 %v5122_v43, %v6796_v42  ;;  %v6016_v52 = vld [vmem:[%s8257_s3 + $0x214] ss:$8 sps:$4 sm:$0xff]   ;;  %308 = vperm.xlu1 %5953, %v294_v53   ;;  %vm515_vm1 = vcmask 662528   ;;  %v6014_v5 = vld [vmem:[%s8257_s3 + $0x210] ss:$8 sps:$4 sm:$0xff]   ;;  %s269_s17 = sand.u32 1, %s6591_s25  }
  0x19   : > { %s6715_s13 = scalar_lea.vmem %s8254_s0, %s5910_s20  ;;  %533 = vmatpush1.bf16.msra.mxu1 %v5991_v14  ;;  %v1076_v49 = vand.u32 %v5219_v46, %v6796_v42  ;;  %v1073_v50 = vand.u32 %v5218_v48, %v6796_v42  ;;  %v295_v54 = vld [vmem:[%s8256_s2 + $0x18] sm:$0xff]  ;;  %v6019_v4 = vld [vmem:[%s8257_s3 + $0x6c] ss:$8 sps:$4 sm:$0xff]   ;;  %s270_s20 = scalar_lea.vmem [#allocation2], %s269_s17  ;;  %vm5021_vm2 = vcmask 40960  }
  0x1a   : > { %v5954_v7 = vld [vmem:[%s6715_s13 + $0x4] ss:$8 sps:$4 sm:$0xff]   ;;  %v5956_v8 = vld [vmem:[%s6715_s13] ss:$8 sps:$4 sm:$0xff]   ;;  %v5957_v9 = vld [vmem:[%s6715_s13 + $0x14] ss:$8 sps:$4 sm:$0xff]   ;;  %534 = vmatprep.subr.bf16.mxu1 %v5995_v15 }
  0x1b   : > { %393 = vmatprep.subr.bf16.mxu0 %v5954_v7  ;;  %v5959_v10 = vld [vmem:[%s6715_s13 + $0x10] ss:$8 sps:$4 sm:$0xff]   ;;  %v5960_v12 = vld [vmem:[%s6715_s13 + $0x24] ss:$8 sps:$4 sm:$0xff]   ;;  %v5962_v16 = vld [vmem:[%s6715_s13 + $0x20] ss:$8 sps:$4 sm:$0xff]  }
  0x1c   : > { %394 = vmatpush1.bf16.xpose.msra.mxu0 %v5956_v8  ;;  %v5963_v18 = vld [vmem:[%s6715_s13 + $0x34] ss:$8 sps:$4 sm:$0xff]   ;;  %v5965_v19 = vld [vmem:[%s6715_s13 + $0x30] ss:$8 sps:$4 sm:$0xff]   ;;  %v5966_v20 = vld [vmem:[%s6715_s13 + $0x44] ss:$8 sps:$4 sm:$0xff]   ;;  %313 = vperm.xlu1 %5953, %v295_v54  }
  0x1d   : > { %395 = vmatprep.subr.bf16.mxu0 %v5957_v9  ;;  %535 = vmatpush1.bf16.msra.mxu1 %v5997_v17  ;;  %v291_v21 = vld [vmem:[%s6715_s13 + $0x50] sm:$0x11]  ;;  %v5968_v22 = vld [vmem:[%s6715_s13 + $0x40] ss:$8 sps:$4 sm:$0xff]   ;;  %v6022_v7 = vld [vmem:[%s8257_s3 + $0x224] ss:$8 sps:$4 sm:$0xff]  }
  0x1e   : > { %v5111_v23 = vcombine.high %v291_v21, %v291_v21  ;;  %v5110_v25 = vcombine.low %v291_v21, %v291_v21  ;;  %536 = vmatprep.subr.bf16.mxu1 %v6001_v36  ;;  %v6017_v8 = vld [vmem:[%s8257_s3 + $0x68] ss:$8 sps:$4 sm:$0xff]   ;;  %v6025_v9 = vld [vmem:[%s8257_s3 + $0x7c] ss:$8 sps:$4 sm:$0xff]   ;;  %v6031_v13 = vld [vmem:[%s8257_s3 + $0x8c] ss:$8 sps:$4 sm:$0xff]  }
  0x1f   : > { %v6028_v11 = vld [vmem:[%s8257_s3 + $0x234] ss:$8 sps:$4 sm:$0xff]   ;;  %v6026_v14 = vld [vmem:[%s8257_s3 + $0x230] ss:$8 sps:$4 sm:$0xff]   ;;  %v5135_v15 = vld [vmem:[%s8257_s3 + $0xa8] sm:$0x11] }
  0x20   : > { %v6034_v17 = vld [vmem:[%s8257_s3 + $0x244] ss:$8 sps:$4 sm:$0xff]   ;;  %v6047_v43 = vld [vmem:[%s8257_s3 + $0xb4] ss:$8 sps:$4 sm:$0xff]   ;;  %v6045_v46 = vld [vmem:[%s8257_s3 + $0xb0] ss:$8 sps:$4 sm:$0xff]  }
  0x21   : > { %537 = vmatpush1.bf16.msra.mxu1 %v6003_v37  ;;  %v6037_v21 = vld [vmem:[%s8257_s3 + $0x9c] ss:$8 sps:$4 sm:$0xff]   ;;  %v6038_v37 = vld [vmem:[%s8257_s3 + $0x250] ss:$8 sps:$4 sm:$0xff]   ;;  %s5885_s13 = sshll.u32 %s6665_s28, 4  ;;  %s5036_s21 = sshll.u32 %s270_s20, 4  ;;  %s8214_s21 = int_to_ptr.vmem [resolvable:$true] %s5036_s21 }
  0x22   : > { %538 = vmatprep.subr.bf16.mxu1 %v526_v45  ;;  %v6050_v45 = vld [vmem:[%s8257_s3 + $0x2c4] ss:$8 sps:$4 sm:$0xff]   ;;  %v6059_v53 = vld [vmem:[%s8257_s3 + $0xd4] ss:$8 sps:$4 sm:$0xff]   ;;  %v6054_v54 = vld [vmem:[%s8257_s3 + $0x2d0] ss:$8 sps:$4 sm:$0xff]   ;;  %s8212_s29 = scalar_lea.hbm %s8261_s7, %s5885_s13 }
  0x23   : > { %v6053_v48 = vld [vmem:[%s8257_s3 + $0xc4] ss:$8 sps:$4 sm:$0xff]   ;;  %s5024_s8 = scalar_lea.sflag [#allocation3], %s269_s17  ;;  %s6537_s28 = scalar_lea.vmem %s8214_s21, 16 }
  0x24   : > { %396 = vmatpush1.bf16.xpose.msra.mxu0 %v5959_v10  ;;  %v6020_v10 = vld [vmem:[%s8257_s3 + $0x220] ss:$8 sps:$4 sm:$0xff]   ;;  %p6538_p11 = scmp.ne.s32.totalorder %s8214_s21, %s6537_s28  ;;  %s6603_s9 = smov [#allocation2]  }
  0x25   : > { %397 = vmatprep.subr.bf16.mxu0 %v5960_v12  ;;  %539 = vmatpush1.bf16.msra.mxu1 %v523_v47  ;;  %v6023_v12 = vld [vmem:[%s8257_s3 + $0x78] ss:$8 sps:$4 sm:$0xff]   ;;  %s6541_s14 = sshll.u32 %s6603_s9, 4  ;;  %s6542_s14 = int_to_ptr.vmem [resolvable:$false] %s6541_s14 }
  0x26   : > { %666 = vmatprep.subr.bf16.mxu1 %v6013_v51  ;;  %v6056_v51 = vld [vmem:[%s8257_s3 + $0x2d4] ss:$8 sps:$4 sm:$0xff]   ;;  %p6539_p12 = pnand %p6538_p11, %p6682_p5  ;;  %s6543_s15 = scalar_lea.vmem %s6542_s14, 32 }
  0x27   : > { %p6544_p0 = scmp.lt.s32.totalorder %s8214_s21, %s6542_s14  ;;  %p6545_p1 = scmp.lt.s32.totalorder %s6543_s15, %s6537_s28 }
  0x28   : > { %p6540_p13 = pneg %p6539_p12 }
  0x29   : > { %p6546_p2 = por %p6545_p1, %p6544_p0 }
  0x2b   : > { %p6547_p3 = pnand %p6546_p2, %p6540_p13 }
  0x2c   : > { %398 = vmatpush1.bf16.xpose.msra.mxu0 %v5962_v16 }
  0x2d   : > { %399 = vmatprep.subr.bf16.mxu0 %v5963_v18  ;;  %v6029_v18 = vld [vmem:[%s8257_s3 + $0x88] ss:$8 sps:$4 sm:$0xff]  }
  0x34   : > { %400 = vmatpush1.bf16.xpose.msra.mxu0 %v5965_v19  ;;  %v5255_v19 = vld [vmem:[%s8257_s3 + $0x260] sm:$0x11] }
  0x35   : > { %401 = vmatprep.subr.bf16.mxu0 %v5966_v20  ;;  %v5266_v38 = vcombine.low %v5255_v19, %v5255_v19 }
  0x37   : > { %v1347_v44 = vand.u32 %v5266_v38, %v6796_v42  ;;  %v6103_v38 = vld [vmem:[%s8257_s3 + $0x148] ss:$8 sps:$4 sm:$0xff]  }
  0x3c   : > { %402 = vmatpush1.bf16.xpose.msra.mxu0 %v5968_v22  ;;  %v5147_v22 = vcombine.high %v5135_v15, %v5135_v15 }
  0x3d   : > { %403 = vmatprep.subr.bf16.mxu0 %v5111_v23 }
  0x44   : > { %404 = vmatpush1.bf16.xpose.msra.mxu0 %v5110_v25  ;;  %v6032_v25 = vld [vmem:[%s8257_s3 + $0x240] ss:$8 sps:$4 sm:$0xff]  }
  0x45   : > { %1078 = vmatprep.subr.bf16.mxu0 %v5982_v24 }
  0x4b   : > { %426 = vmatmul.mubr.bf16.vlgmr.msra.gmra.mrb[0].mxu0 %v5971_v26 }
  0x4c   : > { %433 = vmatprep.mubr.bf16.mxu0 %v5974_v27  ;;  %1079 = vmatpush1.bf16.msra.mxu0 %v5980_v28  ;;  %v6040_v28 = vld [vmem:[%s8257_s3 + $0x254] ss:$8 sps:$4 sm:$0xff]  }
  0x4d   : > { %1080 = vmatprep.subr.bf16.mxu0 %v5988_v29  ;;  %v5267_v29 = vcombine.high %v5255_v19, %v5255_v19  ;;  %v6082_v19 = vld [vmem:[%s8257_s3 + $0x370] ss:$8 sps:$4 sm:$0xff]  }
  0x50   : > { %1081 = vmatpush1.bf16.msra.mxu0 %v5986_v30 }
  0x51   : > { %1082 = vmatprep.subr.bf16.mxu0 %v5994_v31 }
  0x53   : > { %434 = vmatmul.mubr.bf16.gmra.mrb[4].mxu0 %v5976_v32 }
  0x54   : > { %1083 = vmatpush1.bf16.msra.mxu0 %v5992_v33  ;;  %1110 = vmatprep.mubr.bf16.mxu0 %v6601_v1  ;;  %v6035_v33 = vld [vmem:[%s8257_s3 + $0x98] ss:$8 sps:$4 sm:$0xff]  }
  0x55   : > { %1084 = vmatprep.subr.bf16.mxu0 %v6000_v34  ;;  %v5146_v34 = vcombine.low %v5135_v15, %v5135_v15  ;;  %v6084_v15 = vld [vmem:[%s8257_s3 + $0x374] ss:$8 sps:$4 sm:$0xff]  }
  0x58   : > { %1085 = vmatpush1.bf16.msra.mxu0 %v5998_v35  ;;  %v664_v35 = vand.u32 %v5147_v22, %v6796_v42  ;;  %v6085_v22 = vld [vmem:[%s8257_s3 + $0x118] ss:$8 sps:$4 sm:$0xff]  }
  0x59   : > { %1086 = vmatprep.subr.bf16.mxu0 %v6006_v39  ;;  %v1350_v39 = vand.u32 %v5267_v29, %v6796_v42  ;;  %v5183_v29 = vld [vmem:[%s8257_s3 + $0x158] sm:$0x11] }
  0x5c   : > { %1087 = vmatpush1.bf16.msra.mxu0 %v6004_v41  ;;  %v661_v41 = vand.u32 %v5146_v34, %v6796_v42  ;;  %v5195_v34 = vcombine.high %v5183_v29, %v5183_v29 }
  0x5d   : > { %1088 = vmatprep.subr.bf16.mxu0 %v1076_v49  ;;  %v6048_v49 = vld [vmem:[%s8257_s3 + $0x2c0] ss:$8 sps:$4 sm:$0xff]  }
  0x60   : > { %1089 = vmatpush1.bf16.msra.mxu0 %v1073_v50 }
  0x61   : > { %1352 = vmatprep.subr.bf16.mxu0 %v6016_v52  ;;  %v6051_v52 = vld [vmem:[%s8257_s3 + $0xc0] ss:$8 sps:$4 sm:$0xff]  }
  0x8e   : > { %v299_v55 = vpop.permute.xlu0 %298 }
  0x92   : > { %v304_v59 = vpop.permute.xlu0 %303 }
  0x97   : > { %v309_v16 = vpop.permute.xlu1 %308 }
  0x9b   : > { %v314_v26 = vpop.permute.xlu1 %313 }
 0x11e   : > { %v427_v56 = vpop.f32.mrb[0].mxu0 }
 0x11f   : > { %v428_v57 = vadd.f32 %v427_v56, %v299_v55  ;;  %v429_v58 = vpop.f32.mrb[1].mxu0  ;;  %v6062_v55 = vld [vmem:[%s8257_s3 + $0x2e4] ss:$8 sps:$4 sm:$0xff]   ;;  %v6057_v56 = vld [vmem:[%s8257_s3 + $0xd0] ss:$8 sps:$4 sm:$0xff]  }
 0x120   : > { %v430_v60 = vpop.f32.mrb[2].mxu0  ;;  %v6060_v58 = vld [vmem:[%s8257_s3 + $0x2e0] ss:$8 sps:$4 sm:$0xff]  }
 0x121   : > { %v431_v61 = vadd.f32 %v430_v60, %v304_v59  ;;  %v432_v62 = vpop.f32.mrb[3].mxu0  ;;  %v442_v63 = vmax.f32 %v428_v57, 0.0  ;;  %v6065_v57 = vld [vmem:[%s8257_s3 + $0xe4] ss:$8 sps:$4 sm:$0xff]   ;;  %v6068_v60 = vld [vmem:[%s8257_s3 + $0x2f4] ss:$8 sps:$4 sm:$0xff]  }
 0x122   : > { %v5159_v59 = vld [vmem:[%s8257_s3 + $0x100] sm:$0x11]  ;;  %v5303_v62 = vld [vmem:[%s8257_s3 + $0x310] sm:$0x11] }
 0x123   : > { %v443_v0 = vmax.f32 %v431_v61, 0.0  ;;  %v6063_v61 = vld [vmem:[%s8257_s3 + $0xe0] ss:$8 sps:$4 sm:$0xff]  }
 0x125   : > { %v6820_v3 = vpack.c.bf16 %v443_v0, %v442_v63  ;;  %v6071_v63 = vld [vmem:[%s8257_s3 + $0xf4] ss:$8 sps:$4 sm:$0xff]   ;;  %v5171_v0 = vcombine.high %v5159_v59, %v5159_v59 }
 0x126   : > { %v435_v20 = vpop.f32.mrb[4].mxu0 }
 0x127   : > { %5124 = vmatmul.mubr.msk.bf16.vlgmr.msra.gmra.mrb[0].mxu1 %vm515_vm1, %v6820_v3  ;;  %v1013_v6 = vrot.slane %v6820_v3, 2  ;;  %v436_v23 = vadd.f32 %v435_v20, %v309_v16  ;;  %v437_v24 = vpop.f32.mrb[5].mxu0  ;;  %v6901_v47 = vshrl.u32 %v6820_v3, 16  ;;  %v1287_v50 = vrot.slane %v6820_v3, 3  ;;  %v6079_v16 = vld [vmem:[%s8257_s3 + $0x108] ss:$8 sps:$4 sm:$0xff]  }
 0x128   : > { %667 = vmatpush1.bf16.msra.mxu1 %v6011_v2  ;;  %698 = vmatprep.mubr.bf16.mxu1 %v6601_v1  ;;  %v438_v27 = vpop.f32.mrb[6].mxu0  ;;  %v6066_v2 = vld [vmem:[%s8257_s3 + $0x2f0] ss:$8 sps:$4 sm:$0xff]   ;;  %v1561_v20 = vrot.slane %v6820_v3, 4  ;;  %v6088_v24 = vld [vmem:[%s8257_s3 + $0x380] ss:$8 sps:$4 sm:$0xff]  }
 0x129   : > { %5220 = vmatmul.mubr.msk.bf16.vlgmr.msra.gmra.mrb[8].mxu0 %vm515_vm1, %v1013_v6  ;;  %668 = vmatprep.subr.bf16.mxu1 %v6019_v4  ;;  %v444_v30 = vmax.f32 %v436_v23, 0.0  ;;  %v439_v31 = vadd.f32 %v438_v27, %v314_v26  ;;  %v440_v32 = vpop.f32.mrb[7].mxu0  ;;  %v6074_v4 = vld [vmem:[%s8257_s3 + $0x304] ss:$8 sps:$4 sm:$0xff]   ;;  %v6069_v6 = vld [vmem:[%s8257_s3 + $0xf0] ss:$8 sps:$4 sm:$0xff]  }
 0x12a   : > { %1353 = vmatpush1.bf16.msra.mxu0 %v6014_v5  ;;  %1384 = vmatprep.mubr.bf16.mxu0 %v6601_v1  ;;  %v5315_v5 = vcombine.high %v5303_v62, %v5303_v62  ;;  %v6093_v23 = vld [vmem:[%s8257_s3 + $0x12c] ss:$8 sps:$4 sm:$0xff]   ;;  %v6091_v26 = vld [vmem:[%s8257_s3 + $0x128] ss:$8 sps:$4 sm:$0xff]   ;;  %v6099_v27 = vld [vmem:[%s8257_s3 + $0x13c] ss:$8 sps:$4 sm:$0xff]  }
 0x12b   : > { %1354 = vmatprep.subr.bf16.mxu0 %v6022_v7  ;;  %v445_v36 = vmax.f32 %v439_v31, 0.0  ;;  %v5170_v7 = vcombine.low %v5159_v59, %v5159_v59  ;;  %v6097_v31 = vld [vmem:[%s8257_s3 + $0x138] ss:$8 sps:$4 sm:$0xff]  }
 0x12c   : > { %669 = vmatpush1.bf16.msra.mxu1 %v6017_v8  ;;  %v802_v8 = vand.u32 %v5171_v0, %v6796_v42  ;;  %v5351_v32 = vld [vmem:[%s8257_s3 + $0x3c0] sm:$0x11]  ;;  %v6122_v59 = vld [vmem:[%s8257_s3 + $0x430] ss:$8 sps:$4 sm:$0xff]   ;;  %v5231_v0 = vld [vmem:[%s8257_s3 + $0x208] sm:$0x11] }
 0x12d   : > { %670 = vmatprep.subr.bf16.mxu1 %v6025_v9  ;;  %v6887_v40 = vpack.c.bf16 %v445_v36, %v444_v30  ;;  %v6072_v9 = vld [vmem:[%s8257_s3 + $0x300] ss:$8 sps:$4 sm:$0xff]   ;;  %v6102_v30 = vld [vmem:[%s8257_s3 + $0x3a4] ss:$8 sps:$4 sm:$0xff]   ;;  %v6108_v36 = vld [vmem:[%s8257_s3 + $0x3b4] ss:$8 sps:$4 sm:$0xff]  }
 0x12e   : > { %1355 = vmatpush1.bf16.msra.mxu0 %v6020_v10  ;;  %v5314_v10 = vcombine.low %v5303_v62, %v5303_v62  ;;  %v6133_v62 = vld [vmem:[%s8257_s3 + $0x1ec] ss:$8 sps:$4 sm:$0xff]  }
 0x12f   : > { %1356 = vmatprep.subr.bf16.mxu0 %v6028_v11  ;;  %v1624_v11 = vand.u32 %v5315_v5, %v6796_v42  ;;  %v5399_v5 = vld [vmem:[%s8257_s3 + $0x470] sm:$0x11] }
 0x130   : > { %671 = vmatpush1.bf16.msra.mxu1 %v6023_v12  ;;  %v799_v12 = vand.u32 %v5170_v7, %v6796_v42  ;;  %v5243_v7 = vcombine.high %v5231_v0, %v5231_v0 }
 0x131   : > { %672 = vmatprep.subr.bf16.mxu1 %v6031_v13  ;;  %v6081_v13 = vld [vmem:[%s8257_s3 + $0x10c] ss:$8 sps:$4 sm:$0xff]  }
 0x132   : > { %1357 = vmatpush1.bf16.msra.mxu0 %v6026_v14  ;;  %v1621_v14 = vand.u32 %v5314_v10, %v6796_v42  ;;  %v5411_v10 = vcombine.high %v5399_v5, %v5399_v5 }
 0x133   : > { %1358 = vmatprep.subr.bf16.mxu0 %v6034_v17  ;;  %v739_v17 = vrot.slane %v6820_v3, 1 }
 0x134   : > { %673 = vmatpush1.bf16.msra.mxu1 %v6029_v18  ;;  %v6087_v18 = vld [vmem:[%s8257_s3 + $0x11c] ss:$8 sps:$4 sm:$0xff]  }
 0x135   : > { %674 = vmatprep.subr.bf16.mxu1 %v6037_v21  ;;  %v6090_v21 = vld [vmem:[%s8257_s3 + $0x384] ss:$8 sps:$4 sm:$0xff]  }
 0x136   : > { %1359 = vmatpush1.bf16.msra.mxu0 %v6032_v25  ;;  %v6096_v25 = vld [vmem:[%s8257_s3 + $0x394] ss:$8 sps:$4 sm:$0xff]  }
 0x137   : > { %1360 = vmatprep.subr.bf16.mxu0 %v6040_v28  ;;  %v6094_v28 = vld [vmem:[%s8257_s3 + $0x390] ss:$8 sps:$4 sm:$0xff]  }
 0x138   : > { %675 = vmatpush1.bf16.msra.mxu1 %v6035_v33  ;;  %v6105_v33 = vld [vmem:[%s8257_s3 + $0x14c] ss:$8 sps:$4 sm:$0xff]  }
 0x139   : > { %676 = vmatprep.subr.bf16.mxu1 %v664_v35  ;;  %v6100_v35 = vld [vmem:[%s8257_s3 + $0x3a0] ss:$8 sps:$4 sm:$0xff]  }
 0x13a   : > { %1361 = vmatpush1.bf16.msra.mxu0 %v6038_v37  ;;  %v5363_v37 = vcombine.high %v5351_v32, %v5351_v32 }
 0x13b   : > { %1362 = vmatprep.subr.bf16.mxu0 %v1350_v39  ;;  %v5194_v39 = vcombine.low %v5183_v29, %v5183_v29  ;;  %v6156_v29 = vld [vmem:[%s8257_s3 + $0x4e0] ss:$8 sps:$4 sm:$0xff]  }
 0x13c   : > { %677 = vmatpush1.bf16.msra.mxu1 %v661_v41  ;;  %v939_v41 = vand.u32 %v5195_v34, %v6796_v42  ;;  %v5279_v34 = vld [vmem:[%s8257_s3 + $0x2b8] sm:$0x11] }
 0x13d   : > { %804 = vmatprep.subr.bf16.mxu1 %v6047_v43  ;;  %v6106_v43 = vld [vmem:[%s8257_s3 + $0x3b0] ss:$8 sps:$4 sm:$0xff]  }
 0x13e   : > { %1363 = vmatpush1.bf16.msra.mxu0 %v1347_v44  ;;  %v5362_v44 = vcombine.low %v5351_v32, %v5351_v32  ;;  %v6167_v32 = vld [vmem:[%s8257_s3 + $0x29c] ss:$8 sps:$4 sm:$0xff]  }
 0x13f   : > { %5148 = vmatmul.mubr.msk.bf16.vlgmr.msra.gmra.mrb[4].mxu1 %vm515_vm1, %v6901_v47  ;;  %1626 = vmatprep.subr.bf16.mxu0 %v6050_v45  ;;  %v1898_v45 = vand.u32 %v5363_v37, %v6796_v42  ;;  %v5447_v37 = vld [vmem:[%s8257_s3 + $0x520] sm:$0x11] }
 0x140   : > { %805 = vmatpush1.bf16.msra.mxu1 %v6045_v46  ;;  %836 = vmatprep.mubr.bf16.mxu1 %v6601_v1  ;;  %v936_v46 = vand.u32 %v5194_v39, %v6796_v42  ;;  %v5291_v39 = vcombine.high %v5279_v34, %v5279_v34 }
 0x141   : > { %5268 = vmatmul.mubr.msk.bf16.vlgmr.msra.gmra.mrb[12].mxu0 %vm515_vm1, %v1287_v50  ;;  %806 = vmatprep.subr.bf16.mxu1 %v6053_v48  ;;  %v6115_v48 = vld [vmem:[%s8257_s3 + $0x1bc] ss:$8 sps:$4 sm:$0xff]  }
 0x142   : > { %1627 = vmatpush1.bf16.msra.mxu0 %v6048_v49  ;;  %1658 = vmatprep.mubr.bf16.mxu0 %v6601_v1  ;;  %v1895_v49 = vand.u32 %v5362_v44, %v6796_v42  ;;  %v6118_v50 = vld [vmem:[%s8257_s3 + $0x424] ss:$8 sps:$4 sm:$0xff]   ;;  %v5459_v44 = vcombine.high %v5447_v37, %v5447_v37 }
 0x143   : > { %1628 = vmatprep.subr.bf16.mxu0 %v6056_v51  ;;  %v6113_v51 = vld [vmem:[%s8257_s3 + $0x1b8] ss:$8 sps:$4 sm:$0xff]  }
 0x144   : > { %807 = vmatpush1.bf16.msra.mxu1 %v6051_v52  ;;  %v876_v52 = vrot.slane %v6901_v47, 1 }
 0x145   : > { %808 = vmatprep.subr.bf16.mxu1 %v6059_v53  ;;  %v6121_v53 = vld [vmem:[%s8257_s3 + $0x1cc] ss:$8 sps:$4 sm:$0xff]  }
 0x146   : > { %1629 = vmatpush1.bf16.msra.mxu0 %v6054_v54  ;;  %v6116_v54 = vld [vmem:[%s8257_s3 + $0x420] ss:$8 sps:$4 sm:$0xff]  }
 0x147   : > { %1630 = vmatprep.subr.bf16.mxu0 %v6062_v55  ;;  %v1835_v55 = vrot.slane %v6820_v3, 5 }
 0x148   : > { %809 = vmatpush1.bf16.msra.mxu1 %v6057_v56  ;;  %v6124_v56 = vld [vmem:[%s8257_s3 + $0x434] ss:$8 sps:$4 sm:$0xff]  }
 0x149   : > { %810 = vmatprep.subr.bf16.mxu1 %v6065_v57  ;;  %v6119_v57 = vld [vmem:[%s8257_s3 + $0x1c8] ss:$8 sps:$4 sm:$0xff]  }
 0x14a   : > { %1631 = vmatpush1.bf16.msra.mxu0 %v6060_v58  ;;  %v6127_v58 = vld [vmem:[%s8257_s3 + $0x1dc] ss:$8 sps:$4 sm:$0xff]  }
 0x14b   : > { %1632 = vmatprep.subr.bf16.mxu0 %v6068_v60  ;;  %v6130_v60 = vld [vmem:[%s8257_s3 + $0x444] ss:$8 sps:$4 sm:$0xff]  }
 0x14c   : > { %811 = vmatpush1.bf16.msra.mxu1 %v6063_v61  ;;  %v6125_v61 = vld [vmem:[%s8257_s3 + $0x1d8] ss:$8 sps:$4 sm:$0xff]  }
 0x14d   : > { %812 = vmatprep.subr.bf16.mxu1 %v6071_v63  ;;  %v6128_v63 = vld [vmem:[%s8257_s3 + $0x440] ss:$8 sps:$4 sm:$0xff]  }
 0x14e   : > { %1633 = vmatpush1.bf16.msra.mxu0 %v6066_v2  ;;  %v6136_v2 = vld [vmem:[%s8257_s3 + $0x454] ss:$8 sps:$4 sm:$0xff]  }
 0x14f   : > { %1634 = vmatprep.subr.bf16.mxu0 %v6074_v4  ;;  %v6131_v4 = vld [vmem:[%s8257_s3 + $0x1e8] ss:$8 sps:$4 sm:$0xff]  }
 0x150   : > { %813 = vmatpush1.bf16.msra.mxu1 %v6069_v6  ;;  %v6139_v6 = vld [vmem:[%s8257_s3 + $0x1fc] ss:$8 sps:$4 sm:$0xff]  }
 0x151   : > { %814 = vmatprep.subr.bf16.mxu1 %v802_v8  ;;  %v6134_v8 = vld [vmem:[%s8257_s3 + $0x450] ss:$8 sps:$4 sm:$0xff]  }
 0x152   : > { %1635 = vmatpush1.bf16.msra.mxu0 %v6072_v9  ;;  %v6142_v9 = vld [vmem:[%s8257_s3 + $0x464] ss:$8 sps:$4 sm:$0xff]  }
 0x153   : > { %1636 = vmatprep.subr.bf16.mxu0 %v1624_v11  ;;  %v6137_v11 = vld [vmem:[%s8257_s3 + $0x1f8] ss:$8 sps:$4 sm:$0xff]  }
 0x154   : > { %815 = vmatpush1.bf16.msra.mxu1 %v799_v12  ;;  %v5242_v12 = vcombine.low %v5231_v0, %v5231_v0  ;;  %v6198_v0 = vld [vmem:[%s8257_s3 + $0x5a4] ss:$8 sps:$4 sm:$0xff]  }
 0x155   : > { %941 = vmatprep.subr.bf16.mxu1 %v6081_v13  ;;  %v1213_v13 = vand.u32 %v5243_v7, %v6796_v42  ;;  %v6204_v7 = vld [vmem:[%s8257_s3 + $0x5b4] ss:$8 sps:$4 sm:$0xff]  }
 0x156   : > { %1637 = vmatpush1.bf16.msra.mxu0 %v1621_v14  ;;  %v6140_v14 = vld [vmem:[%s8257_s3 + $0x460] ss:$8 sps:$4 sm:$0xff]  }
 0x157   : > { %5172 = vmatmul.mubr.msk.bf16.vlgmr.msra.gmra.mrb[8].mxu1 %vm515_vm1, %v739_v17  ;;  %1900 = vmatprep.subr.bf16.mxu0 %v6084_v15  ;;  %v5410_v15 = vcombine.low %v5399_v5, %v5399_v5  ;;  %v1210_v17 = vand.u32 %v5242_v12, %v6796_v42  ;;  %v6196_v5 = vld [vmem:[%s8257_s3 + $0x5a0] ss:$8 sps:$4 sm:$0xff]   ;;  %v6202_v12 = vld [vmem:[%s8257_s3 + $0x5b0] ss:$8 sps:$4 sm:$0xff]  }
 0x158   : > { %942 = vmatpush1.bf16.msra.mxu1 %v6079_v16  ;;  %973 = vmatprep.mubr.bf16.mxu1 %v6601_v1  ;;  %v2172_v16 = vand.u32 %v5411_v10, %v6796_v42  ;;  %v6207_v10 = vld [vmem:[%s8257_s3 + $0x35c] ss:$8 sps:$4 sm:$0xff]  }
 0x159   : > { %5316 = vmatmul.mubr.msk.bf16.vlgmr.msra.gmra.mrb[16].mxu0 %vm515_vm1, %v1561_v20  ;;  %943 = vmatprep.subr.bf16.mxu1 %v6087_v18  ;;  %v6149_v18 = vld [vmem:[%s8257_s3 + $0x26c] ss:$8 sps:$4 sm:$0xff]  }
 0x15a   : > { %1901 = vmatpush1.bf16.msra.mxu0 %v6082_v19  ;;  %1932 = vmatprep.mubr.bf16.mxu0 %v6601_v1  ;;  %v2169_v19 = vand.u32 %v5410_v15, %v6796_v42  ;;  %v6152_v20 = vld [vmem:[%s8257_s3 + $0x4d4] ss:$8 sps:$4 sm:$0xff]   ;;  %v6205_v15 = vld [vmem:[%s8257_s3 + $0x358] ss:$8 sps:$4 sm:$0xff]  }
 0x15b   : > { %1902 = vmatprep.subr.bf16.mxu0 %v6090_v21  ;;  %v6147_v21 = vld [vmem:[%s8257_s3 + $0x268] ss:$8 sps:$4 sm:$0xff]  }
 0x15c   : > { %944 = vmatpush1.bf16.msra.mxu1 %v6085_v22  ;;  %v1150_v22 = vrot.slane %v6901_v47, 2 }
 0x15d   : > { %945 = vmatprep.subr.bf16.mxu1 %v6093_v23  ;;  %v6155_v23 = vld [vmem:[%s8257_s3 + $0x27c] ss:$8 sps:$4 sm:$0xff]  }
 0x15e   : > { %1903 = vmatpush1.bf16.msra.mxu0 %v6088_v24  ;;  %v6150_v24 = vld [vmem:[%s8257_s3 + $0x4d0] ss:$8 sps:$4 sm:$0xff]  }
 0x15f   : > { %1904 = vmatprep.subr.bf16.mxu0 %v6096_v25  ;;  %v2109_v25 = vrot.slane %v6820_v3, 6 }
 0x160   : > { %946 = vmatpush1.bf16.msra.mxu1 %v6091_v26  ;;  %v6158_v26 = vld [vmem:[%s8257_s3 + $0x4e4] ss:$8 sps:$4 sm:$0xff]  }
 0x161   : > { %947 = vmatprep.subr.bf16.mxu1 %v6099_v27  ;;  %v6153_v27 = vld [vmem:[%s8257_s3 + $0x278] ss:$8 sps:$4 sm:$0xff]  }
 0x162   : > { %1905 = vmatpush1.bf16.msra.mxu0 %v6094_v28  ;;  %v6161_v28 = vld [vmem:[%s8257_s3 + $0x28c] ss:$8 sps:$4 sm:$0xff]  }
 0x163   : > { %1906 = vmatprep.subr.bf16.mxu0 %v6102_v30  ;;  %v6164_v30 = vld [vmem:[%s8257_s3 + $0x4f4] ss:$8 sps:$4 sm:$0xff]  }
 0x164   : > { %948 = vmatpush1.bf16.msra.mxu1 %v6097_v31  ;;  %v6159_v31 = vld [vmem:[%s8257_s3 + $0x288] ss:$8 sps:$4 sm:$0xff]  }
 0x165   : > { %949 = vmatprep.subr.bf16.mxu1 %v6105_v33  ;;  %v6162_v33 = vld [vmem:[%s8257_s3 + $0x4f0] ss:$8 sps:$4 sm:$0xff]  }
 0x166   : > { %1907 = vmatpush1.bf16.msra.mxu0 %v6100_v35  ;;  %v6170_v35 = vld [vmem:[%s8257_s3 + $0x504] ss:$8 sps:$4 sm:$0xff]  }
 0x167   : > { %1908 = vmatprep.subr.bf16.mxu0 %v6108_v36  ;;  %v6165_v36 = vld [vmem:[%s8257_s3 + $0x298] ss:$8 sps:$4 sm:$0xff]  }
 0x168   : > { %950 = vmatpush1.bf16.msra.mxu1 %v6103_v38  ;;  %v6173_v38 = vld [vmem:[%s8257_s3 + $0x2ac] ss:$8 sps:$4 sm:$0xff]  }
 0x169   : > { %951 = vmatprep.subr.bf16.mxu1 %v939_v41  ;;  %v6168_v41 = vld [vmem:[%s8257_s3 + $0x500] ss:$8 sps:$4 sm:$0xff]  }
 0x16a   : > { %1909 = vmatpush1.bf16.msra.mxu0 %v6106_v43  ;;  %v6176_v43 = vld [vmem:[%s8257_s3 + $0x514] ss:$8 sps:$4 sm:$0xff]  }
 0x16b   : > { %1910 = vmatprep.subr.bf16.mxu0 %v1898_v45  ;;  %v6171_v45 = vld [vmem:[%s8257_s3 + $0x2a8] ss:$8 sps:$4 sm:$0xff]  }
 0x16c   : > { %952 = vmatpush1.bf16.msra.mxu1 %v936_v46  ;;  %v5290_v46 = vcombine.low %v5279_v34, %v5279_v34  ;;  %v6227_v34 = vld [vmem:[%s8257_s3 + $0x3e8] ss:$8 sps:$4 sm:$0xff]  }
 0x16d   : > { %1215 = vmatprep.subr.bf16.mxu1 %v6115_v48  ;;  %v1487_v48 = vand.u32 %v5291_v39, %v6796_v42  ;;  %v6233_v39 = vld [vmem:[%s8257_s3 + $0x3f8] ss:$8 sps:$4 sm:$0xff]  }
 0x16e   : > { %1911 = vmatpush1.bf16.msra.mxu0 %v1895_v49  ;;  %v6174_v49 = vld [vmem:[%s8257_s3 + $0x510] ss:$8 sps:$4 sm:$0xff]  }
 0x16f   : > { %5196 = vmatmul.mubr.msk.bf16.vlgmr.msra.gmra.mrb[12].mxu1 %vm515_vm1, %v876_v52  ;;  %2174 = vmatprep.subr.bf16.mxu0 %v6118_v50  ;;  %v5458_v50 = vcombine.low %v5447_v37, %v5447_v37  ;;  %v1484_v52 = vand.u32 %v5290_v46, %v6796_v42  ;;  %v5375_v37 = vld [vmem:[%s8257_s3 + $0x418] sm:$0x11] }
 0x170   : > { %1216 = vmatpush1.bf16.msra.mxu1 %v6113_v51  ;;  %1247 = vmatprep.mubr.bf16.mxu1 %v6601_v1  ;;  %v2446_v51 = vand.u32 %v5459_v44, %v6796_v42  ;;  %v5387_v44 = vcombine.high %v5375_v37, %v5375_v37  ;;  %v6244_v46 = vld [vmem:[%s8257_s3 + $0x674] ss:$8 sps:$4 sm:$0xff]  }
 0x171   : > { %5364 = vmatmul.mubr.msk.bf16.vlgmr.msra.gmra.mrb[20].mxu0 %vm515_vm1, %v1835_v55  ;;  %1217 = vmatprep.subr.bf16.mxu1 %v6121_v53  ;;  %v6183_v53 = vld [vmem:[%s8257_s3 + $0x31c] ss:$8 sps:$4 sm:$0xff]  }
 0x172   : > { %2175 = vmatpush1.bf16.msra.mxu0 %v6116_v54  ;;  %2206 = vmatprep.mubr.bf16.mxu0 %v6601_v1  ;;  %v2443_v54 = vand.u32 %v5458_v50, %v6796_v42  ;;  %v6186_v55 = vld [vmem:[%s8257_s3 + $0x584] ss:$8 sps:$4 sm:$0xff]   ;;  %v5386_v50 = vcombine.low %v5375_v37, %v5375_v37  ;;  %v6300_v37 = vld [vmem:[%s8257_s3 + $0x7b4] ss:$8 sps:$4 sm:$0xff]  }
 0x173   : > { %2176 = vmatprep.subr.bf16.mxu0 %v6124_v56  ;;  %v6181_v56 = vld [vmem:[%s8257_s3 + $0x318] ss:$8 sps:$4 sm:$0xff]  }
 0x174   : > { %1218 = vmatpush1.bf16.msra.mxu1 %v6119_v57  ;;  %v1424_v57 = vrot.slane %v6901_v47, 3 }
 0x175   : > { %1219 = vmatprep.subr.bf16.mxu1 %v6127_v58  ;;  %v6189_v58 = vld [vmem:[%s8257_s3 + $0x32c] ss:$8 sps:$4 sm:$0xff]  }
 0x176   : > { %2177 = vmatpush1.bf16.msra.mxu0 %v6122_v59  ;;  %v6184_v59 = vld [vmem:[%s8257_s3 + $0x580] ss:$8 sps:$4 sm:$0xff]  }
 0x177   : > { %2178 = vmatprep.subr.bf16.mxu0 %v6130_v60  ;;  %v2383_v60 = vrot.slane %v6820_v3, 7  ;;  %v6190_v3 = vld [vmem:[%s8257_s3 + $0x590] ss:$8 sps:$4 sm:$0xff]  }
 0x178   : > { %1220 = vmatpush1.bf16.msra.mxu1 %v6125_v61  ;;  %v6192_v61 = vld [vmem:[%s8257_s3 + $0x594] ss:$8 sps:$4 sm:$0xff]  }
 0x179   : > { %1221 = vmatprep.subr.bf16.mxu1 %v6133_v62  ;;  %v6187_v62 = vld [vmem:[%s8257_s3 + $0x328] ss:$8 sps:$4 sm:$0xff]  }
 0x17a   : > { %2179 = vmatpush1.bf16.msra.mxu0 %v6128_v63  ;;  %v6195_v63 = vld [vmem:[%s8257_s3 + $0x33c] ss:$8 sps:$4 sm:$0xff]  }
 0x17b   : > { %2180 = vmatprep.subr.bf16.mxu0 %v6136_v2  ;;  %v6193_v2 = vld [vmem:[%s8257_s3 + $0x338] ss:$8 sps:$4 sm:$0xff]  }
 0x17c   : > { %1222 = vmatpush1.bf16.msra.mxu1 %v6131_v4  ;;  %v6201_v4 = vld [vmem:[%s8257_s3 + $0x34c] ss:$8 sps:$4 sm:$0xff]  }
 0x17d   : > { %1223 = vmatprep.subr.bf16.mxu1 %v6139_v6  ;;  %v5327_v6 = vld [vmem:[%s8257_s3 + $0x368] sm:$0x11] }
 0x17e   : > { %2181 = vmatpush1.bf16.msra.mxu0 %v6134_v8  ;;  %v6199_v8 = vld [vmem:[%s8257_s3 + $0x348] ss:$8 sps:$4 sm:$0xff]  }
 0x17f   : > { %2182 = vmatprep.subr.bf16.mxu0 %v6142_v9  ;;  %v5495_v9 = vld [vmem:[%s8257_s3 + $0x5d0] sm:$0x11] }
 0x180   : > { %1224 = vmatpush1.bf16.msra.mxu1 %v6137_v11  ;;  %v5339_v11 = vcombine.high %v5327_v6, %v5327_v6 }
 0x181   : > { %1225 = vmatprep.subr.bf16.mxu1 %v1213_v13  ;;  %v6210_v13 = vld [vmem:[%s8257_s3 + $0x5c4] ss:$8 sps:$4 sm:$0xff]  }
 0x182   : > { %2183 = vmatpush1.bf16.msra.mxu0 %v6140_v14  ;;  %v5507_v14 = vcombine.high %v5495_v9, %v5495_v9 }
 0x183   : > { %2184 = vmatprep.subr.bf16.mxu0 %v2172_v16  ;;  %v5338_v16 = vcombine.low %v5327_v6, %v5327_v6  ;;  %v6261_v6 = vld [vmem:[%s8257_s3 + $0x498] ss:$8 sps:$4 sm:$0xff]  }
 0x184   : > { %1226 = vmatpush1.bf16.msra.mxu1 %v1210_v17  ;;  %v1761_v17 = vand.u32 %v5339_v11, %v6796_v42  ;;  %v6267_v11 = vld [vmem:[%s8257_s3 + $0x4a8] ss:$8 sps:$4 sm:$0xff]  }
 0x185   : > { %1489 = vmatprep.subr.bf16.mxu1 %v6149_v18  ;;  %v6208_v18 = vld [vmem:[%s8257_s3 + $0x5c0] ss:$8 sps:$4 sm:$0xff]  }
 0x186   : > { %2185 = vmatpush1.bf16.msra.mxu0 %v2169_v19  ;;  %v5506_v19 = vcombine.low %v5495_v9, %v5495_v9  ;;  %v5423_v9 = vld [vmem:[%s8257_s3 + $0x4c8] sm:$0x11] }
 0x187   : > { %5244 = vmatmul.mubr.msk.bf16.vlgmr.msra.gmra.mrb[16].mxu1 %vm515_vm1, %v1150_v22  ;;  %2448 = vmatprep.subr.bf16.mxu0 %v6152_v20  ;;  %v2719_v20 = vand.u32 %v5507_v14, %v6796_v42  ;;  %v6217_v22 = vld [vmem:[%s8257_s3 + $0x3cc] ss:$8 sps:$4 sm:$0xff]   ;;  %v5435_v14 = vcombine.high %v5423_v9, %v5423_v9 }
 0x188   : > { %1490 = vmatpush1.bf16.msra.mxu1 %v6147_v21  ;;  %1521 = vmatprep.mubr.bf16.mxu1 %v6601_v1  ;;  %v1758_v21 = vand.u32 %v5338_v16, %v6796_v42  ;;  %v6278_v16 = vld [vmem:[%s8257_s3 + $0x724] ss:$8 sps:$4 sm:$0xff]  }
 0x189   : > { %5412 = vmatmul.mubr.msk.bf16.vlgmr.msra.gmra.mrb[24].mxu0 %vm515_vm1, %v2109_v25  ;;  %1491 = vmatprep.subr.bf16.mxu1 %v6155_v23  ;;  %v2716_v23 = vand.u32 %v5506_v19, %v6796_v42  ;;  %v6215_v25 = vld [vmem:[%s8257_s3 + $0x3c8] ss:$8 sps:$4 sm:$0xff]   ;;  %v5434_v19 = vcombine.low %v5423_v9, %v5423_v9  ;;  %v3480_v9 = vrot.slane %v6887_v40, 3 }
 0x18a   : > { %2449 = vmatpush1.bf16.msra.mxu0 %v6150_v24  ;;  %2480 = vmatprep.mubr.bf16.mxu0 %v6601_v1  ;;  %v6220_v24 = vld [vmem:[%s8257_s3 + $0x634] ss:$8 sps:$4 sm:$0xff]  }
 0x18b   : > { %2450 = vmatprep.subr.bf16.mxu0 %v6158_v26  ;;  %v1698_v26 = vrot.slane %v6901_v47, 4 }
 0x18c   : > { %1492 = vmatpush1.bf16.msra.mxu1 %v6153_v27  ;;  %v6223_v27 = vld [vmem:[%s8257_s3 + $0x3dc] ss:$8 sps:$4 sm:$0xff]  }
 0x18d   : > { %1493 = vmatprep.subr.bf16.mxu1 %v6161_v28  ;;  %v6218_v28 = vld [vmem:[%s8257_s3 + $0x630] ss:$8 sps:$4 sm:$0xff]  }
 0x18e   : > { %2451 = vmatpush1.bf16.msra.mxu0 %v6156_v29  ;;  %v6226_v29 = vld [vmem:[%s8257_s3 + $0x644] ss:$8 sps:$4 sm:$0xff]  }
 0x18f   : > { %2452 = vmatprep.subr.bf16.mxu0 %v6164_v30  ;;  %v6221_v30 = vld [vmem:[%s8257_s3 + $0x3d8] ss:$8 sps:$4 sm:$0xff]  }
 0x190   : > { %1494 = vmatpush1.bf16.msra.mxu1 %v6159_v31  ;;  %v6229_v31 = vld [vmem:[%s8257_s3 + $0x3ec] ss:$8 sps:$4 sm:$0xff]  }
 0x191   : > { %1495 = vmatprep.subr.bf16.mxu1 %v6167_v32  ;;  %v6224_v32 = vld [vmem:[%s8257_s3 + $0x640] ss:$8 sps:$4 sm:$0xff]  }
 0x192   : > { %2453 = vmatpush1.bf16.msra.mxu0 %v6162_v33  ;;  %v6232_v33 = vld [vmem:[%s8257_s3 + $0x654] ss:$8 sps:$4 sm:$0xff]  }
 0x193   : > { %2454 = vmatprep.subr.bf16.mxu0 %v6170_v35  ;;  %v6235_v35 = vld [vmem:[%s8257_s3 + $0x3fc] ss:$8 sps:$4 sm:$0xff]  }
 0x194   : > { %1496 = vmatpush1.bf16.msra.mxu1 %v6165_v36  ;;  %v6230_v36 = vld [vmem:[%s8257_s3 + $0x650] ss:$8 sps:$4 sm:$0xff]  }
 0x195   : > { %1497 = vmatprep.subr.bf16.mxu1 %v6173_v38  ;;  %v6238_v38 = vld [vmem:[%s8257_s3 + $0x664] ss:$8 sps:$4 sm:$0xff]  }
 0x196   : > { %2455 = vmatpush1.bf16.msra.mxu0 %v6168_v41  ;;  %v5543_v41 = vld [vmem:[%s8257_s3 + $0x680] sm:$0x11] }
 0x197   : > { %2456 = vmatprep.subr.bf16.mxu0 %v6176_v43  ;;  %v6241_v43 = vld [vmem:[%s8257_s3 + $0x40c] ss:$8 sps:$4 sm:$0xff]  }
 0x198   : > { %1498 = vmatpush1.bf16.msra.mxu1 %v6171_v45  ;;  %v6236_v45 = vld [vmem:[%s8257_s3 + $0x660] ss:$8 sps:$4 sm:$0xff]  }
 0x199   : > { %1499 = vmatprep.subr.bf16.mxu1 %v1487_v48  ;;  %v5555_v48 = vcombine.high %v5543_v41, %v5543_v41 }
 0x19a   : > { %2457 = vmatpush1.bf16.msra.mxu0 %v6174_v49  ;;  %v6239_v49 = vld [vmem:[%s8257_s3 + $0x408] ss:$8 sps:$4 sm:$0xff]  }
 0x19b   : > { %2458 = vmatprep.subr.bf16.mxu0 %v2446_v51  ;;  %v2035_v51 = vand.u32 %v5387_v44, %v6796_v42  ;;  %v6306_v44 = vld [vmem:[%s8257_s3 + $0x7c4] ss:$8 sps:$4 sm:$0xff]  }
 0x19c   : > { %1500 = vmatpush1.bf16.msra.mxu1 %v1484_v52  ;;  %v6242_v52 = vld [vmem:[%s8257_s3 + $0x670] ss:$8 sps:$4 sm:$0xff]  }
 0x19d   : > { %1763 = vmatprep.subr.bf16.mxu1 %v6183_v53  ;;  %v5554_v53 = vcombine.low %v5543_v41, %v5543_v41  ;;  %v6298_v41 = vld [vmem:[%s8257_s3 + $0x7b0] ss:$8 sps:$4 sm:$0xff]  }
 0x19e   : > { %2459 = vmatpush1.bf16.msra.mxu0 %v2443_v54  ;;  %v2995_v54 = vand.u32 %v5555_v48, %v6796_v42  ;;  %v6309_v48 = vld [vmem:[%s8257_s3 + $0x56c] ss:$8 sps:$4 sm:$0xff]  }
 0x19f   : > { %5292 = vmatmul.mubr.msk.bf16.vlgmr.msra.gmra.mrb[20].mxu1 %vm515_vm1, %v1424_v57  ;;  %2721 = vmatprep.subr.bf16.mxu0 %v6186_v55  ;;  %v2032_v55 = vand.u32 %v5386_v50, %v6796_v42  ;;  %v2992_v57 = vand.u32 %v5554_v53, %v6796_v42  ;;  %v6304_v50 = vld [vmem:[%s8257_s3 + $0x7c0] ss:$8 sps:$4 sm:$0xff]  }
 0x1a0   : > { %1764 = vmatpush1.bf16.msra.mxu1 %v6181_v56  ;;  %1795 = vmatprep.mubr.bf16.mxu1 %v6601_v1  ;;  %v6251_v56 = vld [vmem:[%s8257_s3 + $0x47c] ss:$8 sps:$4 sm:$0xff]   ;;  %v6307_v53 = vld [vmem:[%s8257_s3 + $0x568] ss:$8 sps:$4 sm:$0xff]  }
 0x1a1   : > { %5460 = vmatmul.mubr.msk.bf16.vlgmr.msra.gmra.mrb[28].mxu0 %vm515_vm1, %v2383_v60  ;;  %1765 = vmatprep.subr.bf16.mxu1 %v6189_v58  ;;  %v6254_v58 = vld [vmem:[%s8257_s3 + $0x6e4] ss:$8 sps:$4 sm:$0xff]   ;;  %v1972_v60 = vrot.slane %v6901_v47, 5 }
 0x1a2   : > { %2722 = vmatpush1.bf16.msra.mxu0 %v6184_v59  ;;  %2753 = vmatprep.mubr.bf16.mxu0 %v6601_v1  ;;  %v6249_v59 = vld [vmem:[%s8257_s3 + $0x478] ss:$8 sps:$4 sm:$0xff]  }
 0x1a3   : > { %2723 = vmatprep.subr.bf16.mxu0 %v6192_v61  ;;  %v2932_v61 = vrot.slane %v6887_v40, 1 }
 0x1a4   : > { %1766 = vmatpush1.bf16.msra.mxu1 %v6187_v62  ;;  %v6257_v62 = vld [vmem:[%s8257_s3 + $0x48c] ss:$8 sps:$4 sm:$0xff]  }
 0x1a5   : > { %1767 = vmatprep.subr.bf16.mxu1 %v6195_v63  ;;  %v6252_v63 = vld [vmem:[%s8257_s3 + $0x6e0] ss:$8 sps:$4 sm:$0xff]  }
 0x1a6   : > { %2724 = vmatpush1.bf16.msra.mxu0 %v6190_v3  ;;  %v6260_v3 = vld [vmem:[%s8257_s3 + $0x6f4] ss:$8 sps:$4 sm:$0xff]  }
 0x1a7   : > { %2725 = vmatprep.subr.bf16.mxu0 %v6198_v0  ;;  %v6255_v0 = vld [vmem:[%s8257_s3 + $0x488] ss:$8 sps:$4 sm:$0xff]  }
 0x1a8   : > { %1768 = vmatpush1.bf16.msra.mxu1 %v6193_v2  ;;  %v6263_v2 = vld [vmem:[%s8257_s3 + $0x49c] ss:$8 sps:$4 sm:$0xff]  }
 0x1a9   : > { %1769 = vmatprep.subr.bf16.mxu1 %v6201_v4  ;;  %v6258_v4 = vld [vmem:[%s8257_s3 + $0x6f0] ss:$8 sps:$4 sm:$0xff]  }
 0x1aa   : > { %2726 = vmatpush1.bf16.msra.mxu0 %v6196_v5  ;;  %v6266_v5 = vld [vmem:[%s8257_s3 + $0x704] ss:$8 sps:$4 sm:$0xff]  }
 0x1ab   : > { %2727 = vmatprep.subr.bf16.mxu0 %v6204_v7  ;;  %v6269_v7 = vld [vmem:[%s8257_s3 + $0x4ac] ss:$8 sps:$4 sm:$0xff]  }
 0x1ac   : > { %1770 = vmatpush1.bf16.msra.mxu1 %v6199_v8  ;;  %v6264_v8 = vld [vmem:[%s8257_s3 + $0x700] ss:$8 sps:$4 sm:$0xff]  }
 0x1ad   : > { %1771 = vmatprep.subr.bf16.mxu1 %v6207_v10  ;;  %v6272_v10 = vld [vmem:[%s8257_s3 + $0x714] ss:$8 sps:$4 sm:$0xff]  }
 0x1ae   : > { %2728 = vmatpush1.bf16.msra.mxu0 %v6202_v12  ;;  %v5591_v12 = vld [vmem:[%s8257_s3 + $0x730] sm:$0x11] }
 0x1af   : > { %2729 = vmatprep.subr.bf16.mxu0 %v6210_v13  ;;  %v6275_v13 = vld [vmem:[%s8257_s3 + $0x4bc] ss:$8 sps:$4 sm:$0xff]  }
 0x1b0   : > { %1772 = vmatpush1.bf16.msra.mxu1 %v6205_v15  ;;  %v6270_v15 = vld [vmem:[%s8257_s3 + $0x710] ss:$8 sps:$4 sm:$0xff]  }
 0x1b1   : > { %1773 = vmatprep.subr.bf16.mxu1 %v1761_v17  ;;  %v5603_v17 = vcombine.high %v5591_v12, %v5591_v12 }
 0x1b2   : > { %2730 = vmatpush1.bf16.msra.mxu0 %v6208_v18  ;;  %v6273_v18 = vld [vmem:[%s8257_s3 + $0x4b8] ss:$8 sps:$4 sm:$0xff]  }
 0x1b3   : > { %2731 = vmatprep.subr.bf16.mxu0 %v2719_v20  ;;  %v2309_v20 = vand.u32 %v5435_v14, %v6796_v42 }
 0x1b4   : > { %1774 = vmatpush1.bf16.msra.mxu1 %v1758_v21  ;;  %v6276_v21 = vld [vmem:[%s8257_s3 + $0x720] ss:$8 sps:$4 sm:$0xff]  }
 0x1b5   : > { %2037 = vmatprep.subr.bf16.mxu1 %v6217_v22  ;;  %v5602_v22 = vcombine.low %v5591_v12, %v5591_v12 }
 0x1b6   : > { %2732 = vmatpush1.bf16.msra.mxu0 %v2716_v23  ;;  %v3269_v23 = vand.u32 %v5603_v17, %v6796_v42  ;;  %v6326_v17 = vld [vmem:[%s8257_s3 + $0x850] ss:$8 sps:$4 sm:$0xff]  }
 0x1b7   : > { %5340 = vmatmul.mubr.msk.bf16.vlgmr.msra.gmra.mrb[24].mxu1 %vm515_vm1, %v1698_v26  ;;  %2997 = vmatprep.subr.bf16.mxu0 %v6220_v24  ;;  %v2306_v24 = vand.u32 %v5434_v19, %v6796_v42  ;;  %v3266_v26 = vand.u32 %v5602_v22, %v6796_v42  ;;  %v6602_v19 = vmov 1966171168   ;;  %v6329_v22 = vld [vmem:[%s8257_s3 + $0x5f8] ss:$8 sps:$4 sm:$0xff]  }
 0x1b8   : > { %2038 = vmatpush1.bf16.msra.mxu1 %v6215_v25  ;;  %2069 = vmatprep.mubr.bf16.mxu1 %v6601_v1  ;;  %v6285_v25 = vld [vmem:[%s8257_s3 + $0x52c] ss:$8 sps:$4 sm:$0xff]  }
 0x1b9   : > { %5508 = vmatmul.mubr.msk.bf16.vlgmr.msra.gmra.mrb[32].mxu0 %vm515_vm1, %v6887_v40  ;;  %2039 = vmatprep.subr.bf16.mxu1 %v6223_v27  ;;  %v6288_v27 = vld [vmem:[%s8257_s3 + $0x794] ss:$8 sps:$4 sm:$0xff]  }
 0x1ba   : > { %2998 = vmatpush1.bf16.msra.mxu0 %v6218_v28  ;;  %3029 = vmatprep.mubr.bf16.mxu0 %v6601_v1  ;;  %v6283_v28 = vld [vmem:[%s8257_s3 + $0x528] ss:$8 sps:$4 sm:$0xff]  }
 0x1bb   : > { %2999 = vmatprep.subr.bf16.mxu0 %v6226_v29  ;;  %v2246_v29 = vrot.slane %v6901_v47, 6 }
 0x1bc   : > { %2040 = vmatpush1.bf16.msra.mxu1 %v6221_v30  ;;  %v3206_v30 = vrot.slane %v6887_v40, 2 }
 0x1bd   : > { %2041 = vmatprep.subr.bf16.mxu1 %v6229_v31  ;;  %v6291_v31 = vld [vmem:[%s8257_s3 + $0x53c] ss:$8 sps:$4 sm:$0xff]  }
 0x1be   : > { %3000 = vmatpush1.bf16.msra.mxu0 %v6224_v32  ;;  %v6286_v32 = vld [vmem:[%s8257_s3 + $0x790] ss:$8 sps:$4 sm:$0xff]  }
 0x1bf   : > { %3001 = vmatprep.subr.bf16.mxu0 %v6232_v33  ;;  %v6294_v33 = vld [vmem:[%s8257_s3 + $0x7a4] ss:$8 sps:$4 sm:$0xff]  }
 0x1c0   : > { %2042 = vmatpush1.bf16.msra.mxu1 %v6227_v34  ;;  %v6289_v34 = vld [vmem:[%s8257_s3 + $0x538] ss:$8 sps:$4 sm:$0xff]  }
 0x1c1   : > { %2043 = vmatprep.subr.bf16.mxu1 %v6235_v35  ;;  %v6297_v35 = vld [vmem:[%s8257_s3 + $0x54c] ss:$8 sps:$4 sm:$0xff]  }
 0x1c2   : > { %3002 = vmatpush1.bf16.msra.mxu0 %v6230_v36  ;;  %v6292_v36 = vld [vmem:[%s8257_s3 + $0x7a0] ss:$8 sps:$4 sm:$0xff]  }
 0x1c3   : > { %3003 = vmatprep.subr.bf16.mxu0 %v6238_v38  ;;  %v6295_v38 = vld [vmem:[%s8257_s3 + $0x548] ss:$8 sps:$4 sm:$0xff]  }
 0x1c4   : > { %2044 = vmatpush1.bf16.msra.mxu1 %v6233_v39  ;;  %v6303_v39 = vld [vmem:[%s8257_s3 + $0x55c] ss:$8 sps:$4 sm:$0xff]  }
 0x1c5   : > { %2045 = vmatprep.subr.bf16.mxu1 %v6241_v43  ;;  %v5471_v43 = vld [vmem:[%s8257_s3 + $0x578] sm:$0x11] }
 0x1c6   : > { %3004 = vmatpush1.bf16.msra.mxu0 %v6236_v45  ;;  %v6301_v45 = vld [vmem:[%s8257_s3 + $0x558] ss:$8 sps:$4 sm:$0xff]  }
 0x1c7   : > { %3005 = vmatprep.subr.bf16.mxu0 %v6244_v46  ;;  %v5639_v46 = vld [vmem:[%s8257_s3 + $0x7e0] sm:$0x11] }
 0x1c8   : > { %2046 = vmatpush1.bf16.msra.mxu1 %v6239_v49  ;;  %v5483_v49 = vcombine.high %v5471_v43, %v5471_v43 }
 0x1c9   : > { %2047 = vmatprep.subr.bf16.mxu1 %v2035_v51  ;;  %v6312_v51 = vld [vmem:[%s8257_s3 + $0x7d4] ss:$8 sps:$4 sm:$0xff]  }
 0x1ca   : > { %3006 = vmatpush1.bf16.msra.mxu0 %v6242_v52  ;;  %v5651_v52 = vcombine.high %v5639_v46, %v5639_v46 }
 0x1cb   : > { %3007 = vmatprep.subr.bf16.mxu0 %v2995_v54  ;;  %v5482_v54 = vcombine.low %v5471_v43, %v5471_v43 }
 0x1cc   : > { %2048 = vmatpush1.bf16.msra.mxu1 %v2032_v55  ;;  %v2583_v55 = vand.u32 %v5483_v49, %v6796_v42 }
 0x1cd   : > { %2311 = vmatprep.subr.bf16.mxu1 %v6251_v56  ;;  %v6310_v56 = vld [vmem:[%s8257_s3 + $0x7d0] ss:$8 sps:$4 sm:$0xff]  }
 0x1ce   : > { %3008 = vmatpush1.bf16.msra.mxu0 %v2992_v57  ;;  %v5650_v57 = vcombine.low %v5639_v46, %v5639_v46 }
 0x1cf   : > { %5388 = vmatmul.mubr.msk.bf16.vlgmr.msra.gmra.mrb[28].mxu1 %vm515_vm1, %v1972_v60  ;;  %3271 = vmatprep.subr.bf16.mxu0 %v6254_v58  ;;  %v3543_v58 = vand.u32 %v5651_v52, %v6796_v42  ;;  %v6319_v60 = vld [vmem:[%s8257_s3 + $0x5dc] ss:$8 sps:$4 sm:$0xff]  }
 0x1d0   : > { %2312 = vmatpush1.bf16.msra.mxu1 %v6249_v59  ;;  %2343 = vmatprep.mubr.bf16.mxu1 %v6601_v1  ;;  %v2580_v59 = vand.u32 %v5482_v54, %v6796_v42  ;;  %v6356_v52 = vld [vmem:[%s8257_s3 + $0x8f4] ss:$8 sps:$4 sm:$0xff]  }
 0x1d1   : > { %5556 = vmatmul.mubr.msk.bf16.vlgmr.msra.gmra.mrb[36].mxu0 %vm515_vm1, %v2932_v61  ;;  %2313 = vmatprep.subr.bf16.mxu1 %v6257_v62  ;;  %v3540_v62 = vand.u32 %v5650_v57, %v6796_v42 }
 0x1d2   : > { %3272 = vmatpush1.bf16.msra.mxu0 %v6252_v63  ;;  %3303 = vmatprep.mubr.bf16.mxu0 %v6601_v1 }
 0x1d3   : > { %3273 = vmatprep.subr.bf16.mxu0 %v6260_v3  ;;  %v6322_v3 = vld [vmem:[%s8257_s3 + $0x844] ss:$8 sps:$4 sm:$0xff]  }
 0x1d4   : > { %2314 = vmatpush1.bf16.msra.mxu1 %v6255_v0 }
 0x1d5   : > { %2315 = vmatprep.subr.bf16.mxu1 %v6263_v2 }
 0x1d6   : > { %3274 = vmatpush1.bf16.msra.mxu0 %v6258_v4 }
 0x1d7   : > { %3275 = vmatprep.subr.bf16.mxu0 %v6266_v5  ;;  %v6317_v5 = vld [vmem:[%s8257_s3 + $0x5d8] ss:$8 sps:$4 sm:$0xff]  }
 0x1d8   : > { %2316 = vmatpush1.bf16.msra.mxu1 %v6261_v6 }
 0x1d9   : > { %2317 = vmatprep.subr.bf16.mxu1 %v6269_v7 }
 0x1da   : > { %3276 = vmatpush1.bf16.msra.mxu0 %v6264_v8  ;;  %v2520_v8 = vrot.slane %v6901_v47, 7  ;;  %v6328_v47 = vld [vmem:[%s8257_s3 + $0x854] ss:$8 sps:$4 sm:$0xff]  }
 0x1db   : > { %3277 = vmatprep.subr.bf16.mxu0 %v6272_v10  ;;  %v6325_v10 = vld [vmem:[%s8257_s3 + $0x5ec] ss:$8 sps:$4 sm:$0xff]  }
 0x1dc   : > { %2318 = vmatpush1.bf16.msra.mxu1 %v6267_v11 }
 0x1dd   : > { %2319 = vmatprep.subr.bf16.mxu1 %v6275_v13  ;;  %v6320_v13 = vld [vmem:[%s8257_s3 + $0x840] ss:$8 sps:$4 sm:$0xff]  }
 0x1de   : > { %3278 = vmatpush1.bf16.msra.mxu0 %v6270_v15  ;;  %v6323_v15 = vld [vmem:[%s8257_s3 + $0x5e8] ss:$8 sps:$4 sm:$0xff]  }
 0x1df   : > { %3279 = vmatprep.subr.bf16.mxu0 %v6278_v16  ;;  %v6331_v16 = vld [vmem:[%s8257_s3 + $0x5fc] ss:$8 sps:$4 sm:$0xff]  }
 0x1e0   : > { %2320 = vmatpush1.bf16.msra.mxu1 %v6273_v18  ;;  %v6334_v18 = vld [vmem:[%s8257_s3 + $0x864] ss:$8 sps:$4 sm:$0xff]  }
 0x1e1   : > { %2321 = vmatprep.subr.bf16.mxu1 %v2309_v20  ;;  %v573_v20 = vunpack.c.l.s4 %v6602_v19  ;;  %v5567_v19 = vld [vmem:[%s8257_s3 + $0x6d8] sm:$0x11] }
 0x1e2   : > { %3280 = vmatpush1.bf16.msra.mxu0 %v6276_v21  ;;  %v575_v21 = vlaneseq }
 0x1e3   : > { %3281 = vmatprep.subr.bf16.mxu0 %v3269_v23  ;;  %v6337_v23 = vld [vmem:[%s8257_s3 + $0x60c] ss:$8 sps:$4 sm:$0xff]  }
 0x1e4   : > { %2322 = vmatpush1.bf16.msra.mxu1 %v2306_v24  ;;  %v6332_v24 = vld [vmem:[%s8257_s3 + $0x860] ss:$8 sps:$4 sm:$0xff]  }
 0x1e5   : > { %2585 = vmatprep.subr.bf16.mxu1 %v6285_v25  ;;  %v5519_v25 = vld [vmem:[%s8257_s3 + $0x628] sm:$0x11] }
 0x1e6   : > { %3282 = vmatpush1.bf16.msra.mxu0 %v3266_v26  ;;  %v6340_v26 = vld [vmem:[%s8257_s3 + $0x874] ss:$8 sps:$4 sm:$0xff]  }
 0x1e7   : > { %5436 = vmatmul.mubr.msk.bf16.vlgmr.msra.gmra.mrb[32].mxu1 %vm515_vm1, %v2246_v29  ;;  %3545 = vmatprep.subr.bf16.mxu0 %v6288_v27  ;;  %v574_v27 = vunpack.c.0.s8 %v573_v20  ;;  %v6335_v29 = vld [vmem:[%s8257_s3 + $0x608] ss:$8 sps:$4 sm:$0xff]   ;;  %v6374_v20 = vld [vmem:[%s8257_s3 + $0x924] ss:$8 sps:$4 sm:$0xff]  }
 0x1e8   : > { %2586 = vmatpush1.bf16.msra.mxu1 %v6283_v28  ;;  %2617 = vmatprep.mubr.bf16.mxu1 %v6601_v1  ;;  %v7565_v28 = vshrl.u32 %v575_v21, 7  ;;  %v6369_v21 = vld [vmem:[%s8257_s3 + $0x6b8] ss:$8 sps:$4 sm:$0xff]  }
 0x1e9   : > { %5604 = vmatmul.mubr.msk.bf16.vlgmr.msra.gmra.mrb[40].mxu0 %vm515_vm1, %v3206_v30  ;;  %2587 = vmatprep.subr.bf16.mxu1 %v6291_v31  ;;  %v5687_v30 = vld [vmem:[%s8257_s3 + $0x890] sm:$0x11]  ;;  %v6343_v31 = vld [vmem:[%s8257_s3 + $0x61c] ss:$8 sps:$4 sm:$0xff]  }
 0x1ea   : > { %3546 = vmatpush1.bf16.msra.mxu0 %v6286_v32  ;;  %3577 = vmatprep.mubr.bf16.mxu0 %v6601_v1  ;;  %v5531_v32 = vcombine.high %v5519_v25, %v5519_v25  ;;  %v5698_v43 = vcombine.low %v5687_v30, %v5687_v30 }
 0x1eb   : > { %3547 = vmatprep.subr.bf16.mxu0 %v6294_v33  ;;  %v6338_v33 = vld [vmem:[%s8257_s3 + $0x870] ss:$8 sps:$4 sm:$0xff]  }
 0x1ec   : > { %2588 = vmatpush1.bf16.msra.mxu1 %v6289_v34  ;;  %v6346_v34 = vld [vmem:[%s8257_s3 + $0x884] ss:$8 sps:$4 sm:$0xff]  }
 0x1ed   : > { %2589 = vmatprep.subr.bf16.mxu1 %v6297_v35  ;;  %v5699_v35 = vcombine.high %v5687_v30, %v5687_v30  ;;  %v5578_v30 = vcombine.low %v5567_v19, %v5567_v19 }
 0x1ee   : > { %3548 = vmatpush1.bf16.msra.mxu0 %v6292_v36  ;;  %v7583_v36 = vsub.s32 %v574_v27, %v7565_v28 }
 0x1ef   : > { %3549 = vmatprep.subr.bf16.mxu0 %v6300_v37  ;;  %v6341_v37 = vld [vmem:[%s8257_s3 + $0x618] ss:$8 sps:$4 sm:$0xff]  }
 0x1f0   : > { %2590 = vmatpush1.bf16.msra.mxu1 %v6295_v38  ;;  %v5530_v38 = vcombine.low %v5519_v25, %v5519_v25  ;;  %v6372_v25 = vld [vmem:[%s8257_s3 + $0x920] ss:$8 sps:$4 sm:$0xff]  }
 0x1f1   : > { %2591 = vmatprep.subr.bf16.mxu1 %v6303_v39  ;;  %v2857_v39 = vand.u32 %v5531_v32, %v6796_v42  ;;  %v6378_v32 = vld [vmem:[%s8257_s3 + $0x930] ss:$8 sps:$4 sm:$0xff]  }
 0x1f2   : > { %3550 = vmatpush1.bf16.msra.mxu0 %v6298_v41  ;;  %v6344_v41 = vld [vmem:[%s8257_s3 + $0x880] ss:$8 sps:$4 sm:$0xff]   ;;  %v2854_v46 = vand.u32 %v5530_v38, %v6796_v42 }
 0x1f3   : > { %3551 = vmatprep.subr.bf16.mxu0 %v6306_v44  ;;  %v3817_v44 = vand.u32 %v5699_v35, %v6796_v42  ;;  %v3129_v35 = vand.u32 %v5578_v30, %v6796_v42 }
 0x1f4   : > { %2592 = vmatpush1.bf16.msra.mxu1 %v6301_v45 }
 0x1f5   : > { %2593 = vmatprep.subr.bf16.mxu1 %v6309_v48  ;;  %v6353_v48 = vld [vmem:[%s8257_s3 + $0x68c] ss:$8 sps:$4 sm:$0xff]  }
 0x1f6   : > { %3552 = vmatpush1.bf16.msra.mxu0 %v6304_v50  ;;  %v3814_v50 = vand.u32 %v5698_v43, %v6796_v42  ;;  %v6390_v43 = vld [vmem:[%s8257_s3 + $0x9a4] ss:$8 sps:$4 sm:$0xff]  }
 0x1f7   : > { %3553 = vmatprep.subr.bf16.mxu0 %v6312_v51 }
 0x1f8   : > { %2594 = vmatpush1.bf16.msra.mxu1 %v6307_v53  ;;  %v448_v53 = vld [vmem:[%s8258_s4] sm:$0x3] }
 0x1f9   : > { %2595 = vmatprep.subr.bf16.mxu1 %v2583_v55 }
 0x1fa   : > { %3554 = vmatpush1.bf16.msra.mxu0 %v6310_v56  ;;  %v7504_v61 = vpop.f32.mrb[0].mxu1 }
 0x1fb   : > { %v7507_v63 = vpop.f32.mrb[1].mxu1  ;;  %3555 = vmatprep.subr.bf16.mxu0 %v3543_v58  ;;  %v6351_v58 = vld [vmem:[%s8257_s3 + $0x688] ss:$8 sps:$4 sm:$0xff]  }
 0x1fc   : > { %v571_v0 = vcombine.low %v7504_v61, %v7507_v63  ;;  %2596 = vmatpush1.bf16.msra.mxu1 %v2580_v59  ;;  %v566_v2 = vpop.f32.mrb[2].mxu1  ;;  %v7514_v4 = vpop.f32.mrb[8].mxu0  ;;  %v7617_v61 = vshrl.u32 %v6887_v40, 16 }
 0x1fd   : > { %v567_v6 = vpop.f32.mrb[3].mxu1  ;;  %v7519_v7 = vpop.f32.mrb[9].mxu0  ;;  %2859 = vmatprep.subr.bf16.mxu1 %v6319_v60  ;;  %v6354_v2 = vld [vmem:[%s8257_s3 + $0x8f0] ss:$8 sps:$4 sm:$0xff]  }
 0x1fe   : > { %v1121_v11 = vcombine.low %v7514_v4, %v7519_v7  ;;  %3556 = vmatpush1.bf16.msra.mxu0 %v3540_v62  ;;  %v1116_v12 = vpop.f32.mrb[10].mxu0  ;;  %v578_v45 = vrot.slane %v571_v0, %v7583_v36  ;;  %v6359_v62 = vld [vmem:[%s8257_s3 + $0x69c] ss:$8 sps:$4 sm:$0xff]   ;;  %v3754_v6 = vrot.slane %v6887_v40, 4 }
 0x1ff   : > { %5484 = vmatmul.mubr.msk.bf16.vlgmr.msra.gmra.mrb[36].mxu1 %vm515_vm1, %v2520_v8  ;;  %v1117_v14 = vpop.f32.mrb[11].mxu0  ;;  %3819 = vmatprep.subr.bf16.mxu0 %v6322_v3  ;;  %v6362_v8 = vld [vmem:[%s8257_s3 + $0x904] ss:$8 sps:$4 sm:$0xff]   ;;  %v6357_v12 = vld [vmem:[%s8257_s3 + $0x698] ss:$8 sps:$4 sm:$0xff]  }
 0x200   : > { %2860 = vmatpush1.bf16.msra.mxu1 %v6317_v5  ;;  %2891 = vmatprep.mubr.bf16.mxu1 %v6601_v1  ;;  %v585_v54 = vrot.slane %v578_v45, %v7583_v36  ;;  %v6430_v4 = vld [vmem:[%s8257_s3 + $0xa64] ss:$8 sps:$4 sm:$0xff]  }
 0x201   : > { %5652 = vmatmul.mubr.msk.bf16.vlgmr.msra.gmra.mrb[44].mxu0 %vm515_vm1, %v3480_v9  ;;  %2861 = vmatprep.subr.bf16.mxu1 %v6325_v10 }
 0x202   : > { %3820 = vmatpush1.bf16.msra.mxu0 %v6320_v13  ;;  %3851 = vmatprep.mubr.bf16.mxu0 %v6601_v1  ;;  %v587_v9 = vadd.f32 %v585_v54, %v448_v53  ;;  %v6365_v13 = vld [vmem:[%s8257_s3 + $0x6ac] ss:$8 sps:$4 sm:$0xff]  }
 0x203   : > { %3821 = vmatprep.subr.bf16.mxu0 %v6328_v47  ;;  %v6360_v47 = vld [vmem:[%s8257_s3 + $0x900] ss:$8 sps:$4 sm:$0xff]  }
 0x204   : > { %2862 = vmatpush1.bf16.msra.mxu1 %v6323_v15  ;;  %v6368_v15 = vld [vmem:[%s8257_s3 + $0x914] ss:$8 sps:$4 sm:$0xff]  }
 0x205   : > { %2863 = vmatprep.subr.bf16.mxu1 %v6331_v16  ;;  %v6363_v16 = vld [vmem:[%s8257_s3 + $0x6a8] ss:$8 sps:$4 sm:$0xff]  }
 0x206   : > { %3822 = vmatpush1.bf16.msra.mxu0 %v6326_v17  ;;  %v6371_v17 = vld [vmem:[%s8257_s3 + $0x6bc] ss:$8 sps:$4 sm:$0xff]  }
 0x207   : > { %3823 = vmatprep.subr.bf16.mxu0 %v6334_v18  ;;  %v6366_v18 = vld [vmem:[%s8257_s3 + $0x910] ss:$8 sps:$4 sm:$0xff]  }
 0x208   : > { %2864 = vmatpush1.bf16.msra.mxu1 %v6329_v22  ;;  %v5735_v22 = vld [vmem:[%s8257_s3 + $0x940] sm:$0x11] }
 0x209   : > { %2865 = vmatprep.subr.bf16.mxu1 %v6337_v23  ;;  %v6377_v23 = vld [vmem:[%s8257_s3 + $0x6cc] ss:$8 sps:$4 sm:$0xff]   ;;  %v5747_v27 = vcombine.high %v5735_v22, %v5735_v22 }
 0x20a   : > { %3824 = vmatpush1.bf16.msra.mxu0 %v6332_v24  ;;  %v5579_v24 = vcombine.high %v5567_v19, %v5567_v19  ;;  %v6414_v19 = vld [vmem:[%s8257_s3 + $0x9e4] ss:$8 sps:$4 sm:$0xff]  }
 0x20b   : > { %3825 = vmatprep.subr.bf16.mxu0 %v6340_v26  ;;  %v6380_v26 = vld [vmem:[%s8257_s3 + $0x934] ss:$8 sps:$4 sm:$0xff]  }
 0x20c   : > { %2866 = vmatpush1.bf16.msra.mxu1 %v6335_v29  ;;  %v6375_v29 = vld [vmem:[%s8257_s3 + $0x6c8] ss:$8 sps:$4 sm:$0xff]  }
 0x20d   : > { %2867 = vmatprep.subr.bf16.mxu1 %v6343_v31  ;;  %v3132_v31 = vand.u32 %v5579_v24, %v6796_v42  ;;  %v6412_v24 = vld [vmem:[%s8257_s3 + $0x9e0] ss:$8 sps:$4 sm:$0xff]  }
 0x20e   : > { %3826 = vmatpush1.bf16.msra.mxu0 %v6338_v33  ;;  %v5746_v33 = vcombine.low %v5735_v22, %v5735_v22 }
 0x20f   : > { %3827 = vmatprep.subr.bf16.mxu0 %v6346_v34  ;;  %v4091_v34 = vand.u32 %v5747_v27, %v6796_v42 }
 0x210   : > { %2868 = vmatpush1.bf16.msra.mxu1 %v6341_v37  ;;  %v6387_v37 = vld [vmem:[%s8257_s3 + $0x73c] ss:$8 sps:$4 sm:$0xff]  }
 0x211   : > { %2869 = vmatprep.subr.bf16.mxu1 %v2857_v39  ;;  %v4088_v39 = vand.u32 %v5746_v33, %v6796_v42  ;;  %v6424_v33 = vld [vmem:[%s8257_s3 + $0xa54] ss:$8 sps:$4 sm:$0xff]  }
 0x212   : > { %v700_v49 = vpop.f32.mrb[4].mxu1  ;;  %3828 = vmatpush1.bf16.msra.mxu0 %v6344_v41 }
 0x213   : > { %v702_v51 = vpop.f32.mrb[5].mxu1  ;;  %3829 = vmatprep.subr.bf16.mxu0 %v3817_v44 }
 0x214   : > { %v709_v55 = vcombine.low %v700_v49, %v702_v51  ;;  %v704_v56 = vpop.f32.mrb[6].mxu1  ;;  %v7609_v57 = vpop.f32.mrb[12].mxu0  ;;  %2870 = vmatpush1.bf16.msra.mxu1 %v2854_v46  ;;  %v3069_v51 = vrot.slane %v7617_v61, 1 }
 0x215   : > { %v705_v59 = vpop.f32.mrb[7].mxu1  ;;  %v7614_v60 = vpop.f32.mrb[13].mxu0  ;;  %3134 = vmatprep.subr.bf16.mxu1 %v6353_v48  ;;  %v6385_v48 = vld [vmem:[%s8257_s3 + $0x738] ss:$8 sps:$4 sm:$0xff]  }
 0x216   : > { %v716_v63 = vrot.slane %v709_v55, %v7583_v36  ;;  %v1395_v3 = vcombine.low %v7609_v57, %v7614_v60  ;;  %v1390_v0 = vpop.f32.mrb[14].mxu0  ;;  %3830 = vmatpush1.bf16.msra.mxu0 %v3814_v50  ;;  %v6388_v56 = vld [vmem:[%s8257_s3 + $0x9a0] ss:$8 sps:$4 sm:$0xff]   ;;  %v4028_v59 = vrot.slane %v6887_v40, 5  ;;  %v6461_v60 = vld [vmem:[%s8257_s3 + $0x8bc] ss:$8 sps:$4 sm:$0xff]  }
 0x217   : > { %v1391_v5 = vpop.f32.mrb[15].mxu0  ;;  %5532 = vmatmul.mubr.msk.bf16.vlgmr.msra.gmra.mrb[40].mxu1 %vm515_vm1, %v7617_v61  ;;  %4093 = vmatprep.subr.bf16.mxu0 %v6356_v52  ;;  %v6393_v52 = vld [vmem:[%s8257_s3 + $0x74c] ss:$8 sps:$4 sm:$0xff]   ;;  %v6391_v0 = vld [vmem:[%s8257_s3 + $0x748] ss:$8 sps:$4 sm:$0xff]  }
 0x218   : > { %v723_v10 = vrot.slane %v716_v63, %v7583_v36  ;;  %3135 = vmatpush1.bf16.msra.mxu1 %v6351_v58  ;;  %3166 = vmatprep.mubr.bf16.mxu1 %v6601_v1  ;;  %v6456_v57 = vld [vmem:[%s8257_s3 + $0x8a8] ss:$8 sps:$4 sm:$0xff]  }
 0x219   : > { %5700 = vmatmul.mubr.msk.bf16.vlgmr.msra.gmra.mrb[48].mxu0 %vm515_vm1, %v3754_v6  ;;  %3136 = vmatprep.subr.bf16.mxu1 %v6359_v62  ;;  %v6396_v62 = vld [vmem:[%s8257_s3 + $0x9b4] ss:$8 sps:$4 sm:$0xff]   ;;  %v6394_v6 = vld [vmem:[%s8257_s3 + $0x9b0] ss:$8 sps:$4 sm:$0xff]  }
 0x21a   : > { %v7643_v14 = vadd.f32 %v723_v10, %v587_v9  ;;  %4094 = vmatpush1.bf16.msra.mxu0 %v6354_v2  ;;  %4125 = vmatprep.mubr.bf16.mxu0 %v6601_v1  ;;  %v6399_v2 = vld [vmem:[%s8257_s3 + $0x75c] ss:$8 sps:$4 sm:$0xff]   ;;  %v6397_v9 = vld [vmem:[%s8257_s3 + $0x758] ss:$8 sps:$4 sm:$0xff]   ;;  %v6405_v10 = vld [vmem:[%s8257_s3 + $0x76c] ss:$8 sps:$4 sm:$0xff]  }
 0x21b   : > { %4095 = vmatprep.subr.bf16.mxu0 %v6362_v8  ;;  %v6402_v8 = vld [vmem:[%s8257_s3 + $0x9c4] ss:$8 sps:$4 sm:$0xff]  }
 0x21c   : > { %3137 = vmatpush1.bf16.msra.mxu1 %v6357_v12  ;;  %v6400_v12 = vld [vmem:[%s8257_s3 + $0x9c0] ss:$8 sps:$4 sm:$0xff]  }
 0x21d   : > { %3138 = vmatprep.subr.bf16.mxu1 %v6365_v13  ;;  %v5615_v13 = vld [vmem:[%s8257_s3 + $0x788] sm:$0x11] }
 0x21e   : > { %4096 = vmatpush1.bf16.msra.mxu0 %v6360_v47  ;;  %v6403_v47 = vld [vmem:[%s8257_s3 + $0x768] ss:$8 sps:$4 sm:$0xff]   ;;  %v5626_v22 = vcombine.low %v5615_v13, %v5615_v13 }
 0x21f   : > { %4097 = vmatprep.subr.bf16.mxu0 %v6368_v15  ;;  %v5783_v15 = vld [vmem:[%s8257_s3 + $0x9f0] sm:$0x11] }
 0x220   : > { %3139 = vmatpush1.bf16.msra.mxu1 %v6363_v16  ;;  %v6411_v16 = vld [vmem:[%s8257_s3 + $0x77c] ss:$8 sps:$4 sm:$0xff]   ;;  %v3403_v27 = vand.u32 %v5626_v22, %v6796_v42 }
 0x221   : > { %3140 = vmatprep.subr.bf16.mxu1 %v6371_v17  ;;  %v5627_v17 = vcombine.high %v5615_v13, %v5615_v13  ;;  %v6445_v13 = vld [vmem:[%s8257_s3 + $0x82c] ss:$8 sps:$4 sm:$0xff]  }
 0x222   : > { %4098 = vmatpush1.bf16.msra.mxu0 %v6366_v18  ;;  %v6406_v18 = vld [vmem:[%s8257_s3 + $0x9d0] ss:$8 sps:$4 sm:$0xff]  }
 0x223   : > { %4099 = vmatprep.subr.bf16.mxu0 %v6374_v20  ;;  %v5795_v20 = vcombine.high %v5783_v15, %v5783_v15 }
 0x224   : > { %3141 = vmatpush1.bf16.msra.mxu1 %v6369_v21  ;;  %v6409_v21 = vld [vmem:[%s8257_s3 + $0x778] ss:$8 sps:$4 sm:$0xff]  }
 0x225   : > { %3142 = vmatprep.subr.bf16.mxu1 %v6377_v23  ;;  %v3406_v23 = vand.u32 %v5627_v17, %v6796_v42  ;;  %v6443_v17 = vld [vmem:[%s8257_s3 + $0x828] ss:$8 sps:$4 sm:$0xff]  }
 0x226   : > { %4100 = vmatpush1.bf16.msra.mxu0 %v6372_v25  ;;  %v5794_v25 = vcombine.low %v5783_v15, %v5783_v15  ;;  %v6448_v15 = vld [vmem:[%s8257_s3 + $0xa94] ss:$8 sps:$4 sm:$0xff]  }
 0x227   : > { %4101 = vmatprep.subr.bf16.mxu0 %v6380_v26  ;;  %v4365_v26 = vand.u32 %v5795_v20, %v6796_v42  ;;  %v6446_v20 = vld [vmem:[%s8257_s3 + $0xa90] ss:$8 sps:$4 sm:$0xff]  }
 0x228   : > { %3143 = vmatpush1.bf16.msra.mxu1 %v6375_v29  ;;  %v6421_v29 = vld [vmem:[%s8257_s3 + $0x7ec] ss:$8 sps:$4 sm:$0xff]  }
 0x229   : > { %3144 = vmatprep.subr.bf16.mxu1 %v3132_v31  ;;  %v4362_v31 = vand.u32 %v5794_v25, %v6796_v42 }
 0x22a   : > { %v838_v38 = vpop.f32.mrb[8].mxu1  ;;  %4102 = vmatpush1.bf16.msra.mxu0 %v6378_v32 }
 0x22b   : > { %v840_v41 = vpop.f32.mrb[9].mxu1  ;;  %4103 = vmatprep.subr.bf16.mxu0 %v4091_v34 }
 0x22c   : > { %v847_v44 = vcombine.low %v838_v38, %v840_v41  ;;  %v842_v45 = vpop.f32.mrb[10].mxu1  ;;  %v7698_v46 = vpop.f32.mrb[16].mxu0  ;;  %3145 = vmatpush1.bf16.msra.mxu1 %v3129_v35  ;;  %v6419_v38 = vld [vmem:[%s8257_s3 + $0x7e8] ss:$8 sps:$4 sm:$0xff]  }
 0x22d   : > { %v843_v49 = vpop.f32.mrb[11].mxu1  ;;  %v7703_v50 = vpop.f32.mrb[17].mxu0  ;;  %3408 = vmatprep.subr.bf16.mxu1 %v6387_v37  ;;  %v1128_v45 = vrot.slane %v1121_v11, %v7583_v36  ;;  %v6425_v11 = vld [vmem:[%s8257_s3 + $0x7f8] ss:$8 sps:$4 sm:$0xff]  }
 0x22e   : > { %v854_v53 = vrot.slane %v847_v44, %v7583_v36  ;;  %v1669_v54 = vcombine.low %v7698_v46, %v7703_v50  ;;  %v1664_v55 = vpop.f32.mrb[18].mxu0  ;;  %4104 = vmatpush1.bf16.msra.mxu0 %v4088_v39  ;;  %v6427_v44 = vld [vmem:[%s8257_s3 + $0x7fc] ss:$8 sps:$4 sm:$0xff]   ;;  %v6478_v46 = vld [vmem:[%s8257_s3 + $0x96c] ss:$8 sps:$4 sm:$0xff]  }
 0x22f   : > { %v1665_v58 = vpop.f32.mrb[19].mxu0  ;;  %5580 = vmatmul.mubr.msk.bf16.vlgmr.msra.gmra.mrb[44].mxu1 %vm515_vm1, %v3069_v51  ;;  %4367 = vmatprep.subr.bf16.mxu0 %v6390_v43  ;;  %v3343_v43 = vrot.slane %v7617_v61, 2  ;;  %v4302_v55 = vrot.slane %v6887_v40, 6 }
 0x230   : > { %v861_v63 = vrot.slane %v854_v53, %v7583_v36  ;;  %3409 = vmatpush1.bf16.msra.mxu1 %v6385_v48  ;;  %3440 = vmatprep.mubr.bf16.mxu1 %v6601_v1  ;;  %v1135_v58 = vrot.slane %v1128_v45, %v7583_v36 }
 0x231   : > { %5748 = vmatmul.mubr.msk.bf16.vlgmr.msra.gmra.mrb[52].mxu0 %vm515_vm1, %v4028_v59  ;;  %3410 = vmatprep.subr.bf16.mxu1 %v6393_v52  ;;  %v6422_v52 = vld [vmem:[%s8257_s3 + $0xa50] ss:$8 sps:$4 sm:$0xff]  }
 0x232   : > { %v7730_v5 = vadd.f32 %v861_v63, %v7643_v14  ;;  %4368 = vmatpush1.bf16.msra.mxu0 %v6388_v56  ;;  %4399 = vmatprep.mubr.bf16.mxu0 %v6601_v1  ;;  %v6408_v14 = vld [vmem:[%s8257_s3 + $0x9d4] ss:$8 sps:$4 sm:$0xff]  }
 0x233   : > { %4369 = vmatprep.subr.bf16.mxu0 %v6396_v62  ;;  %v6433_v56 = vld [vmem:[%s8257_s3 + $0x80c] ss:$8 sps:$4 sm:$0xff]   ;;  %v6428_v62 = vld [vmem:[%s8257_s3 + $0xa60] ss:$8 sps:$4 sm:$0xff]  }
 0x234   : > { %3411 = vmatpush1.bf16.msra.mxu1 %v6391_v0  ;;  %v6436_v63 = vld [vmem:[%s8257_s3 + $0xa74] ss:$8 sps:$4 sm:$0xff]   ;;  %v6431_v0 = vld [vmem:[%s8257_s3 + $0x808] ss:$8 sps:$4 sm:$0xff]  }
 0x235   : > { %3412 = vmatprep.subr.bf16.mxu1 %v6399_v2 }
 0x236   : > { %4370 = vmatpush1.bf16.msra.mxu0 %v6394_v6  ;;  %v6434_v6 = vld [vmem:[%s8257_s3 + $0xa70] ss:$8 sps:$4 sm:$0xff]  }
 0x237   : > { %4371 = vmatprep.subr.bf16.mxu0 %v6402_v8  ;;  %v5663_v8 = vld [vmem:[%s8257_s3 + $0x838] sm:$0x11] }
 0x238   : > { %3413 = vmatpush1.bf16.msra.mxu1 %v6397_v9  ;;  %v6442_v9 = vld [vmem:[%s8257_s3 + $0xa84] ss:$8 sps:$4 sm:$0xff]  }
 0x239   : > { %3414 = vmatprep.subr.bf16.mxu1 %v6405_v10  ;;  %v6437_v10 = vld [vmem:[%s8257_s3 + $0x818] ss:$8 sps:$4 sm:$0xff]  }
 0x23a   : > { %4372 = vmatpush1.bf16.msra.mxu0 %v6400_v12  ;;  %v5831_v12 = vld [vmem:[%s8257_s3 + $0xaa0] sm:$0x11] }
 0x23b   : > { %4373 = vmatprep.subr.bf16.mxu0 %v6408_v14  ;;  %v5675_v14 = vcombine.high %v5663_v8, %v5663_v8 }
 0x23c   : > { %3415 = vmatpush1.bf16.msra.mxu1 %v6403_v47  ;;  %v6440_v47 = vld [vmem:[%s8257_s3 + $0xa80] ss:$8 sps:$4 sm:$0xff]  }
 0x23d   : > { %3416 = vmatprep.subr.bf16.mxu1 %v6411_v16  ;;  %v5843_v16 = vcombine.high %v5831_v12, %v5831_v12 }
 0x23e   : > { %4374 = vmatpush1.bf16.msra.mxu0 %v6406_v18  ;;  %v5674_v18 = vcombine.low %v5663_v8, %v5663_v8 }
 0x23f   : > { %4375 = vmatprep.subr.bf16.mxu0 %v6414_v19  ;;  %v3680_v19 = vand.u32 %v5675_v14, %v6796_v42  ;;  %v4639_v22 = vand.u32 %v5843_v16, %v6796_v42  ;;  %v1676_v16 = vrot.slane %v1669_v54, %v7583_v36 }
 0x240   : > { %3417 = vmatpush1.bf16.msra.mxu1 %v6409_v21  ;;  %v5842_v21 = vcombine.low %v5831_v12, %v5831_v12  ;;  %v6470_v12 = vld [vmem:[%s8257_s3 + $0x948] ss:$8 sps:$4 sm:$0xff]  }
 0x241   : > { %3418 = vmatprep.subr.bf16.mxu1 %v3406_v23  ;;  %v3677_v23 = vand.u32 %v5674_v18, %v6796_v42  ;;  %v1683_v50 = vrot.slane %v1676_v16, %v7583_v36 }
 0x242   : > { %v975_v30 = vpop.f32.mrb[12].mxu1  ;;  %4376 = vmatpush1.bf16.msra.mxu0 %v6412_v24  ;;  %v6455_v24 = vld [vmem:[%s8257_s3 + $0x89c] ss:$8 sps:$4 sm:$0xff]  }
 0x243   : > { %v977_v32 = vpop.f32.mrb[13].mxu1  ;;  %4377 = vmatprep.subr.bf16.mxu0 %v4365_v26  ;;  %v4636_v26 = vand.u32 %v5842_v21, %v6796_v42 }
 0x244   : > { %v984_v34 = vcombine.low %v975_v30, %v977_v32  ;;  %v979_v35 = vpop.f32.mrb[14].mxu1  ;;  %v7785_v37 = vpop.f32.mrb[20].mxu0  ;;  %3419 = vmatpush1.bf16.msra.mxu1 %v3403_v27  ;;  %v6453_v32 = vld [vmem:[%s8257_s3 + $0x898] ss:$8 sps:$4 sm:$0xff]  }
 0x245   : > { %v980_v39 = vpop.f32.mrb[15].mxu1  ;;  %v7790_v41 = vpop.f32.mrb[21].mxu0  ;;  %3682 = vmatprep.subr.bf16.mxu1 %v6421_v29  ;;  %v3617_v35 = vrot.slane %v7617_v61, 3 }
 0x246   : > { %v991_v48 = vrot.slane %v984_v34, %v7583_v36  ;;  %v1943_v49 = vcombine.low %v7785_v37, %v7790_v41  ;;  %v1938_v51 = vpop.f32.mrb[22].mxu0  ;;  %4378 = vmatpush1.bf16.msra.mxu0 %v4362_v31  ;;  %v1402_v39 = vrot.slane %v1395_v3, %v7583_v36  ;;  %v6495_v37 = vld [vmem:[%s8257_s3 + $0xa1c] ss:$8 sps:$4 sm:$0xff]  }
 0x247   : > { %v1939_v53 = vpop.f32.mrb[23].mxu0  ;;  %5628 = vmatmul.mubr.msk.bf16.vlgmr.msra.gmra.mrb[48].mxu1 %vm515_vm1, %v3343_v43  ;;  %4641 = vmatprep.subr.bf16.mxu0 %v6424_v33  ;;  %v4576_v51 = vrot.slane %v6887_v40, 7 }
 0x248   : > { %v998_v7 = vrot.slane %v991_v48, %v7583_v36  ;;  %3683 = vmatpush1.bf16.msra.mxu1 %v6419_v38  ;;  %3714 = vmatprep.mubr.bf16.mxu1 %v6601_v1  ;;  %v6458_v38 = vld [vmem:[%s8257_s3 + $0x8ac] ss:$8 sps:$4 sm:$0xff]   ;;  %v1409_v3 = vrot.slane %v1402_v39, %v7583_v36  ;;  %v6459_v53 = vld [vmem:[%s8257_s3 + $0x8b8] ss:$8 sps:$4 sm:$0xff]   ;;  %v6489_v39 = vld [vmem:[%s8257_s3 + $0x9fc] ss:$8 sps:$4 sm:$0xff]  }
 0x249   : > { %5796 = vmatmul.mubr.msk.bf16.vlgmr.msra.gmra.mrb[56].mxu0 %vm515_vm1, %v4302_v55  ;;  %3684 = vmatprep.subr.bf16.mxu1 %v6427_v44 }
 0x24a   : > { %v1000_v59 = vadd.f32 %v998_v7, %v7730_v5  ;;  %4642 = vmatpush1.bf16.msra.mxu0 %v6422_v52  ;;  %4673 = vmatprep.mubr.bf16.mxu0 %v6601_v1  ;;  %v6439_v5 = vld [vmem:[%s8257_s3 + $0x81c] ss:$8 sps:$4 sm:$0xff]   ;;  %v5711_v7 = vld [vmem:[%s8257_s3 + $0x8e8] sm:$0x11] }
 0x24b   : > { %4643 = vmatprep.subr.bf16.mxu0 %v6430_v4  ;;  %v6464_v4 = vld [vmem:[%s8257_s3 + $0x8cc] ss:$8 sps:$4 sm:$0xff]  }
 0x24c   : > { %3685 = vmatpush1.bf16.msra.mxu1 %v6425_v11  ;;  %v7832_v2 = vadd.f32 %v1135_v58, %v1000_v59  ;;  %v6462_v11 = vld [vmem:[%s8257_s3 + $0x8c8] ss:$8 sps:$4 sm:$0xff]   ;;  %v5723_v58 = vcombine.high %v5711_v7, %v5711_v7  ;;  %v6465_v59 = vld [vmem:[%s8257_s3 + $0x8d8] ss:$8 sps:$4 sm:$0xff]  }
 0x24d   : > { %3686 = vmatprep.subr.bf16.mxu1 %v6433_v56  ;;  %v6467_v56 = vld [vmem:[%s8257_s3 + $0x8dc] ss:$8 sps:$4 sm:$0xff]  }
 0x24e   : > { %4644 = vmatpush1.bf16.msra.mxu0 %v6428_v62  ;;  %v5722_v62 = vcombine.low %v5711_v7, %v5711_v7 }
 0x24f   : > { %4645 = vmatprep.subr.bf16.mxu0 %v6436_v63  ;;  %v3954_v63 = vand.u32 %v5723_v58, %v6796_v42 }
 0x250   : > { %3687 = vmatpush1.bf16.msra.mxu1 %v6431_v0  ;;  %v3951_v0 = vand.u32 %v5722_v62, %v6796_v42  ;;  %v6493_v62 = vld [vmem:[%s8257_s3 + $0xa18] ss:$8 sps:$4 sm:$0xff]  }
 0x251   : > { %3688 = vmatprep.subr.bf16.mxu1 %v6439_v5 }
 0x252   : > { %4646 = vmatpush1.bf16.msra.mxu0 %v6434_v6 }
 0x253   : > { %4647 = vmatprep.subr.bf16.mxu0 %v6442_v9 }
 0x254   : > { %3689 = vmatpush1.bf16.msra.mxu1 %v6437_v10 }
 0x255   : > { %3690 = vmatprep.subr.bf16.mxu1 %v6445_v13 }
 0x256   : > { %4648 = vmatpush1.bf16.msra.mxu0 %v6440_v47  ;;  %v3891_v47 = vrot.slane %v7617_v61, 4 }
 0x257   : > { %4649 = vmatprep.subr.bf16.mxu0 %v6448_v15  ;;  %v6475_v15 = vld [vmem:[%s8257_s3 + $0x95c] ss:$8 sps:$4 sm:$0xff]  }
 0x258   : > { %3691 = vmatpush1.bf16.msra.mxu1 %v6443_v17 }
 0x259   : > { %3692 = vmatprep.subr.bf16.mxu1 %v3680_v19 }
 0x25a   : > { %v1249_v25 = vpop.f32.mrb[16].mxu1  ;;  %4650 = vmatpush1.bf16.msra.mxu0 %v6446_v20 }
 0x25b   : > { %v1251_v27 = vpop.f32.mrb[17].mxu1  ;;  %4651 = vmatprep.subr.bf16.mxu0 %v4639_v22  ;;  %v6473_v22 = vld [vmem:[%s8257_s3 + $0x958] ss:$8 sps:$4 sm:$0xff]  }
 0x25c   : > { %v1258_v29 = vcombine.low %v1249_v25, %v1251_v27  ;;  %v1253_v30 = vpop.f32.mrb[18].mxu1  ;;  %v7874_v31 = vpop.f32.mrb[24].mxu0  ;;  %3693 = vmatpush1.bf16.msra.mxu1 %v3677_v23  ;;  %v6476_v23 = vld [vmem:[%s8257_s3 + $0x968] ss:$8 sps:$4 sm:$0xff]   ;;  %v6481_v25 = vld [vmem:[%s8257_s3 + $0x97c] ss:$8 sps:$4 sm:$0xff]  }
 0x25d   : > { %v1254_v33 = vpop.f32.mrb[19].mxu1  ;;  %v7879_v34 = vpop.f32.mrb[25].mxu0  ;;  %3956 = vmatprep.subr.bf16.mxu1 %v6455_v24  ;;  %v6479_v27 = vld [vmem:[%s8257_s3 + $0x978] ss:$8 sps:$4 sm:$0xff]  }
 0x25e   : > { %v1265_v43 = vrot.slane %v1258_v29, %v7583_v36  ;;  %v2217_v44 = vcombine.low %v7874_v31, %v7879_v34  ;;  %v2212_v45 = vpop.f32.mrb[26].mxu0  ;;  %4652 = vmatpush1.bf16.msra.mxu0 %v4636_v26  ;;  %v5759_v26 = vld [vmem:[%s8257_s3 + $0x998] sm:$0x11]  ;;  %v6484_v29 = vld [vmem:[%s8257_s3 + $0x98c] ss:$8 sps:$4 sm:$0xff]  }
 0x25f   : > { %v2213_v48 = vpop.f32.mrb[27].mxu0  ;;  %5676 = vmatmul.mubr.msk.bf16.vlgmr.msra.gmra.mrb[52].mxu1 %vm515_vm1, %v3617_v35  ;;  %v5771_v30 = vcombine.high %v5759_v26, %v5759_v26  ;;  %v5770_v33 = vcombine.low %v5759_v26, %v5759_v26  ;;  %v6512_v31 = vld [vmem:[%s8257_s3 + $0xacc] ss:$8 sps:$4 sm:$0xff]  }
 0x260   : > { %v1272_v52 = vrot.slane %v1265_v43, %v7583_v36  ;;  %3957 = vmatpush1.bf16.msra.mxu1 %v6453_v32  ;;  %3988 = vmatprep.mubr.bf16.mxu1 %v6601_v1  ;;  %v6482_v32 = vld [vmem:[%s8257_s3 + $0x988] ss:$8 sps:$4 sm:$0xff]  }
 0x261   : > { %5844 = vmatmul.mubr.msk.bf16.vlgmr.msra.gmra.mrb[60].mxu0 %vm515_vm1, %v4576_v51  ;;  %3958 = vmatprep.subr.bf16.mxu1 %v6458_v38  ;;  %v4228_v35 = vand.u32 %v5771_v30, %v6796_v42  ;;  %v4225_v38 = vand.u32 %v5770_v33, %v6796_v42  ;;  %v6510_v33 = vld [vmem:[%s8257_s3 + $0xac8] ss:$8 sps:$4 sm:$0xff]  }
 0x262   : > { %v1274_v40 = vadd.f32 %v1272_v52, %v7832_v2  ;;  %v6472_v2 = vld [vmem:[%s8257_s3 + $0x94c] ss:$8 sps:$4 sm:$0xff]   ;;  %v6487_v52 = vld [vmem:[%s8257_s3 + $0x9f8] ss:$8 sps:$4 sm:$0xff]  }
 0x264   : > { %3959 = vmatpush1.bf16.msra.mxu1 %v6456_v57  ;;  %v1411_v55 = vadd.f32 %v1409_v3, %v1274_v40  ;;  %v4165_v3 = vrot.slane %v7617_v61, 5  ;;  %v6492_v40 = vld [vmem:[%s8257_s3 + $0xa0c] ss:$8 sps:$4 sm:$0xff]  }
 0x265   : > { %3960 = vmatprep.subr.bf16.mxu1 %v6461_v60 }
 0x268   : > { %3961 = vmatpush1.bf16.msra.mxu1 %v6459_v53 }
 0x269   : > { %3962 = vmatprep.subr.bf16.mxu1 %v6464_v4 }
 0x26c   : > { %3963 = vmatpush1.bf16.msra.mxu1 %v6462_v11 }
 0x26d   : > { %3964 = vmatprep.subr.bf16.mxu1 %v6467_v56 }
 0x270   : > { %3965 = vmatpush1.bf16.msra.mxu1 %v6465_v59  ;;  %v6490_v59 = vld [vmem:[%s8257_s3 + $0xa08] ss:$8 sps:$4 sm:$0xff]  }
 0x271   : > { %3966 = vmatprep.subr.bf16.mxu1 %v3954_v63 }
 0x272   : > { %v1523_v5 = vpop.f32.mrb[20].mxu1 }
 0x273   : > { %v1525_v6 = vpop.f32.mrb[21].mxu1 }
 0x274   : > { %v1532_v8 = vcombine.low %v1523_v5, %v1525_v6  ;;  %v1527_v9 = vpop.f32.mrb[22].mxu1  ;;  %v7928_v10 = vpop.f32.mrb[28].mxu0  ;;  %3967 = vmatpush1.bf16.msra.mxu1 %v3951_v0  ;;  %v6498_v0 = vld [vmem:[%s8257_s3 + $0xa2c] ss:$8 sps:$4 sm:$0xff]   ;;  %v6496_v5 = vld [vmem:[%s8257_s3 + $0xa28] ss:$8 sps:$4 sm:$0xff]  }
 0x275   : > { %v1528_v13 = vpop.f32.mrb[23].mxu1  ;;  %v7933_v14 = vpop.f32.mrb[29].mxu0  ;;  %4230 = vmatprep.subr.bf16.mxu1 %v6472_v2  ;;  %v5807_v2 = vld [vmem:[%s8257_s3 + $0xa48] sm:$0x11]  ;;  %v6501_v6 = vld [vmem:[%s8257_s3 + $0xa3c] ss:$8 sps:$4 sm:$0xff]  }
 0x276   : > { %v1539_v17 = vrot.slane %v1532_v8, %v7583_v36  ;;  %v2491_v18 = vcombine.low %v7928_v10, %v7933_v14  ;;  %v2486_v19 = vpop.f32.mrb[30].mxu0  ;;  %v5819_v8 = vcombine.high %v5807_v2, %v5807_v2  ;;  %v6499_v9 = vld [vmem:[%s8257_s3 + $0xa38] ss:$8 sps:$4 sm:$0xff]  }
 0x277   : > { %v2487_v20 = vpop.f32.mrb[31].mxu0  ;;  %5724 = vmatmul.mubr.msk.bf16.vlgmr.msra.gmra.mrb[56].mxu1 %vm515_vm1, %v3891_v47 }
 0x278   : > { %v1546_v21 = vrot.slane %v1539_v17, %v7583_v36  ;;  %4231 = vmatpush1.bf16.msra.mxu1 %v6470_v12  ;;  %4262 = vmatprep.mubr.bf16.mxu1 %v6601_v1  ;;  %v5818_v12 = vcombine.low %v5807_v2, %v5807_v2  ;;  %v4502_v13 = vand.u32 %v5819_v8, %v6796_v42 }
 0x279   : > { %4232 = vmatprep.subr.bf16.mxu1 %v6475_v15  ;;  %v6506_v15 = vld [vmem:[%s8257_s3 + $0xaac] ss:$8 sps:$4 sm:$0xff]  }
 0x27a   : > { %v1548_v54 = vadd.f32 %v1546_v21, %v1411_v55  ;;  %v1950_v55 = vrot.slane %v1943_v49, %v7583_v36  ;;  %v4499_v47 = vand.u32 %v5818_v12, %v6796_v42  ;;  %v6504_v21 = vld [vmem:[%s8257_s3 + $0xaa8] ss:$8 sps:$4 sm:$0xff]  }
 0x27c   : > { %4233 = vmatpush1.bf16.msra.mxu1 %v6473_v22  ;;  %v1685_v24 = vadd.f32 %v1683_v50, %v1548_v54  ;;  %v1957_v41 = vrot.slane %v1950_v55, %v7583_v36  ;;  %v4439_v50 = vrot.slane %v7617_v61, 6  ;;  %v6509_v54 = vld [vmem:[%s8257_s3 + $0xabc] ss:$8 sps:$4 sm:$0xff]  }
 0x27d   : > { %4234 = vmatprep.subr.bf16.mxu1 %v6478_v46 }
 0x280   : > { %4235 = vmatpush1.bf16.msra.mxu1 %v6476_v23 }
 0x281   : > { %4236 = vmatprep.subr.bf16.mxu1 %v6481_v25 }
 0x284   : > { %4237 = vmatpush1.bf16.msra.mxu1 %v6479_v27 }
 0x285   : > { %4238 = vmatprep.subr.bf16.mxu1 %v6484_v29 }
 0x288   : > { %4239 = vmatpush1.bf16.msra.mxu1 %v6482_v32  ;;  %v6507_v32 = vld [vmem:[%s8257_s3 + $0xab8] ss:$8 sps:$4 sm:$0xff]  }
 0x289   : > { %4240 = vmatprep.subr.bf16.mxu1 %v4228_v35 }
 0x28a   : > { %v1797_v43 = vpop.f32.mrb[24].mxu1 }
 0x28b   : > { %v1799_v45 = vpop.f32.mrb[25].mxu1 }
 0x28c   : > { %v1806_v48 = vcombine.low %v1797_v43, %v1799_v45  ;;  %v1801_v51 = vpop.f32.mrb[26].mxu1  ;;  %4241 = vmatpush1.bf16.msra.mxu1 %v4225_v38  ;;  %v7982_v57 = vpop.f32.mrb[32].mxu0  ;;  %v6515_v38 = vld [vmem:[%s8257_s3 + $0xadc] ss:$8 sps:$4 sm:$0xff]   ;;  %v6518_v43 = vld [vmem:[%s8257_s3 + $0xaec] ss:$8 sps:$4 sm:$0xff]  }
 0x28d   : > { %v1802_v60 = vpop.f32.mrb[27].mxu1  ;;  %4504 = vmatprep.subr.bf16.mxu1 %v6489_v39  ;;  %v7988_v53 = vpop.f32.mrb[33].mxu0  ;;  %v6513_v39 = vld [vmem:[%s8257_s3 + $0xad8] ss:$8 sps:$4 sm:$0xff]  }
 0x28e   : > { %v1813_v4 = vrot.slane %v1806_v48, %v7583_v36  ;;  %v2764_v7 = vcombine.low %v7982_v57, %v7988_v53  ;;  %v2759_v11 = vpop.f32.mrb[34].mxu0  ;;  %v6516_v48 = vld [vmem:[%s8257_s3 + $0xae8] ss:$8 sps:$4 sm:$0xff]  }
 0x28f   : > { %5772 = vmatmul.mubr.msk.bf16.vlgmr.msra.gmra.mrb[60].mxu1 %vm515_vm1, %v4165_v3  ;;  %v2760_v56 = vpop.f32.mrb[35].mxu0 }
 0x290   : > { %v1820_v58 = vrot.slane %v1813_v4, %v7583_v36  ;;  %4505 = vmatpush1.bf16.msra.mxu1 %v6487_v52  ;;  %4536 = vmatprep.mubr.bf16.mxu1 %v6601_v1  ;;  %v2771_v10 = vrot.slane %v2764_v7, %v7583_v36 }
 0x291   : > { %4506 = vmatprep.subr.bf16.mxu1 %v6492_v40 }
 0x292   : > { %v1822_v49 = vadd.f32 %v1820_v58, %v1685_v24  ;;  %v2224_v24 = vrot.slane %v2217_v44, %v7583_v36  ;;  %v4713_v58 = vrot.slane %v7617_v61, 7 }
 0x294   : > { %4507 = vmatpush1.bf16.msra.mxu1 %v6490_v59  ;;  %v1959_v63 = vadd.f32 %v1957_v41, %v1822_v49  ;;  %v2231_v34 = vrot.slane %v2224_v24, %v7583_v36 }
 0x295   : > { %4508 = vmatprep.subr.bf16.mxu1 %v6495_v37  ;;  %v2498_v37 = vrot.slane %v2491_v18, %v7583_v36 }
 0x298   : > { %4509 = vmatpush1.bf16.msra.mxu1 %v6493_v62 }
 0x299   : > { %4510 = vmatprep.subr.bf16.mxu1 %v6498_v0  ;;  %v2505_v0 = vrot.slane %v2498_v37, %v7583_v36 }
 0x29c   : > { %4511 = vmatpush1.bf16.msra.mxu1 %v6496_v5 }
 0x29d   : > { %4512 = vmatprep.subr.bf16.mxu1 %v6501_v6 }
 0x2a0   : > { %4513 = vmatpush1.bf16.msra.mxu1 %v6499_v9 }
 0x2a1   : > { %4514 = vmatprep.subr.bf16.mxu1 %v4502_v13 }
 0x2a2   : > { %v2071_v16 = vpop.f32.mrb[28].mxu1 }
 0x2a3   : > { %v2073_v17 = vpop.f32.mrb[29].mxu1 }
 0x2a4   : > { %v2080_v19 = vcombine.low %v2071_v16, %v2073_v17  ;;  %v2075_v20 = vpop.f32.mrb[30].mxu1  ;;  %4515 = vmatpush1.bf16.msra.mxu1 %v4499_v47  ;;  %v8033_v22 = vpop.f32.mrb[36].mxu0 }
 0x2a5   : > { %v2076_v46 = vpop.f32.mrb[31].mxu1  ;;  %4778 = vmatprep.subr.bf16.mxu1 %v6506_v15  ;;  %v8039_v23 = vpop.f32.mrb[37].mxu0 }
 0x2a6   : > { %v2087_v25 = vrot.slane %v2080_v19, %v7583_v36  ;;  %v3040_v26 = vcombine.low %v8033_v22, %v8039_v23  ;;  %v3035_v27 = vpop.f32.mrb[38].mxu0  ;;  %v2778_v19 = vrot.slane %v2771_v10, %v7583_v36  ;;  %v6522_v22 = vld [vmem:[%s8259_s5] sm:$0xff]   ;;  %v6523_v23 = vld [vmem:[%s8259_s5 + $0x48] sm:$0xff]  }
 0x2a7   : > { %5820 = vmatmul.mubr.msk.bf16.vlgmr.msra.gmra.mrb[64].mxu1 %vm515_vm1, %v4439_v50  ;;  %v3036_v29 = vpop.f32.mrb[39].mxu0 }
 0x2a8   : > { %v2094_v30 = vrot.slane %v2087_v25, %v7583_v36  ;;  %4779 = vmatpush1.bf16.msra.mxu1 %v6504_v21  ;;  %4810 = vmatprep.mubr.bf16.mxu1 %v6601_v1  ;;  %v5855_v1 = vld [vmem:[%s8257_s3 + $0xaf8] sm:$0x11]  ;;  %v3047_v25 = vrot.slane %v3040_v26, %v7583_v36 }
 0x2a9   : > { %4780 = vmatprep.subr.bf16.mxu1 %v6509_v54  ;;  %v5867_v45 = vcombine.high %v5855_v1, %v5855_v1  ;;  %v5866_v51 = vcombine.low %v5855_v1, %v5855_v1 }
 0x2aa   : > { %v2096_v44 = vadd.f32 %v2094_v30, %v1959_v63 }
 0x2ab   : > { %v4776_v52 = vand.u32 %v5867_v45, %v6796_v42  ;;  %v4773_v60 = vand.u32 %v5866_v51, %v6796_v42  ;;  %v6524_v45 = vld [vmem:[%s8259_s5 + $0x8] sm:$0xff]  }
 0x2ac   : > { %4781 = vmatpush1.bf16.msra.mxu1 %v6507_v32  ;;  %v2233_v35 = vadd.f32 %v2231_v34, %v2096_v44  ;;  %v3054_v34 = vrot.slane %v3047_v25, %v7583_v36 }
 0x2ad   : > { %4782 = vmatprep.subr.bf16.mxu1 %v6512_v31 }
 0x2b0   : > { %4783 = vmatpush1.bf16.msra.mxu1 %v6510_v33 }
 0x2b1   : > { %4784 = vmatprep.subr.bf16.mxu1 %v6515_v38 }
 0x2b4   : > { %4785 = vmatpush1.bf16.msra.mxu1 %v6513_v39 }
 0x2b5   : > { %4786 = vmatprep.subr.bf16.mxu1 %v6518_v43 }
 0x2b8   : > { %4787 = vmatpush1.bf16.msra.mxu1 %v6516_v48 }
 0x2b9   : > { %4788 = vmatprep.subr.bf16.mxu1 %v4776_v52  ;;  %v6525_v52 = vld [vmem:[%s8259_s5 + $0x50] sm:$0xff]  }
 0x2ba   : > { %v2345_v3 = vpop.f32.mrb[32].mxu1 }
 0x2bb   : > { %v2347_v40 = vpop.f32.mrb[33].mxu1 }
 0x2bc   : > { %v2354_v55 = vcombine.low %v2345_v3, %v2347_v40  ;;  %v2349_v4 = vpop.f32.mrb[34].mxu1  ;;  %4789 = vmatpush1.bf16.msra.mxu1 %v4773_v60  ;;  %v3305_v11 = vpop.f32.mrb[40].mxu0 }
 0x2bd   : > { %v2350_v56 = vpop.f32.mrb[35].mxu1  ;;  %v3307_v59 = vpop.f32.mrb[41].mxu0 }
 0x2be   : > { %v2361_v41 = vrot.slane %v2354_v55, %v7583_v36  ;;  %v3314_v49 = vcombine.low %v3305_v11, %v3307_v59  ;;  %v3309_v42 = vpop.f32.mrb[42].mxu0  ;;  %v6526_v56 = vld [vmem:[%s8259_s5 + $0x10] sm:$0xff]  }
 0x2bf   : > { %5868 = vmatmul.mubr.msk.bf16.vlgmr.msra.gmra.mrb[68].mxu1 %vm515_vm1, %v4713_v58  ;;  %v3310_v62 = vpop.f32.mrb[43].mxu0  ;;  %v6527_v58 = vld [vmem:[%s8259_s5 + $0x58] sm:$0xff]   ;;  %v6529_v42 = vld [vmem:[%s8259_s5 + $0x60] sm:$0xff]  }
 0x2c0   : > { %v2368_v63 = vrot.slane %v2361_v41, %v7583_v36  ;;  %v3321_v60 = vrot.slane %v3314_v49, %v7583_v36  ;;  %v6528_v49 = vld [vmem:[%s8259_s5 + $0x18] sm:$0xff]   ;;  %v6530_v62 = vld [vmem:[%s8259_s5 + $0x20] sm:$0xff]  }
 0x2c2   : > { %v2370_v2 = vadd.f32 %v2368_v63, %v2233_v35  ;;  %v6521_v35 = vld [vmem:[%s8259_s5 + $0x40] sm:$0xff]   ;;  %v3328_v59 = vrot.slane %v3321_v60, %v7583_v36  ;;  %v6531_v63 = vld [vmem:[%s8259_s5 + $0x68] sm:$0xff]  }
 0x2c3   : > { %5888 = vmatprep.subr.bf16.mxu0 %v6521_v35 }
 0x2c4   : > { %v2507_v5 = vadd.f32 %v2505_v0, %v2370_v2  ;;  %5889 = vmatpush3.bf16.msra.mxu0 %v6522_v22  ;;  %v6532_v0 = vld [vmem:[%s8259_s5 + $0x28] sm:$0xff]   ;;  %v6533_v2 = vld [vmem:[%s8259_s5 + $0x70] sm:$0xff]  }
 0x2c5   : > { %5890 = vmatprep.subr.bf16.mxu0 %v6523_v23 }
 0x2c8   : > { %5891 = vmatpush3.bf16.msra.mxu0 %v6524_v45 }
 0x2c9   : > { %5892 = vmatprep.subr.bf16.mxu0 %v6525_v52 }
 0x2cc   : > { %5893 = vmatpush3.bf16.msra.mxu0 %v6526_v56 }
 0x2cd   : > { %5894 = vmatprep.subr.bf16.mxu0 %v6527_v58 }
 0x2d0   : > { %5895 = vmatpush3.bf16.msra.mxu0 %v6528_v49 }
 0x2d1   : > { %5896 = vmatprep.subr.bf16.mxu0 %v6529_v42 }
 0x2d2   : > { %v2619_v61 = vpop.f32.mrb[36].mxu1 }
 0x2d3   : > { %v2621_v6 = vpop.f32.mrb[37].mxu1 }
 0x2d4   : > { %v2628_v8 = vcombine.low %v2619_v61, %v2621_v6  ;;  %v2623_v9 = vpop.f32.mrb[38].mxu1  ;;  %v8091_v14 = vpop.f32.mrb[44].mxu0  ;;  %5897 = vmatpush3.bf16.msra.mxu0 %v6530_v62  ;;  %v6534_v61 = vld [vmem:[%s8259_s5 + $0x30] sm:$0xff]   ;;  %v6535_v6 = vld [vmem:[%s8259_s5 + $0x78] sm:$0xff]  }
 0x2d5   : > { %v2624_v18 = vpop.f32.mrb[39].mxu1  ;;  %v8093_v12 = vpop.f32.mrb[45].mxu0  ;;  %5898 = vmatprep.subr.bf16.mxu0 %v6531_v63 }
 0x2d6   : > { %v2635_v13 = vrot.slane %v2628_v8, %v7583_v36  ;;  %v3588_v47 = vcombine.low %v8091_v14, %v8093_v12  ;;  %v3583_v15 = vpop.f32.mrb[46].mxu0 }
 0x2d7   : > { %v3584_v16 = vpop.f32.mrb[47].mxu0 }
 0x2d8   : > { %v2642_v17 = vrot.slane %v2635_v13, %v7583_v36  ;;  %5899 = vmatpush3.bf16.msra.mxu0 %v6532_v0  ;;  %v6536_v13 = vld [vmem:[%s8259_s5 + $0x38] sm:$0xff]  }
 0x2d9   : > { %5900 = vmatprep.subr.bf16.mxu0 %v6533_v2 }
 0x2da   : > { %v2644_v20 = vadd.f32 %v2642_v17, %v2507_v5  ;;  %v3595_v17 = vrot.slane %v3588_v47, %v7583_v36 }
 0x2dc   : > { %v2780_v21 = vadd.f32 %v2778_v19, %v2644_v20  ;;  %5901 = vmatpush3.bf16.msra.mxu0 %v6534_v61 }
 0x2dd   : > { %5902 = vmatprep.subr.bf16.mxu0 %v6535_v6 }
 0x2e0   : > { %5903 = vmatpush3.bf16.msra.mxu0 %v6536_v13 }
 0x2ea   : > { %v2893_v57 = vpop.f32.mrb[40].mxu1 }
 0x2eb   : > { %v2895_v53 = vpop.f32.mrb[41].mxu1 }
 0x2ec   : > { %v2902_v7 = vcombine.low %v2893_v57, %v2895_v53  ;;  %v2897_v46 = vpop.f32.mrb[42].mxu1  ;;  %v8100_v50 = vpop.f32.mrb[48].mxu0 }
 0x2ed   : > { %v2898_v54 = vpop.f32.mrb[43].mxu1  ;;  %v8102_v24 = vpop.f32.mrb[49].mxu0 }
 0x2ee   : > { %v2909_v27 = vrot.slane %v2902_v7, %v7583_v36  ;;  %v3862_v29 = vcombine.low %v8100_v50, %v8102_v24  ;;  %v3857_v30 = vpop.f32.mrb[50].mxu0  ;;  %v3602_v7 = vrot.slane %v3595_v17, %v7583_v36 }
 0x2ef   : > { %v3858_v32 = vpop.f32.mrb[51].mxu0 }
 0x2f0   : > { %v2916_v31 = vrot.slane %v2909_v27, %v7583_v36  ;;  %v3869_v12 = vrot.slane %v3862_v29, %v7583_v36 }
 0x2f2   : > { %v2918_v44 = vadd.f32 %v2916_v31, %v2780_v21  ;;  %v3876_v22 = vrot.slane %v3869_v12, %v7583_v36 }
 0x2f4   : > { %v3056_v33 = vadd.f32 %v3054_v34, %v2918_v44 }
 0x302   : > { %v3168_v38 = vpop.f32.mrb[44].mxu1 }
 0x303   : > { %v3170_v26 = vpop.f32.mrb[45].mxu1 }
 0x304   : > { %v3177_v1 = vcombine.low %v3168_v38, %v3170_v26  ;;  %v3172_v39 = vpop.f32.mrb[46].mxu1  ;;  %v8122_v43 = vpop.f32.mrb[52].mxu0 }
 0x305   : > { %v3173_v48 = vpop.f32.mrb[47].mxu1  ;;  %v8127_v51 = vpop.f32.mrb[53].mxu0 }
 0x306   : > { %v3184_v3 = vrot.slane %v3177_v1, %v7583_v36  ;;  %v4136_v40 = vcombine.low %v8122_v43, %v8127_v51  ;;  %v4131_v55 = vpop.f32.mrb[54].mxu0 }
 0x307   : > { %v4132_v4 = vpop.f32.mrb[55].mxu0 }
 0x308   : > { %v3191_v11 = vrot.slane %v3184_v3, %v7583_v36  ;;  %v4143_v50 = vrot.slane %v4136_v40, %v7583_v36 }
 0x30a   : > { %v3193_v37 = vadd.f32 %v3191_v11, %v3056_v33  ;;  %v4150_v60 = vrot.slane %v4143_v50, %v7583_v36 }
 0x30c   : > { %v3330_v41 = vadd.f32 %v3328_v59, %v3193_v37 }
 0x31a   : > { %v3442_v5 = vpop.f32.mrb[48].mxu1 }
 0x31b   : > { %v3444_v8 = vpop.f32.mrb[49].mxu1 }
 0x31c   : > { %v3451_v9 = vcombine.low %v3442_v5, %v3444_v8  ;;  %v3446_v10 = vpop.f32.mrb[50].mxu1  ;;  %v4401_v18 = vpop.f32.mrb[56].mxu0 }
 0x31d   : > { %v3447_v15 = vpop.f32.mrb[51].mxu1  ;;  %v4403_v16 = vpop.f32.mrb[57].mxu0 }
 0x31e   : > { %v3458_v19 = vrot.slane %v3451_v9, %v7583_v36  ;;  %v4410_v20 = vcombine.low %v4401_v18, %v4403_v16  ;;  %v4405_v21 = vpop.f32.mrb[58].mxu0 }
 0x31f   : > { %v4406_v57 = vpop.f32.mrb[59].mxu0 }
 0x320   : > { %v3465_v53 = vrot.slane %v3458_v19, %v7583_v36  ;;  %v4417_v37 = vrot.slane %v4410_v20, %v7583_v36  ;;  %v4846_v57 = vsub.s32 1, %v7565_v28 }
 0x322   : > { %v3467_v46 = vadd.f32 %v3465_v53, %v3330_v41  ;;  %v4424_v51 = vrot.slane %v4417_v37, %v7583_v36  ;;  %v4842_v53 = vsub.s32 0, %v7565_v28 }
 0x324   : > { %v3604_v54 = vadd.f32 %v3602_v7, %v3467_v46 }
 0x332   : > { %v3716_v25 = vpop.f32.mrb[52].mxu1 }
 0x333   : > { %v3718_v27 = vpop.f32.mrb[53].mxu1 }
 0x334   : > { %v3725_v30 = vcombine.low %v3716_v25, %v3718_v27  ;;  %v3720_v32 = vpop.f32.mrb[54].mxu1  ;;  %v4675_v31 = vpop.f32.mrb[60].mxu0 }
 0x335   : > { %v3721_v34 = vpop.f32.mrb[55].mxu1  ;;  %v4677_v14 = vpop.f32.mrb[61].mxu0  ;;  %v4884_v32 = vld [vmem:[%s8260_s6] sm:$0x1] }
 0x336   : > { %v3732_v47 = vrot.slane %v3725_v30, %v7583_v36  ;;  %v4684_v44 = vcombine.low %v4675_v31, %v4677_v14  ;;  %v4679_v33 = vpop.f32.mrb[62].mxu0 }
 0x337   : > { %v4680_v35 = vpop.f32.mrb[63].mxu0 }
 0x338   : > { %v3739_v38 = vrot.slane %v3732_v47, %v7583_v36  ;;  %v4691_v5 = vrot.slane %v4684_v44, %v7583_v36 }
 0x33a   : > { %v3741_v23 = vadd.f32 %v3739_v38, %v3604_v54  ;;  %v4698_v8 = vrot.slane %v4691_v5, %v7583_v36 }
 0x33c   : > { %v3878_v26 = vadd.f32 %v3876_v22, %v3741_v23 }
 0x34a   : > { %v3990_v1 = vpop.f32.mrb[56].mxu1 }
 0x34b   : > { %v3992_v39 = vpop.f32.mrb[57].mxu1 }
 0x34c   : > { %v3999_v45 = vcombine.low %v3990_v1, %v3992_v39  ;;  %v3994_v48 = vpop.f32.mrb[58].mxu1 }
 0x34d   : > { %v3995_v52 = vpop.f32.mrb[59].mxu1 }
 0x34e   : > { %v4006_v24 = vrot.slane %v3999_v45, %v7583_v36 }
 0x350   : > { %v4013_v29 = vrot.slane %v4006_v24, %v7583_v36 }
 0x352   : > { %v4015_v3 = vadd.f32 %v4013_v29, %v3878_v26 }
 0x354   : > { %v4152_v55 = vadd.f32 %v4150_v60, %v4015_v3 }
 0x362   : > { %v4264_v4 = vpop.f32.mrb[60].mxu1 }
 0x363   : > { %v4266_v11 = vpop.f32.mrb[61].mxu1 }
 0x364   : > { %v4273_v56 = vcombine.low %v4264_v4, %v4266_v11  ;;  %v4268_v58 = vpop.f32.mrb[62].mxu1 }
 0x365   : > { %v4269_v59 = vpop.f32.mrb[63].mxu1 }
 0x366   : > { %v4280_v41 = vrot.slane %v4273_v56, %v7583_v36 }
 0x368   : > { %v4287_v43 = vrot.slane %v4280_v41, %v7583_v36 }
 0x36a   : > { %v4289_v40 = vadd.f32 %v4287_v43, %v4152_v55 }
 0x36c   : > { %v4426_v49 = vadd.f32 %v4424_v51, %v4289_v40 }
 0x37a   : > { %v4538_v42 = vpop.f32.mrb[64].mxu1 }
 0x37b   : > { %v4540_v62 = vpop.f32.mrb[65].mxu1 }
 0x37c   : > { %v4547_v63 = vcombine.low %v4538_v42, %v4540_v62  ;;  %v4542_v0 = vpop.f32.mrb[66].mxu1 }
 0x37d   : > { %v4543_v2 = vpop.f32.mrb[67].mxu1 }
 0x37e   : > { %v4554_v61 = vrot.slane %v4547_v63, %v7583_v36 }
 0x380   : > { %v4561_v6 = vrot.slane %v4554_v61, %v7583_v36 }
 0x382   : > { %v4563_v9 = vadd.f32 %v4561_v6, %v4426_v49 }
 0x384   : > { %v4700_v10 = vadd.f32 %v4698_v8, %v4563_v9 }
 0x392   : > { %v4812_v18 = vpop.f32.mrb[68].mxu1 }
 0x393   : > { %v4814_v13 = vpop.f32.mrb[69].mxu1 }
 0x394   : > { %v4821_v15 = vcombine.low %v4812_v18, %v4814_v13  ;;  %v4816_v16 = vpop.f32.mrb[70].mxu1 }
 0x395   : > { %v4817_v17 = vpop.f32.mrb[71].mxu1 }
 0x396   : > { %v4828_v19 = vrot.slane %v4821_v15, %v7583_v36 }
 0x398   : > { %v4835_v20 = vrot.slane %v4828_v19, %v7583_v36 }
 0x39a   : > { %v4837_v21 = vadd.f32 %v4835_v20, %v4700_v10 }
 0x39c   : > { %v4838_v7 = vmax.f32 %v4837_v21, 0.0 }
 0x39e   : > { %v4847_v46 = vrot.slane %v4838_v7, %v4846_v57  ;;  %v4843_v54 = vrot.slane %v4838_v7, %v4842_v53 }
 0x3a0   : > { %v4851_v25 = vpack.c.bf16 %v4847_v46, %v4847_v46  ;;  %v4850_v27 = vpack.c.bf16 %v4843_v54, %v4843_v54 }
 0x3a2   : > { %5013 = vmatprep.mubr.bf16.mxu0 %v4851_v25 }
 0x3a3   : > { %5014 = vmatmul.mubr.bf16.vlgmr.msra.gmra.mrb[64].mxu0 %v4850_v27 }
 0x476   : > { %v5904_v30 = vpop.f32.mrb[64].mxu0 }
 0x477   : > { %v5905_v36 = vpop.f32.mrb[65].mxu0 }
 0x478   : > { %v5906_v31 = vadd.f32 %v5905_v36, %v5904_v30  ;;  %v5907_v28 = vpop.f32.mrb[66].mxu0 }
 0x479   : > { %v5908_v34 = vpop.f32.mrb[67].mxu0 }
 0x47a   : > { %v5016_v14 = vadd.f32 %v5906_v31, %v4884_v32 }
 0x47c   : > { %5022 = vst.msk [vmem:[%s270_s20] sm:$0x1] %vm5021_vm2, %v5016_v14 }
 0x47d   : > { %6550 = shalt.err (!%p6547_p3)
}
 0x47e   : > { %s6551_s16 = scalar_lea.hbm %s8212_s29, 16  ;;  %s6555_s19 = scalar_lea.hbm %s8261_s7, 32 }
 0x47f   : > { %p6552_p4 = scmp.ne.s32.totalorder %s8212_s29, %s6551_s16  ;;  %p6556_p9 = scmp.lt.u32.totalorder %s8212_s29, %s8261_s7 }
 0x480   : > { %p6557_p10 = scmp.lt.u32.totalorder %s6555_s19, %s6551_s16  ;;  %p6559_p12 = scmp.lt.u32.totalorder %s6551_s16, %s8212_s29 }
 0x481   : > { %p6553_p7 = pnand %p6552_p4, %p6682_p5 }
 0x482   : > { %p6558_p11 = por %p6557_p10, %p6556_p9 }
 0x483   : > { %p6554_p8 = pneg %p6553_p7 }
 0x484   : > { %p6560_p13 = por %p6559_p12, %p6558_p11 }
 0x486   : > { %p6561_p0 = pnand %p6560_p13, %p6554_p8 }
 0x488   : > { %6564 = shalt.err (!%p6561_p0)
}
 0x489   : > { %5911 = dma.vmem_to_hbm [thread:$0]  (%p6682_p5), %s8214_s21, 16, %s8212_s29, %s5024_s8  }
 0x48a PF: > { %p5917_p1 = scmp.ge.s32.totalorder %s6599_s27, 2  ;;  %s5048_s22 = sand.u32 1, %s6587_s24  }
 0x48b   : > { %s5049_s23 = scalar_lea.sflag [#allocation3], %s5048_s22 }
 0x48c   : > { %p5914_p2 = pnand %p5917_p1, %p6686_p6 }
 0x48e   : > { %6582 = dma.done.wait (!%p5914_p2), %s5049_s23, 16  }
 0x48f   : > { %6584 = vsyncadd (!%p5914_p2), %s5049_s23, 4294967280  ;;  %p17_p3 = scmp.ge.s32.totalorder %s6669_s30, 4   ;;  %s8264_s24 = smov %s6591_s25 }
 0x490   : > { %s8265_s25 = smov %s6595_s26  ;;  %s8266_s26 = smov %s6680_s10 }
 0x491   : > { %s8267_s27 = smov %s6669_s30  ;;  %19 = sbr.rel (!%p17_p3) target bundleno = 3 (0x3), region = 114 }
 0x498   :  { %5053 = vsyncpa [#allocation3], 1 }
 0x499   :  { %5055 = vsyncpa [#allocation3 + $0x1], 1 }

</bundles_post_ra>
